<compile_context>
chip_gen: v7x
topology: tpu7x:2x2x1
jax: 0.10.0
libtpu: 0.0.40
codegen_flags: <defaults>
</compile_context>

<pallas_src>
import functools

import numpy as np
import jax
import jax.numpy as jnp
from jax.experimental import pallas as pl
from jax.experimental.pallas import tpu as pltpu


_VMEM = 32 * 1024 * 1024


# ----------------------------------------------------------------------------
# Math helpers (only exp / abs / where — Mosaic-safe, f32).
# ----------------------------------------------------------------------------
def _erf(x):
    # Abramowitz & Stegun 7.1.26, |err| < 1.5e-7 (matches torch erf-GELU).
    a1, a2, a3, a4, a5 = (0.254829592, -0.284496736, 1.421413741,
                          -1.453152027, 1.061405429)
    p = 0.3275911
    s = jnp.where(x < 0.0, -1.0, 1.0)
    ax = jnp.abs(x)
    t = 1.0 / (1.0 + p * ax)
    poly = ((((a5 * t + a4) * t + a3) * t + a2) * t + a1) * t
    return s * (1.0 - poly * jnp.exp(-ax * ax))


def _gelu(x):
    return 0.5 * x * (1.0 + _erf(x * 0.7071067811865476))


def _sigmoid(x):
    return 1.0 / (1.0 + jnp.exp(-x))


def _round_up(x, m):
    return ((x + m - 1) // m) * m


def _pick_tile(m, max_tile):
    """(tile, padded_m): tile % 8 == 0, padded_m % tile == 0, no pad if avoidable."""
    if m <= max_tile:
        mp = _round_up(m, 8)
        return mp, mp
    for t in range(max_tile - max_tile % 8, 7, -8):
        if m % t == 0:
            return t, m
    t = max_tile - max_tile % 8
    return t, _round_up(m, t)


# ----------------------------------------------------------------------------
# Kernel 1: 1x1 conv as a single-K-step bf16 matmul with fused bias.
# ----------------------------------------------------------------------------
def _conv1x1_kernel(x_ref, w_ref, b_ref, o_ref):
    y = jnp.dot(x_ref[...], w_ref[...], preferred_element_type=jnp.float32)
    o_ref[...] = (y + b_ref[...]).astype(o_ref.dtype)


def conv1x1(x, w, b, *, out_dtype=jnp.float32, tile_m=1024):
    """x (N,H,W,Cin) @ w (Cin,Cout) + b -> (N,H,W,Cout)."""
    n, h, wd, cin = x.shape
    cout = w.shape[1]
    m = n * h * wd
    x2 = x.reshape(m, cin).astype(jnp.bfloat16)
    tm, mp = _pick_tile(m, tile_m)
    if mp != m:
        x2 = jnp.pad(x2, ((0, mp - m), (0, 0)))
    out = pl.pallas_call(
        _conv1x1_kernel,
        out_shape=jax.ShapeDtypeStruct((mp, cout), out_dtype),
        grid=(mp // tm,),
        in_specs=[
            pl.BlockSpec((tm, cin), lambda i: (i, 0)),
            pl.BlockSpec((cin, cout), lambda i: (0, 0)),
            pl.BlockSpec((1, cout), lambda i: (0, 0)),
        ],
        out_specs=pl.BlockSpec((tm, cout), lambda i: (i, 0)),
        compiler_params=pltpu.CompilerParams(
            dimension_semantics=("parallel",), vmem_limit_bytes=_VMEM),
    )(x2, w.astype(jnp.bfloat16), b.reshape(1, cout).astype(jnp.float32))
    return out[:m].reshape(n, h, wd, cout)


# ----------------------------------------------------------------------------
# Kernel 2: one gated1 stage = 3x3-s2 conv (tap-major big-K matmul, BN folded)
#           -> GELU -> 1x1 conv, optionally fused with AdaptiveMaxPool(1,1)
#           + sigmoid for the final stage.
# ----------------------------------------------------------------------------
def _gated_stage_kernel(t_ref, w1_ref, w2_ref, b2_ref, o_ref, *, pool):
    h = jnp.dot(t_ref[0], w1_ref[...], preferred_element_type=jnp.float32)
    h = _gelu(h)
    h = jnp.dot(h.astype(jnp.bfloat16), w2_ref[...],
                preferred_element_type=jnp.float32) + b2_ref[...]
    if pool:
        o_ref[0] = _sigmoid(jnp.max(h, axis=0, keepdims=True))
    else:
        o_ref[0] = h.astype(o_ref.dtype)


def gated_stage(taps, w1, w2, b2, *, pool, out_dtype, tile_p=512):
    n, p, k = taps.shape
    cout = w2.shape[1]
    kern = functools.partial(_gated_stage_kernel, pool=pool)
    if pool:
        return pl.pallas_call(
            kern,
            out_shape=jax.ShapeDtypeStruct((n, 1, cout), out_dtype),
            grid=(n,),
            in_specs=[
                pl.BlockSpec((1, p, k), lambda i: (i, 0, 0)),
                pl.BlockSpec((k, 64), lambda i: (0, 0)),
                pl.BlockSpec((64, cout), lambda i: (0, 0)),
                pl.BlockSpec((1, cout), lambda i: (0, 0)),
            ],
            out_specs=pl.BlockSpec((1, 1, cout), lambda i: (i, 0, 0)),
            compiler_params=pltpu.CompilerParams(
                dimension_semantics=("parallel",), vmem_limit_bytes=_VMEM),
        )(taps, w1, w2, b2)

    tp, pp = _pick_tile(p, tile_p)
    if pp != p:
        taps = jnp.pad(taps, ((0, 0), (0, pp - p), (0, 0)))
    out = pl.pallas_call(
        kern,
        out_shape=jax.ShapeDtypeStruct((n, pp, cout), out_dtype),
        grid=(n, pp // tp),
        in_specs=[
            pl.BlockSpec((1, tp, k), lambda i, j: (i, j, 0)),
            pl.BlockSpec((k, 64), lambda i, j: (0, 0)),
            pl.BlockSpec((64, cout), lambda i, j: (0, 0)),
            pl.BlockSpec((1, cout), lambda i, j: (0, 0)),
        ],
        out_specs=pl.BlockSpec((1, tp, cout), lambda i, j: (i, j, 0)),
        compiler_params=pltpu.CompilerParams(
            dimension_semantics=("parallel", "parallel"),
            vmem_limit_bytes=_VMEM),
    )(taps, w1, w2, b2)
    return out[:, :p]


def _conv3x3_s2_taps(y):
    """y (N,Hi,Wi,C) -> (taps (N,Ho*Wo,9*C), Ho, Wo) for k=3, s=2, zero-pad=1."""
    n, hi, wi, c = y.shape
    ho, wo = (hi - 1) // 2 + 1, (wi - 1) // 2 + 1
    yp = jnp.pad(y, ((0, 0), (1, 1), (1, 1), (0, 0)))
    taps = [yp[:, ki:ki + 2 * ho - 1:2, kj:kj + 2 * wo - 1:2, :]
            for ki in range(3) for kj in range(3)]
    return jnp.concatenate(taps, axis=-1).reshape(n, ho * wo, 9 * c), ho, wo


def gated1(g, params):
    """g (N,Hd,Wd,128) -> per-batch channel gate (N,1,128) f32."""
    n = g.shape[0]
    g = g.astype(jnp.bfloat16)
    gt, h1, w1 = _conv3x3_s2_taps(g)                         # (N, P1, 1152)
    h = gated_stage(gt, params["g1_w1"], params["g1_w2"], params["g1_b2"],
                    pool=False, out_dtype=jnp.bfloat16)      # (N, P1, 64)
    ht, _, _ = _conv3x3_s2_taps(h.reshape(n, h1, w1, 64))    # (N, P2, 576)
    return gated_stage(ht, params["g1_w3"], params["g1_w4"], params["g1_b4"],
                       pool=True, out_dtype=jnp.float32)     # (N, 1, 128)


# ----------------------------------------------------------------------------
# Kernel 3: fused tail.  Gate is pre-folded into the fuse weight, the 2x2
# taps arrive tap-major, so the kernel is two lane-dense matmuls:
#   f   = relu((4*tp,128) @ (128,64) + bf)        # RSU4F stand-in, gate folded
#   out = (tp,256) @ (256,128) + bo               # 2x2-s2 outconv
# ----------------------------------------------------------------------------
def _tail_kernel(x_ref, wf_ref, bf_ref, wo_ref, bo_ref, o_ref):
    tp = o_ref.shape[1]
    f = jnp.dot(x_ref[0].reshape(4 * tp, 128), wf_ref[0],
                preferred_element_type=jnp.float32)
    f = jnp.maximum(f + bf_ref[...], 0.0).astype(jnp.bfloat16)
    fcat = jnp.concatenate([f[t * tp:(t + 1) * tp, :] for t in range(4)],
                           axis=-1)                           # (tp, 256)
    y = jnp.dot(fcat, wo_ref[...], preferred_element_type=jnp.float32)
    o_ref[0] = (y + bo_ref[...]).astype(o_ref.dtype)


def fused_tail(xt, wf, params, *, tile_p=512):
    """xt (N,4,P,128) bf16 tap-major, wf (N,128,64) bf16 -> (N,P,128) f32."""
    n, _, p, c = xt.shape
    tp, pp = _pick_tile(p, tile_p)
    if pp != p:
        xt = jnp.pad(xt, ((0, 0), (0, 0), (0, pp - p), (0, 0)))
    out = pl.pallas_call(
        _tail_kernel,
        out_shape=jax.ShapeDtypeStruct((n, pp, 128), jnp.float32),
        grid=(n, pp // tp),
        in_specs=[
            pl.BlockSpec((1, 4, tp, c), lambda i, j: (i, 0, j, 0)),
            pl.BlockSpec((1, 128, 64), lambda i, j: (i, 0, 0)),
            pl.BlockSpec((1, 64), lambda i, j: (0, 0)),
            pl.BlockSpec((256, 128), lambda i, j: (0, 0)),
            pl.BlockSpec((1, 128), lambda i, j: (0, 0)),
        ],
        out_specs=pl.BlockSpec((1, tp, 128), lambda i, j: (i, j, 0)),
        compiler_params=pltpu.CompilerParams(
            dimension_semantics=("parallel", "parallel"),
            vmem_limit_bytes=_VMEM),
    )(xt, wf, params["fuse_b"], params["out_w"], params["out_b"])
    return out[:, :p]


# ----------------------------------------------------------------------------
# Resampling glue (exact PyTorch semantics).  The up path is produced directly
# in 2x2-tap-major order so the tail kernel needs no in-kernel relayout and no
# full-resolution intermediate is transposed through HBM.
# ----------------------------------------------------------------------------
def _bilinear_matrix(i_sz, o_sz):
    """PyTorch bilinear upsample matrix, align_corners=False."""
    scale = i_sz / o_sz
    dst = np.arange(o_sz, dtype=np.float64)
    src = np.maximum((dst + 0.5) * scale - 0.5, 0.0)
    i0 = np.minimum(np.floor(src).astype(np.int64), i_sz - 1)
    i1 = np.minimum(i0 + 1, i_sz - 1)
    frac = src - i0
    m = np.zeros((o_sz, i_sz), dtype=np.float64)
    m[np.arange(o_sz), i0] += 1.0 - frac
    m[np.arange(o_sz), i1] += frac
    return m.astype(np.float32)


def _up_tap(feat, factor, di, dj):
    """Rows di::2 / cols dj::2 of the bilinearly upsampled map, built directly."""
    _, h, w, _ = feat.shape
    rh = jnp.asarray(_bilinear_matrix(h, h * factor)[di::2])
    rw = jnp.asarray(_bilinear_matrix(w, w * factor)[dj::2])
    return jnp.einsum("oh,pw,nhwc->nopc", rh, rw, feat)


def avg_pool(x, k):
    n, h, w, c = x.shape
    return x.reshape(n, h // k, k, w // k, k, c).mean(axis=(2, 4))


# ----------------------------------------------------------------------------
# Parameters (deterministic synthetic init; packed layouts for the kernels).
# ----------------------------------------------------------------------------
def init_params(key, c1=64, c2=128, c3=256, c4=512):
    ks = iter(jax.random.split(key, 24))

    def wmat(shape):
        return jax.random.normal(next(ks), shape, jnp.float32) / np.sqrt(shape[0])

    def bias(n):
        return jax.random.normal(next(ks), (n,), jnp.float32) * 0.01

    bn_scale = np.float32(1.0 / np.sqrt(1.0 + 1e-5))   # eval-mode BN fold

    return {
        # linear_c* 1x1 convs (Cin, 32)
        "w_c4": wmat((c4, 32)).astype(jnp.bfloat16), "b_c4": bias(32),
        "w_c3": wmat((c3, 32)).astype(jnp.bfloat16), "b_c3": bias(32),
        "w_c2": wmat((c2, 32)).astype(jnp.bfloat16), "b_c2": bias(32),
        "w_c1": wmat((c1, 32)).astype(jnp.bfloat16), "b_c1": bias(32),
        # gated1: 3x3-s2 convs stored tap-major ((kh*3+kw)*Cin + cin, Cout),
        # no bias, BN folded; following 1x1 convs with bias.
        "g1_w1": (wmat((9 * 128, 64)) * bn_scale).astype(jnp.bfloat16),
        "g1_w2": wmat((64, 64)).astype(jnp.bfloat16),
        "g1_b2": bias(64).reshape(1, 64),
        "g1_w3": (wmat((9 * 64, 64)) * bn_scale).astype(jnp.bfloat16),
        "g1_w4": wmat((64, 128)).astype(jnp.bfloat16),
        "g1_b4": bias(128).reshape(1, 128),
        # Faster_RSU4F stand-in (1x1 conv 128->64 + ReLU), kept f32 so the
        # per-batch gate can be folded in before the bf16 cast.
        "fuse_w": wmat((128, 64)),
        "fuse_b": bias(64).reshape(1, 64),
        # 2x2-s2 outconv, stored tap-major (t*64 + cmid, 128)
        "out_w": wmat((256, 128)).astype(jnp.bfloat16),
        "out_b": bias(128).reshape(1, 128),
    }


# ----------------------------------------------------------------------------
# GFFM forward
# ----------------------------------------------------------------------------
def gffm_forward(params, c1, c2, c3, c4):
    n, h, w, _ = c1.shape
    h2, w2 = h // 2, w // 2

    # linear_c1..c4 at native resolution (reference order: conv BEFORE resample).
    _c4 = conv1x1(c4, params["w_c4"], params["b_c4"])
    _c3 = conv1x1(c3, params["w_c3"], params["b_c3"])
    _c2 = conv1x1(c2, params["w_c2"], params["b_c2"])
    _c1 = conv1x1(c1, params["w_c1"], params["b_c1"])

    # Down path -> gated1 (per-batch channel gate).
    g = jnp.concatenate([_c4, avg_pool(_c3, 2), avg_pool(_c2, 4),
                         avg_pool(_c1, 8)], axis=-1)          # (N, H/8, W/8, 128)
    gate = gated1(g, params)                                   # (N, 1, 128) f32

    # Up path, built directly as a 2x2-tap-major bf16 slab:
    # xt[:, 2*di+dj] == torch.cat([up8(_c4),up4(_c3),up2(_c2),_c1])[:, di::2, dj::2].
    taps = []
    for di in range(2):
        for dj in range(2):
            taps.append(jnp.concatenate([
                _up_tap(_c4, 8, di, dj),
                _up_tap(_c3, 4, di, dj),
                _up_tap(_c2, 2, di, dj),
                _c1[:, di::2, dj::2, :],
            ], axis=-1))
    xt = jnp.stack(taps, axis=1).reshape(n, 4, h2 * w2, 128).astype(jnp.bfloat16)

    # x + x*gate folded into the fuse weight: (1+gate) scales its 128 inputs.
    wf = ((1.0 + gate).reshape(n, 128, 1) * params["fuse_w"][None]
          ).astype(jnp.bfloat16)                               # (N, 128, 64)

    # Fused tail: fuse conv + ReLU (RSU4F stand-in) + 2x2-s2 outconv.
    # TODO(synk): Faster_RSU4F is not defined in RWTN_Net.py; 1x1+ReLU stand-in.
    out = fused_tail(xt, wf, params)                           # (N, H2*W2, 128)
    return out.reshape(n, h2, w2, 128)


# ----------------------------------------------------------------------------
if __name__ == "__main__":
    key = jax.random.PRNGKey(0)
    kp, k1, k2, k3, k4 = jax.random.split(key, 5)

    N, H, W = 2, 16, 16   # c1 at full res; c2/c3/c4 at /2, /4, /8 (NHWC)
    c1 = jax.random.normal(k1, (N, H, W, 64), jnp.float32)
    c2 = jax.random.normal(k2, (N, H // 2, W // 2, 128), jnp.float32)
    c3 = jax.random.normal(k3, (N, H // 4, W // 4, 256), jnp.float32)
    c4 = jax.random.normal(k4, (N, H // 8, W // 8, 512), jnp.float32)

    params = init_params(kp)

    out = jax.jit(gffm_forward)(params, c1, c2, c3, c4)
    out = jax.block_until_ready(out)
    assert out.shape == (N, H // 2, W // 2, 128), out.shape
    assert bool(jnp.all(jnp.isfinite(out)))
    print("KERNEL_OK")
</pallas_src>

<mosaic_0001>
module attributes {stable_mosaic.version = 11 : i64} {
  func.func @_conv1x1_kernel(%arg0: i32, %arg1: memref<512x64xbf16, #tpu.memory_space<vmem>>, %arg2: memref<64x32xbf16, #tpu.memory_space<vmem>>, %arg3: memref<1x32xf32, #tpu.memory_space<vmem>>, %arg4: memref<512x32xf32, #tpu.memory_space<vmem>>) attributes {dimension_semantics = [#tpu.dimension_semantics<parallel>], iteration_bounds = array<i64: 1>, scalar_prefetch = 0 : i64, scratch_operands = 0 : i64, tpu.core_type = #tpu.core_type<tc>, window_params = [{transform_indices = @transform_0, window_bounds = array<i64: 512, 64>}, {pipeline_mode = #tpu.pipeline_mode<synchronous>, transform_indices = @transform_1, window_bounds = array<i64: 64, 32>}, {pipeline_mode = #tpu.pipeline_mode<synchronous>, transform_indices = @transform_2, window_bounds = array<i64: 1, 32>}, {transform_indices = @transform_3, window_bounds = array<i64: 512, 32>}]} {
    %c0 = arith.constant 0 : index
    %c0_0 = arith.constant 0 : index
    %0 = vector.load %arg1[%c0, %c0_0] : memref<512x64xbf16, #tpu.memory_space<vmem>>, vector<512x64xbf16>
    %c0_1 = arith.constant 0 : index
    %c0_2 = arith.constant 0 : index
    %1 = vector.load %arg2[%c0_1, %c0_2] : memref<64x32xbf16, #tpu.memory_space<vmem>>, vector<64x32xbf16>
    %cst = arith.constant dense<0.000000e+00> : vector<512x32xf32>
    %2 = tpu.matmul %0, %1, %cst {dimension_numbers = #tpu.dot_dimension_numbers<[1], [0], [0], [1], [0, 0, 1, 1], [], []>} : vector<512x64xbf16>, vector<64x32xbf16>, vector<512x32xf32> -> vector<512x32xf32>
    %c0_3 = arith.constant 0 : index
    %c0_4 = arith.constant 0 : index
    %3 = vector.load %arg3[%c0_3, %c0_4] : memref<1x32xf32, #tpu.memory_space<vmem>>, vector<1x32xf32>
    %4 = vector.broadcast %3 : vector<1x32xf32> to vector<512x32xf32>
    %5 = arith.addf %2, %4 : vector<512x32xf32>
    %c0_5 = arith.constant 0 : index
    %c0_6 = arith.constant 0 : index
    %6 = vector.load %arg4[%c0_5, %c0_6] : memref<512x32xf32, #tpu.memory_space<vmem>>, vector<512x32xf32>
    tpu.vector_store %arg4[%c0_5, %c0_6], %5 {strides = array<i32>} : memref<512x32xf32, #tpu.memory_space<vmem>>, vector<512x32xf32>,
    return
  }
  func.func @transform_0(%arg0: i32) -> (i32, i32) {
    %c0_i32 = arith.constant 0 : i32
    %c0_i32_0 = arith.constant 0 : i32
    return %arg0, %c0_i32 : i32, i32
  }
  func.func @transform_1(%arg0: i32) -> (i32, i32) {
    %c0_i32 = arith.constant 0 : i32
    %c0_i32_0 = arith.constant 0 : i32
    %c0_i32_1 = arith.constant 0 : i32
    return %c0_i32, %c0_i32_0 : i32, i32
  }
  func.func @transform_2(%arg0: i32) -> (i32, i32) {
    %c0_i32 = arith.constant 0 : i32
    %c0_i32_0 = arith.constant 0 : i32
    %c0_i32_1 = arith.constant 0 : i32
    return %c0_i32, %c0_i32_0 : i32, i32
  }
  func.func @transform_3(%arg0: i32) -> (i32, i32) {
    %c0_i32 = arith.constant 0 : i32
    %c0_i32_0 = arith.constant 0 : i32
    return %arg0, %c0_i32 : i32, i32
  }
}

module attributes {stable_mosaic.version = 11 : i64} {
  func.func @_conv1x1_kernel(%arg0: i32, %arg1: memref<128x128xbf16, #tpu.memory_space<vmem>>, %arg2: memref<128x32xbf16, #tpu.memory_space<vmem>>, %arg3: memref<1x32xf32, #tpu.memory_space<vmem>>, %arg4: memref<128x32xf32, #tpu.memory_space<vmem>>) attributes {dimension_semantics = [#tpu.dimension_semantics<parallel>], iteration_bounds = array<i64: 1>, scalar_prefetch = 0 : i64, scratch_operands = 0 : i64, tpu.core_type = #tpu.core_type<tc>, window_params = [{transform_indices = @transform_0, window_bounds = array<i64: 128, 128>}, {pipeline_mode = #tpu.pipeline_mode<synchronous>, transform_indices = @transform_1, window_bounds = array<i64: 128, 32>}, {pipeline_mode = #tpu.pipeline_mode<synchronous>, transform_indices = @transform_2, window_bounds = array<i64: 1, 32>}, {transform_indices = @transform_3, window_bounds = array<i64: 128, 32>}]} {
    %c0 = arith.constant 0 : index
    %c0_0 = arith.constant 0 : index
    %0 = vector.load %arg1[%c0, %c0_0] : memref<128x128xbf16, #tpu.memory_space<vmem>>, vector<128x128xbf16>
    %c0_1 = arith.constant 0 : index
    %c0_2 = arith.constant 0 : index
    %1 = vector.load %arg2[%c0_1, %c0_2] : memref<128x32xbf16, #tpu.memory_space<vmem>>, vector<128x32xbf16>
    %cst = arith.constant dense<0.000000e+00> : vector<128x32xf32>
    %2 = tpu.matmul %0, %1, %cst {dimension_numbers = #tpu.dot_dimension_numbers<[1], [0], [0], [1], [0, 0, 1, 1], [], []>} : vector<128x128xbf16>, vector<128x32xbf16>, vector<128x32xf32> -> vector<128x32xf32>
    %c0_3 = arith.constant 0 : index
    %c0_4 = arith.constant 0 : index
    %3 = vector.load %arg3[%c0_3, %c0_4] : memref<1x32xf32, #tpu.memory_space<vmem>>, vector<1x32xf32>
    %4 = vector.broadcast %3 : vector<1x32xf32> to vector<128x32xf32>
    %5 = arith.addf %2, %4 : vector<128x32xf32>
    %c0_5 = arith.constant 0 : index
    %c0_6 = arith.constant 0 : index
    %6 = vector.load %arg4[%c0_5, %c0_6] : memref<128x32xf32, #tpu.memory_space<vmem>>, vector<128x32xf32>
    tpu.vector_store %arg4[%c0_5, %c0_6], %5 {strides = array<i32>} : memref<128x32xf32, #tpu.memory_space<vmem>>, vector<128x32xf32>,
    return
  }
  func.func @transform_0(%arg0: i32) -> (i32, i32) {
    %c0_i32 = arith.constant 0 : i32
    %c0_i32_0 = arith.constant 0 : i32
    return %arg0, %c0_i32 : i32, i32
  }
  func.func @transform_1(%arg0: i32) -> (i32, i32) {
    %c0_i32 = arith.constant 0 : i32
    %c0_i32_0 = arith.constant 0 : i32
    %c0_i32_1 = arith.constant 0 : i32
    return %c0_i32, %c0_i32_0 : i32, i32
  }
  func.func @transform_2(%arg0: i32) -> (i32, i32) {
    %c0_i32 = arith.constant 0 : i32
    %c0_i32_0 = arith.constant 0 : i32
    %c0_i32_1 = arith.constant 0 : i32
    return %c0_i32, %c0_i32_0 : i32, i32
  }
  func.func @transform_3(%arg0: i32) -> (i32, i32) {
    %c0_i32 = arith.constant 0 : i32
    %c0_i32_0 = arith.constant 0 : i32
    return %arg0, %c0_i32 : i32, i32
  }
}

module attributes {stable_mosaic.version = 11 : i64} {
  func.func @_conv1x1_kernel(%arg0: i32, %arg1: memref<8x512xbf16, #tpu.memory_space<vmem>>, %arg2: memref<512x32xbf16, #tpu.memory_space<vmem>>, %arg3: memref<1x32xf32, #tpu.memory_space<vmem>>, %arg4: memref<8x32xf32, #tpu.memory_space<vmem>>) attributes {dimension_semantics = [#tpu.dimension_semantics<parallel>], iteration_bounds = array<i64: 1>, scalar_prefetch = 0 : i64, scratch_operands = 0 : i64, tpu.core_type = #tpu.core_type<tc>, window_params = [{transform_indices = @transform_0, window_bounds = array<i64: 8, 512>}, {pipeline_mode = #tpu.pipeline_mode<synchronous>, transform_indices = @transform_1, window_bounds = array<i64: 512, 32>}, {pipeline_mode = #tpu.pipeline_mode<synchronous>, transform_indices = @transform_2, window_bounds = array<i64: 1, 32>}, {transform_indices = @transform_3, window_bounds = array<i64: 8, 32>}]} {
    %c0 = arith.constant 0 : index
    %c0_0 = arith.constant 0 : index
    %0 = vector.load %arg1[%c0, %c0_0] : memref<8x512xbf16, #tpu.memory_space<vmem>>, vector<8x512xbf16>
    %c0_1 = arith.constant 0 : index
    %c0_2 = arith.constant 0 : index
    %1 = vector.load %arg2[%c0_1, %c0_2] : memref<512x32xbf16, #tpu.memory_space<vmem>>, vector<512x32xbf16>
    %cst = arith.constant dense<0.000000e+00> : vector<8x32xf32>
    %2 = tpu.matmul %0, %1, %cst {dimension_numbers = #tpu.dot_dimension_numbers<[1], [0], [0], [1], [0, 0, 1, 1], [], []>} : vector<8x512xbf16>, vector<512x32xbf16>, vector<8x32xf32> -> vector<8x32xf32>
    %c0_3 = arith.constant 0 : index
    %c0_4 = arith.constant 0 : index
    %3 = vector.load %arg3[%c0_3, %c0_4] : memref<1x32xf32, #tpu.memory_space<vmem>>, vector<1x32xf32>
    %4 = vector.broadcast %3 : vector<1x32xf32> to vector<8x32xf32>
    %5 = arith.addf %2, %4 : vector<8x32xf32>
    %c0_5 = arith.constant 0 : index
    %c0_6 = arith.constant 0 : index
    %6 = vector.load %arg4[%c0_5, %c0_6] : memref<8x32xf32, #tpu.memory_space<vmem>>, vector<8x32xf32>
    tpu.vector_store %arg4[%c0_5, %c0_6], %5 {strides = array<i32>} : memref<8x32xf32, #tpu.memory_space<vmem>>, vector<8x32xf32>,
    return
  }
  func.func @transform_0(%arg0: i32) -> (i32, i32) {
    %c0_i32 = arith.constant 0 : i32
    %c0_i32_0 = arith.constant 0 : i32
    return %arg0, %c0_i32 : i32, i32
  }
  func.func @transform_1(%arg0: i32) -> (i32, i32) {
    %c0_i32 = arith.constant 0 : i32
    %c0_i32_0 = arith.constant 0 : i32
    %c0_i32_1 = arith.constant 0 : i32
    return %c0_i32, %c0_i32_0 : i32, i32
  }
  func.func @transform_2(%arg0: i32) -> (i32, i32) {
    %c0_i32 = arith.constant 0 : i32
    %c0_i32_0 = arith.constant 0 : i32
    %c0_i32_1 = arith.constant 0 : i32
    return %c0_i32, %c0_i32_0 : i32, i32
  }
  func.func @transform_3(%arg0: i32) -> (i32, i32) {
    %c0_i32 = arith.constant 0 : i32
    %c0_i32_0 = arith.constant 0 : i32
    return %arg0, %c0_i32 : i32, i32
  }
}

module attributes {stable_mosaic.version = 11 : i64} {
  func.func @_conv1x1_kernel(%arg0: i32, %arg1: memref<32x256xbf16, #tpu.memory_space<vmem>>, %arg2: memref<256x32xbf16, #tpu.memory_space<vmem>>, %arg3: memref<1x32xf32, #tpu.memory_space<vmem>>, %arg4: memref<32x32xf32, #tpu.memory_space<vmem>>) attributes {dimension_semantics = [#tpu.dimension_semantics<parallel>], iteration_bounds = array<i64: 1>, scalar_prefetch = 0 : i64, scratch_operands = 0 : i64, tpu.core_type = #tpu.core_type<tc>, window_params = [{transform_indices = @transform_0, window_bounds = array<i64: 32, 256>}, {pipeline_mode = #tpu.pipeline_mode<synchronous>, transform_indices = @transform_1, window_bounds = array<i64: 256, 32>}, {pipeline_mode = #tpu.pipeline_mode<synchronous>, transform_indices = @transform_2, window_bounds = array<i64: 1, 32>}, {transform_indices = @transform_3, window_bounds = array<i64: 32, 32>}]} {
    %c0 = arith.constant 0 : index
    %c0_0 = arith.constant 0 : index
    %0 = vector.load %arg1[%c0, %c0_0] : memref<32x256xbf16, #tpu.memory_space<vmem>>, vector<32x256xbf16>
    %c0_1 = arith.constant 0 : index
    %c0_2 = arith.constant 0 : index
    %1 = vector.load %arg2[%c0_1, %c0_2] : memref<256x32xbf16, #tpu.memory_space<vmem>>, vector<256x32xbf16>
    %cst = arith.constant dense<0.000000e+00> : vector<32x32xf32>
    %2 = tpu.matmul %0, %1, %cst {dimension_numbers = #tpu.dot_dimension_numbers<[1], [0], [0], [1], [0, 0, 1, 1], [], []>} : vector<32x256xbf16>, vector<256x32xbf16>, vector<32x32xf32> -> vector<32x32xf32>
    %c0_3 = arith.constant 0 : index
    %c0_4 = arith.constant 0 : index
    %3 = vector.load %arg3[%c0_3, %c0_4] : memref<1x32xf32, #tpu.memory_space<vmem>>, vector<1x32xf32>
    %4 = vector.broadcast %3 : vector<1x32xf32> to vector<32x32xf32>
    %5 = arith.addf %2, %4 : vector<32x32xf32>
    %c0_5 = arith.constant 0 : index
    %c0_6 = arith.constant 0 : index
    %6 = vector.load %arg4[%c0_5, %c0_6] : memref<32x32xf32, #tpu.memory_space<vmem>>, vector<32x32xf32>
    tpu.vector_store %arg4[%c0_5, %c0_6], %5 {strides = array<i32>} : memref<32x32xf32, #tpu.memory_space<vmem>>, vector<32x32xf32>,
    return
  }
  func.func @transform_0(%arg0: i32) -> (i32, i32) {
    %c0_i32 = arith.constant 0 : i32
    %c0_i32_0 = arith.constant 0 : i32
    return %arg0, %c0_i32 : i32, i32
  }
  func.func @transform_1(%arg0: i32) -> (i32, i32) {
    %c0_i32 = arith.constant 0 : i32
    %c0_i32_0 = arith.constant 0 : i32
    %c0_i32_1 = arith.constant 0 : i32
    return %c0_i32, %c0_i32_0 : i32, i32
  }
  func.func @transform_2(%arg0: i32) -> (i32, i32) {
    %c0_i32 = arith.constant 0 : i32
    %c0_i32_0 = arith.constant 0 : i32
    %c0_i32_1 = arith.constant 0 : i32
    return %c0_i32, %c0_i32_0 : i32, i32
  }
  func.func @transform_3(%arg0: i32) -> (i32, i32) {
    %c0_i32 = arith.constant 0 : i32
    %c0_i32_0 = arith.constant 0 : i32
    return %arg0, %c0_i32 : i32, i32
  }
}

module attributes {stable_mosaic.version = 11 : i64} {
  func.func @_gated_stage_kernel(%arg0: i32, %arg1: i32, %arg2: memref<1x8x1152xbf16, #tpu.memory_space<vmem>>, %arg3: memref<1152x64xbf16, #tpu.memory_space<vmem>>, %arg4: memref<64x64xbf16, #tpu.memory_space<vmem>>, %arg5: memref<1x64xf32, #tpu.memory_space<vmem>>, %arg6: memref<1x8x64xbf16, #tpu.memory_space<vmem>>) attributes {dimension_semantics = [#tpu.dimension_semantics<parallel>, #tpu.dimension_semantics<parallel>], iteration_bounds = array<i64: 2, 1>, scalar_prefetch = 0 : i64, scratch_operands = 0 : i64, tpu.core_type = #tpu.core_type<tc>, window_params = [{transform_indices = @transform_0, window_bounds = array<i64: 1, 8, 1152>}, {pipeline_mode = #tpu.pipeline_mode<synchronous>, transform_indices = @transform_1, window_bounds = array<i64: 1152, 64>}, {pipeline_mode = #tpu.pipeline_mode<synchronous>, transform_indices = @transform_2, window_bounds = array<i64: 64, 64>}, {pipeline_mode = #tpu.pipeline_mode<synchronous>, transform_indices = @transform_3, window_bounds = array<i64: 1, 64>}, {transform_indices = @transform_4, window_bounds = array<i64: 1, 8, 64>}]} {
    %c0 = arith.constant 0 : index
    %c0_0 = arith.constant 0 : index
    %c0_1 = arith.constant 0 : index
    %0 = vector.load %arg2[%c0, %c0_0, %c0_1] : memref<1x8x1152xbf16, #tpu.memory_space<vmem>>, vector<1x8x1152xbf16>
    %1 = vector.shape_cast %0 : vector<1x8x1152xbf16> to vector<8x1152xbf16>
    %c0_2 = arith.constant 0 : index
    %c0_3 = arith.constant 0 : index
    %2 = vector.load %arg3[%c0_2, %c0_3] : memref<1152x64xbf16, #tpu.memory_space<vmem>>, vector<1152x64xbf16>
    %cst = arith.constant dense<0.000000e+00> : vector<8x64xf32>
    %3 = tpu.matmul %1, %2, %cst {dimension_numbers = #tpu.dot_dimension_numbers<[1], [0], [0], [1], [0, 0, 1, 1], [], []>} : vector<8x1152xbf16>, vector<1152x64xbf16>, vector<8x64xf32> -> vector<8x64xf32>
    %cst_4 = arith.constant 5.000000e-01 : f32
    %4 = vector.broadcast %cst_4 : f32 to vector<8x64xf32>
    %5 = arith.mulf %4, %3 : vector<8x64xf32>
    %cst_5 = arith.constant 0.707106769 : f32
    %6 = vector.broadcast %cst_5 : f32 to vector<8x64xf32>
    %7 = arith.mulf %3, %6 : vector<8x64xf32>
    %cst_6 = arith.constant 0.000000e+00 : f32
    %8 = vector.broadcast %cst_6 : f32 to vector<8x64xf32>
    %9 = arith.cmpf olt, %7, %8 : vector<8x64xf32>
    %cst_7 = arith.constant -1.000000e+00 : f32
    %cst_8 = arith.constant 1.000000e+00 : f32
    %10 = vector.broadcast %cst_7 : f32 to vector<8x64xf32>
    %11 = vector.broadcast %cst_8 : f32 to vector<8x64xf32>
    %12 = arith.select %9, %10, %11 : vector<8x64xi1>, vector<8x64xf32>
    %13 = math.absf %7 : vector<8x64xf32>
    %cst_9 = arith.constant 0.327591091 : f32
    %14 = vector.broadcast %cst_9 : f32 to vector<8x64xf32>
    %15 = arith.mulf %14, %13 : vector<8x64xf32>
    %cst_10 = arith.constant 1.000000e+00 : f32
    %16 = vector.broadcast %cst_10 : f32 to vector<8x64xf32>
    %17 = arith.addf %16, %15 : vector<8x64xf32>
    %cst_11 = arith.constant 1.000000e+00 : f32
    %18 = vector.broadcast %cst_11 : f32 to vector<8x64xf32>
    %19 = arith.divf %18, %17 : vector<8x64xf32>
    %cst_12 = arith.constant 1.06140542 : f32
    %20 = vector.broadcast %cst_12 : f32 to vector<8x64xf32>
    %21 = arith.mulf %20, %19 : vector<8x64xf32>
    %cst_13 = arith.constant -1.45315206 : f32
    %22 = vector.broadcast %cst_13 : f32 to vector<8x64xf32>
    %23 = arith.addf %21, %22 : vector<8x64xf32>
    %24 = arith.mulf %23, %19 : vector<8x64xf32>
    %cst_14 = arith.constant 1.42141378 : f32
    %25 = vector.broadcast %cst_14 : f32 to vector<8x64xf32>
    %26 = arith.addf %24, %25 : vector<8x64xf32>
    %27 = arith.mulf %26, %19 : vector<8x64xf32>
    %cst_15 = arith.constant -0.284496725 : f32
    %28 = vector.broadcast %cst_15 : f32 to vector<8x64xf32>
    %29 = arith.addf %27, %28 : vector<8x64xf32>
    %30 = arith.mulf %29, %19 : vector<8x64xf32>
    %cst_16 = arith.constant 0.254829586 : f32
    %31 = vector.broadcast %cst_16 : f32 to vector<8x64xf32>
    %32 = arith.addf %30, %31 : vector<8x64xf32>
    %33 = arith.mulf %32, %19 : vector<8x64xf32>
    %cst_17 = arith.constant 0.000000e+00 : f32
    %34 = vector.broadcast %cst_17 : f32 to vector<8x64xf32>
    %35 = arith.subf %34, %13 : vector<8x64xf32>
    %36 = arith.mulf %35, %13 : vector<8x64xf32>
    %37 = math.exp %36 : vector<8x64xf32>
    %38 = arith.mulf %33, %37 : vector<8x64xf32>
    %cst_18 = arith.constant 1.000000e+00 : f32
    %39 = vector.broadcast %cst_18 : f32 to vector<8x64xf32>
    %40 = arith.subf %39, %38 : vector<8x64xf32>
    %41 = arith.mulf %12, %40 : vector<8x64xf32>
    %cst_19 = arith.constant 1.000000e+00 : f32
    %42 = vector.broadcast %cst_19 : f32 to vector<8x64xf32>
    %43 = arith.addf %42, %41 : vector<8x64xf32>
    %44 = arith.mulf %5, %43 : vector<8x64xf32>
    %45 = arith.truncf %44 : vector<8x64xf32> to vector<8x64xbf16>
    %c0_20 = arith.constant 0 : index
    %c0_21 = arith.constant 0 : index
    %46 = vector.load %arg4[%c0_20, %c0_21] : memref<64x64xbf16, #tpu.memory_space<vmem>>, vector<64x64xbf16>
    %cst_22 = arith.constant dense<0.000000e+00> : vector<8x64xf32>
    %47 = tpu.matmul %45, %46, %cst_22 {dimension_numbers = #tpu.dot_dimension_numbers<[1], [0], [0], [1], [0, 0, 1, 1], [], []>} : vector<8x64xbf16>, vector<64x64xbf16>, vector<8x64xf32> -> vector<8x64xf32>
    %c0_23 = arith.constant 0 : index
    %c0_24 = arith.constant 0 : index
    %48 = vector.load %arg5[%c0_23, %c0_24] : memref<1x64xf32, #tpu.memory_space<vmem>>, vector<1x64xf32>
    %49 = vector.broadcast %48 : vector<1x64xf32> to vector<8x64xf32>
    %50 = arith.addf %47, %49 : vector<8x64xf32>
    %51 = arith.truncf %50 : vector<8x64xf32> to vector<8x64xbf16>
    %c0_25 = arith.constant 0 : index
    %c0_26 = arith.constant 0 : index
    %c0_27 = arith.constant 0 : index
    %52 = vector.load %arg6[%c0_25, %c0_26, %c0_27] : memref<1x8x64xbf16, #tpu.memory_space<vmem>>, vector<1x8x64xbf16>
    %53 = vector.shape_cast %52 : vector<1x8x64xbf16> to vector<8x64xbf16>
    %54 = vector.shape_cast %51 : vector<8x64xbf16> to vector<1x8x64xbf16>
    tpu.vector_store %arg6[%c0_25, %c0_26, %c0_27], %54 {strides = array<i32>} : memref<1x8x64xbf16, #tpu.memory_space<vmem>>, vector<1x8x64xbf16>,
    return
  }
  func.func @transform_0(%arg0: i32, %arg1: i32) -> (i32, i32, i32) {
    %c0_i32 = arith.constant 0 : i32
    %c0_i32_0 = arith.constant 0 : i32
    return %arg0, %arg1, %c0_i32 : i32, i32, i32
  }
  func.func @transform_1(%arg0: i32, %arg1: i32) -> (i32, i32) {
    %c0_i32 = arith.constant 0 : i32
    %c0_i32_0 = arith.constant 0 : i32
    %c0_i32_1 = arith.constant 0 : i32
    return %c0_i32, %c0_i32_0 : i32, i32
  }
  func.func @transform_2(%arg0: i32, %arg1: i32) -> (i32, i32) {
    %c0_i32 = arith.constant 0 : i32
    %c0_i32_0 = arith.constant 0 : i32
    %c0_i32_1 = arith.constant 0 : i32
    return %c0_i32, %c0_i32_0 : i32, i32
  }
  func.func @transform_3(%arg0: i32, %arg1: i32) -> (i32, i32) {
    %c0_i32 = arith.constant 0 : i32
    %c0_i32_0 = arith.constant 0 : i32
    %c0_i32_1 = arith.constant 0 : i32
    return %c0_i32, %c0_i32_0 : i32, i32
  }
  func.func @transform_4(%arg0: i32, %arg1: i32) -> (i32, i32, i32) {
    %c0_i32 = arith.constant 0 : i32
    %c0_i32_0 = arith.constant 0 : i32
    return %arg0, %arg1, %c0_i32 : i32, i32, i32
  }
}

module attributes {stable_mosaic.version = 11 : i64} {
  func.func @_gated_stage_kernel(%arg0: i32, %arg1: memref<1x1x576xbf16, #tpu.memory_space<vmem>>, %arg2: memref<576x64xbf16, #tpu.memory_space<vmem>>, %arg3: memref<64x128xbf16, #tpu.memory_space<vmem>>, %arg4: memref<1x128xf32, #tpu.memory_space<vmem>>, %arg5: memref<1x1x128xf32, #tpu.memory_space<vmem>>) attributes {dimension_semantics = [#tpu.dimension_semantics<parallel>], iteration_bounds = array<i64: 2>, scalar_prefetch = 0 : i64, scratch_operands = 0 : i64, tpu.core_type = #tpu.core_type<tc>, window_params = [{transform_indices = @transform_0, window_bounds = array<i64: 1, 1, 576>}, {pipeline_mode = #tpu.pipeline_mode<synchronous>, transform_indices = @transform_1, window_bounds = array<i64: 576, 64>}, {pipeline_mode = #tpu.pipeline_mode<synchronous>, transform_indices = @transform_2, window_bounds = array<i64: 64, 128>}, {pipeline_mode = #tpu.pipeline_mode<synchronous>, transform_indices = @transform_3, window_bounds = array<i64: 1, 128>}, {transform_indices = @transform_4, window_bounds = array<i64: 1, 1, 128>}]} {
    %c0 = arith.constant 0 : index
    %c0_0 = arith.constant 0 : index
    %c0_1 = arith.constant 0 : index
    %0 = vector.load %arg1[%c0, %c0_0, %c0_1] : memref<1x1x576xbf16, #tpu.memory_space<vmem>>, vector<1x1x576xbf16>
    %1 = vector.shape_cast %0 : vector<1x1x576xbf16> to vector<1x576xbf16>
    %c0_2 = arith.constant 0 : index
    %c0_3 = arith.constant 0 : index
    %2 = vector.load %arg2[%c0_2, %c0_3] : memref<576x64xbf16, #tpu.memory_space<vmem>>, vector<576x64xbf16>
    %cst = arith.constant dense<0.000000e+00> : vector<1x64xf32>
    %3 = tpu.matmul %1, %2, %cst {dimension_numbers = #tpu.dot_dimension_numbers<[1], [0], [0], [1], [0, 0, 1, 1], [], []>} : vector<1x576xbf16>, vector<576x64xbf16>, vector<1x64xf32> -> vector<1x64xf32>
    %cst_4 = arith.constant 5.000000e-01 : f32
    %4 = vector.broadcast %cst_4 : f32 to vector<1x64xf32>
    %5 = arith.mulf %4, %3 : vector<1x64xf32>
    %cst_5 = arith.constant 0.707106769 : f32
    %6 = vector.broadcast %cst_5 : f32 to vector<1x64xf32>
    %7 = arith.mulf %3, %6 : vector<1x64xf32>
    %cst_6 = arith.constant 0.000000e+00 : f32
    %8 = vector.broadcast %cst_6 : f32 to vector<1x64xf32>
    %9 = arith.cmpf olt, %7, %8 : vector<1x64xf32>
    %cst_7 = arith.constant -1.000000e+00 : f32
    %cst_8 = arith.constant 1.000000e+00 : f32
    %10 = vector.broadcast %cst_7 : f32 to vector<1x64xf32>
    %11 = vector.broadcast %cst_8 : f32 to vector<1x64xf32>
    %12 = arith.select %9, %10, %11 : vector<1x64xi1>, vector<1x64xf32>
    %13 = math.absf %7 : vector<1x64xf32>
    %cst_9 = arith.constant 0.327591091 : f32
    %14 = vector.broadcast %cst_9 : f32 to vector<1x64xf32>
    %15 = arith.mulf %14, %13 : vector<1x64xf32>
    %cst_10 = arith.constant 1.000000e+00 : f32
    %16 = vector.broadcast %cst_10 : f32 to vector<1x64xf32>
    %17 = arith.addf %16, %15 : vector<1x64xf32>
    %cst_11 = arith.constant 1.000000e+00 : f32
    %18 = vector.broadcast %cst_11 : f32 to vector<1x64xf32>
    %19 = arith.divf %18, %17 : vector<1x64xf32>
    %cst_12 = arith.constant 1.06140542 : f32
    %20 = vector.broadcast %cst_12 : f32 to vector<1x64xf32>
    %21 = arith.mulf %20, %19 : vector<1x64xf32>
    %cst_13 = arith.constant -1.45315206 : f32
    %22 = vector.broadcast %cst_13 : f32 to vector<1x64xf32>
    %23 = arith.addf %21, %22 : vector<1x64xf32>
    %24 = arith.mulf %23, %19 : vector<1x64xf32>
    %cst_14 = arith.constant 1.42141378 : f32
    %25 = vector.broadcast %cst_14 : f32 to vector<1x64xf32>
    %26 = arith.addf %24, %25 : vector<1x64xf32>
    %27 = arith.mulf %26, %19 : vector<1x64xf32>
    %cst_15 = arith.constant -0.284496725 : f32
    %28 = vector.broadcast %cst_15 : f32 to vector<1x64xf32>
    %29 = arith.addf %27, %28 : vector<1x64xf32>
    %30 = arith.mulf %29, %19 : vector<1x64xf32>
    %cst_16 = arith.constant 0.254829586 : f32
    %31 = vector.broadcast %cst_16 : f32 to vector<1x64xf32>
    %32 = arith.addf %30, %31 : vector<1x64xf32>
    %33 = arith.mulf %32, %19 : vector<1x64xf32>
    %cst_17 = arith.constant 0.000000e+00 : f32
    %34 = vector.broadcast %cst_17 : f32 to vector<1x64xf32>
    %35 = arith.subf %34, %13 : vector<1x64xf32>
    %36 = arith.mulf %35, %13 : vector<1x64xf32>
    %37 = math.exp %36 : vector<1x64xf32>
    %38 = arith.mulf %33, %37 : vector<1x64xf32>
    %cst_18 = arith.constant 1.000000e+00 : f32
    %39 = vector.broadcast %cst_18 : f32 to vector<1x64xf32>
    %40 = arith.subf %39, %38 : vector<1x64xf32>
    %41 = arith.mulf %12, %40 : vector<1x64xf32>
    %cst_19 = arith.constant 1.000000e+00 : f32
    %42 = vector.broadcast %cst_19 : f32 to vector<1x64xf32>
    %43 = arith.addf %42, %41 : vector<1x64xf32>
    %44 = arith.mulf %5, %43 : vector<1x64xf32>
    %45 = arith.truncf %44 : vector<1x64xf32> to vector<1x64xbf16>
    %c0_20 = arith.constant 0 : index
    %c0_21 = arith.constant 0 : index
    %46 = vector.load %arg3[%c0_20, %c0_21] : memref<64x128xbf16, #tpu.memory_space<vmem>>, vector<64x128xbf16>
    %cst_22 = arith.constant dense<0.000000e+00> : vector<1x128xf32>
    %47 = tpu.matmul %45, %46, %cst_22 {dimension_numbers = #tpu.dot_dimension_numbers<[1], [0], [0], [1], [0, 0, 1, 1], [], []>} : vector<1x64xbf16>, vector<64x128xbf16>, vector<1x128xf32> -> vector<1x128xf32>
    %c0_23 = arith.constant 0 : index
    %c0_24 = arith.constant 0 : index
    %48 = vector.load %arg4[%c0_23, %c0_24] : memref<1x128xf32, #tpu.memory_space<vmem>>, vector<1x128xf32>
    %49 = arith.addf %47, %48 : vector<1x128xf32>
    %cst_25 = arith.constant dense<0xFF800000> : vector<128xf32>
    %50 = vector.multi_reduction <maximumf>, %49, %cst_25 [0] : vector<1x128xf32> to vector<128xf32>
    %51 = vector.shape_cast %50 : vector<128xf32> to vector<1x128xf32>
    %cst_26 = arith.constant 0.000000e+00 : f32
    %52 = vector.broadcast %cst_26 : f32 to vector<1x128xf32>
    %53 = arith.subf %52, %51 : vector<1x128xf32>
    %54 = math.exp %53 : vector<1x128xf32>
    %cst_27 = arith.constant 1.000000e+00 : f32
    %55 = vector.broadcast %cst_27 : f32 to vector<1x128xf32>
    %56 = arith.addf %55, %54 : vector<1x128xf32>
    %cst_28 = arith.constant 1.000000e+00 : f32
    %57 = vector.broadcast %cst_28 : f32 to vector<1x128xf32>
    %58 = arith.divf %57, %56 : vector<1x128xf32>
    %c0_29 = arith.constant 0 : index
    %c0_30 = arith.constant 0 : index
    %c0_31 = arith.constant 0 : index
    %59 = vector.load %arg5[%c0_29, %c0_30, %c0_31] : memref<1x1x128xf32, #tpu.memory_space<vmem>>, vector<1x1x128xf32>
    %60 = vector.shape_cast %59 : vector<1x1x128xf32> to vector<1x128xf32>
    %61 = vector.shape_cast %58 : vector<1x128xf32> to vector<1x1x128xf32>
    tpu.vector_store %arg5[%c0_29, %c0_30, %c0_31], %61 {strides = array<i32>} : memref<1x1x128xf32, #tpu.memory_space<vmem>>, vector<1x1x128xf32>,
    return
  }
  func.func @transform_0(%arg0: i32) -> (i32, i32, i32) {
    %c0_i32 = arith.constant 0 : i32
    %c0_i32_0 = arith.constant 0 : i32
    %c0_i32_1 = arith.constant 0 : i32
    return %arg0, %c0_i32, %c0_i32_0 : i32, i32, i32
  }
  func.func @transform_1(%arg0: i32) -> (i32, i32) {
    %c0_i32 = arith.constant 0 : i32
    %c0_i32_0 = arith.constant 0 : i32
    %c0_i32_1 = arith.constant 0 : i32
    return %c0_i32, %c0_i32_0 : i32, i32
  }
  func.func @transform_2(%arg0: i32) -> (i32, i32) {
    %c0_i32 = arith.constant 0 : i32
    %c0_i32_0 = arith.constant 0 : i32
    %c0_i32_1 = arith.constant 0 : i32
    return %c0_i32, %c0_i32_0 : i32, i32
  }
  func.func @transform_3(%arg0: i32) -> (i32, i32) {
    %c0_i32 = arith.constant 0 : i32
    %c0_i32_0 = arith.constant 0 : i32
    %c0_i32_1 = arith.constant 0 : i32
    return %c0_i32, %c0_i32_0 : i32, i32
  }
  func.func @transform_4(%arg0: i32) -> (i32, i32, i32) {
    %c0_i32 = arith.constant 0 : i32
    %c0_i32_0 = arith.constant 0 : i32
    %c0_i32_1 = arith.constant 0 : i32
    return %arg0, %c0_i32, %c0_i32_0 : i32, i32, i32
  }
}

module attributes {stable_mosaic.version = 11 : i64} {
  func.func @_tail_kernel(%arg0: i32, %arg1: i32, %arg2: memref<1x4x64x128xbf16, #tpu.memory_space<vmem>>, %arg3: memref<1x128x64xbf16, #tpu.memory_space<vmem>>, %arg4: memref<1x64xf32, #tpu.memory_space<vmem>>, %arg5: memref<256x128xbf16, #tpu.memory_space<vmem>>, %arg6: memref<1x128xf32, #tpu.memory_space<vmem>>, %arg7: memref<1x64x128xf32, #tpu.memory_space<vmem>>) attributes {dimension_semantics = [#tpu.dimension_semantics<parallel>, #tpu.dimension_semantics<parallel>], iteration_bounds = array<i64: 2, 1>, scalar_prefetch = 0 : i64, scratch_operands = 0 : i64, tpu.core_type = #tpu.core_type<tc>, window_params = [{transform_indices = @transform_0, window_bounds = array<i64: 1, 4, 64, 128>}, {transform_indices = @transform_1, window_bounds = array<i64: 1, 128, 64>}, {pipeline_mode = #tpu.pipeline_mode<synchronous>, transform_indices = @transform_2, window_bounds = array<i64: 1, 64>}, {pipeline_mode = #tpu.pipeline_mode<synchronous>, transform_indices = @transform_3, window_bounds = array<i64: 256, 128>}, {pipeline_mode = #tpu.pipeline_mode<synchronous>, transform_indices = @transform_4, window_bounds = array<i64: 1, 128>}, {transform_indices = @transform_5, window_bounds = array<i64: 1, 64, 128>}]} {
    %c0 = arith.constant 0 : index
    %c0_0 = arith.constant 0 : index
    %c0_1 = arith.constant 0 : index
    %c0_2 = arith.constant 0 : index
    %0 = vector.load %arg2[%c0, %c0_0, %c0_1, %c0_2] : memref<1x4x64x128xbf16, #tpu.memory_space<vmem>>, vector<1x4x64x128xbf16>
    %1 = vector.shape_cast %0 : vector<1x4x64x128xbf16> to vector<4x64x128xbf16>
    %2 = vector.shape_cast %1 : vector<4x64x128xbf16> to vector<256x128xbf16>
    %c0_3 = arith.constant 0 : index
    %c0_4 = arith.constant 0 : index
    %c0_5 = arith.constant 0 : index
    %3 = vector.load %arg3[%c0_3, %c0_4, %c0_5] : memref<1x128x64xbf16, #tpu.memory_space<vmem>>, vector<1x128x64xbf16>
    %4 = vector.shape_cast %3 : vector<1x128x64xbf16> to vector<128x64xbf16>
    %cst = arith.constant dense<0.000000e+00> : vector<256x64xf32>
    %5 = tpu.matmul %2, %4, %cst {dimension_numbers = #tpu.dot_dimension_numbers<[1], [0], [0], [1], [0, 0, 1, 1], [], []>} : vector<256x128xbf16>, vector<128x64xbf16>, vector<256x64xf32> -> vector<256x64xf32>
    %c0_6 = arith.constant 0 : index
    %c0_7 = arith.constant 0 : index
    %6 = vector.load %arg4[%c0_6, %c0_7] : memref<1x64xf32, #tpu.memory_space<vmem>>, vector<1x64xf32>
    %7 = vector.broadcast %6 : vector<1x64xf32> to vector<256x64xf32>
    %8 = arith.addf %5, %7 : vector<256x64xf32>
    %cst_8 = arith.constant 0.000000e+00 : f32
    %9 = vector.broadcast %cst_8 : f32 to vector<256x64xf32>
    %10 = arith.maximumf %8, %9 : vector<256x64xf32>
    %11 = arith.truncf %10 : vector<256x64xf32> to vector<256x64xbf16>
    %12 = vector.extract_strided_slice %11 {offsets = [0, 0], sizes = [64, 64], strides = [1, 1]} : vector<256x64xbf16> to vector<64x64xbf16>
    %13 = vector.extract_strided_slice %11 {offsets = [64, 0], sizes = [64, 64], strides = [1, 1]} : vector<256x64xbf16> to vector<64x64xbf16>
    %14 = vector.extract_strided_slice %11 {offsets = [128, 0], sizes = [64, 64], strides = [1, 1]} : vector<256x64xbf16> to vector<64x64xbf16>
    %15 = vector.extract_strided_slice %11 {offsets = [192, 0], sizes = [64, 64], strides = [1, 1]} : vector<256x64xbf16> to vector<64x64xbf16>
    %16 = tpu.concatenate %12, %13, %14, %15 in 1 : vector<64x64xbf16>, vector<64x64xbf16>, vector<64x64xbf16>, vector<64x64xbf16> -> vector<64x256xbf16>
    %c0_9 = arith.constant 0 : index
    %c0_10 = arith.constant 0 : index
    %17 = vector.load %arg5[%c0_9, %c0_10] : memref<256x128xbf16, #tpu.memory_space<vmem>>, vector<256x128xbf16>
    %cst_11 = arith.constant dense<0.000000e+00> : vector<64x128xf32>
    %18 = tpu.matmul %16, %17, %cst_11 {dimension_numbers = #tpu.dot_dimension_numbers<[1], [0], [0], [1], [0, 0, 1, 1], [], []>} : vector<64x256xbf16>, vector<256x128xbf16>, vector<64x128xf32> -> vector<64x128xf32>
    %c0_12 = arith.constant 0 : index
    %c0_13 = arith.constant 0 : index
    %19 = vector.load %arg6[%c0_12, %c0_13] : memref<1x128xf32, #tpu.memory_space<vmem>>, vector<1x128xf32>
    %20 = vector.broadcast %19 : vector<1x128xf32> to vector<64x128xf32>
    %21 = arith.addf %18, %20 : vector<64x128xf32>
    %c0_14 = arith.constant 0 : index
    %c0_15 = arith.constant 0 : index
    %c0_16 = arith.constant 0 : index
    %22 = vector.load %arg7[%c0_14, %c0_15, %c0_16] : memref<1x64x128xf32, #tpu.memory_space<vmem>>, vector<1x64x128xf32>
    %23 = vector.shape_cast %22 : vector<1x64x128xf32> to vector<64x128xf32>
    %24 = vector.shape_cast %21 : vector<64x128xf32> to vector<1x64x128xf32>
    tpu.vector_store %arg7[%c0_14, %c0_15, %c0_16], %24 {strides = array<i32>} : memref<1x64x128xf32, #tpu.memory_space<vmem>>, vector<1x64x128xf32>,
    return
  }
  func.func @transform_0(%arg0: i32, %arg1: i32) -> (i32, i32, i32, i32) {
    %c0_i32 = arith.constant 0 : i32
    %c0_i32_0 = arith.constant 0 : i32
    %c0_i32_1 = arith.constant 0 : i32
    return %arg0, %c0_i32, %arg1, %c0_i32_0 : i32, i32, i32, i32
  }
  func.func @transform_1(%arg0: i32, %arg1: i32) -> (i32, i32, i32) {
    %c0_i32 = arith.constant 0 : i32
    %c0_i32_0 = arith.constant 0 : i32
    %c0_i32_1 = arith.constant 0 : i32
    return %arg0, %c0_i32, %c0_i32_0 : i32, i32, i32
  }
  func.func @transform_2(%arg0: i32, %arg1: i32) -> (i32, i32) {
    %c0_i32 = arith.constant 0 : i32
    %c0_i32_0 = arith.constant 0 : i32
    %c0_i32_1 = arith.constant 0 : i32
    return %c0_i32, %c0_i32_0 : i32, i32
  }
  func.func @transform_3(%arg0: i32, %arg1: i32) -> (i32, i32) {
    %c0_i32 = arith.constant 0 : i32
    %c0_i32_0 = arith.constant 0 : i32
    %c0_i32_1 = arith.constant 0 : i32
    return %c0_i32, %c0_i32_0 : i32, i32
  }
  func.func @transform_4(%arg0: i32, %arg1: i32) -> (i32, i32) {
    %c0_i32 = arith.constant 0 : i32
    %c0_i32_0 = arith.constant 0 : i32
    %c0_i32_1 = arith.constant 0 : i32
    return %c0_i32, %c0_i32_0 : i32, i32
  }
  func.func @transform_5(%arg0: i32, %arg1: i32) -> (i32, i32, i32) {
    %c0_i32 = arith.constant 0 : i32
    %c0_i32_0 = arith.constant 0 : i32
    return %arg0, %arg1, %c0_i32 : i32, i32, i32
  }
}

</mosaic_0001>

<bundles_post_ra>
// kernel: gffm_forward.9
= control target key start
LH: loop header
LB: loop body
LE: loop exit
PB: predicated region body
PF: predicated region fallthrough
CT: control target
= control target key end

     0   :  { %vm247_vm0 = vcmask 261120   ;;  %s500_s1 = inlined_call_operand.vmem [shape: bf16[128,32], index: 1, kind: input, shape index: {}]   ;;  %s501_s0 = inlined_call_operand.vmem [shape: bf16[128,128], index: 0, kind: input, shape index: {}]   ;;  %s502_s2 = inlined_call_operand.vmem [shape: f32[1,32], index: 2, kind: input, shape index: {}]   ;;  %s503_s3 = inlined_call_operand.vmem [shape: f32[128,32], index: 3, kind: output, shape index: {}]  }
   0x1   :  { %v349_v0 = vld [vmem:[%s500_s1] sm:$0xff]   ;;  %v350_v1 = vld [vmem:[%s500_s1 + $0x8] sm:$0xff]   ;;  %v351_v2 = vld [vmem:[%s500_s1 + $0x10] sm:$0xff]  }
   0x2   :  { %301 = vmatprep.subr.bf16.mxu0 %v349_v0  ;;  %333 = vmatprep.subr.bf16.mxu1 %v349_v0  ;;  %v352_v3 = vld [vmem:[%s500_s1 + $0x18] sm:$0xff]   ;;  %v357_v4 = vld [vmem:[%s501_s0] sm:$0xff]   ;;  %v354_v7 = vld [vmem:[%s500_s1 + $0x28] sm:$0xff]  }
   0x3   :  { %302 = vmatpush3.bf16.msra.mxu0 %v349_v0  ;;  %341 = vmatpush3.bf16.msra.mxu1 %v349_v0  ;;  %v358_v5 = vld [vmem:[%s501_s0 + $0x20] sm:$0xff]   ;;  %v355_v8 = vld [vmem:[%s500_s1 + $0x30] sm:$0xff]   ;;  %v356_v9 = vld [vmem:[%s500_s1 + $0x38] sm:$0xff]  }
   0x4   :  { %303 = vmatprep.subr.bf16.mxu0 %v350_v1  ;;  %334 = vmatprep.subr.bf16.mxu1 %v350_v1  ;;  %v353_v6 = vld [vmem:[%s500_s1 + $0x20] sm:$0xff]   ;;  %v359_v10 = vld [vmem:[%s501_s0 + $0x8] sm:$0xff]   ;;  %v361_v12 = vld [vmem:[%s501_s0 + $0x10] sm:$0xff]  }
   0x5   :  { %317 = vmatprep.mubr.bf16.mxu0 %v357_v4  ;;  %325 = vmatprep.mubr.bf16.mxu1 %v358_v5  ;;  %v360_v11 = vld [vmem:[%s501_s0 + $0x28] sm:$0xff]   ;;  %v362_v13 = vld [vmem:[%s501_s0 + $0x30] sm:$0xff]   ;;  %v363_v14 = vld [vmem:[%s501_s0 + $0x18] sm:$0xff]  }
   0x6   :  { %v364_v15 = vld [vmem:[%s501_s0 + $0x38] sm:$0xff]   ;;  %v268_v16 = vld [vmem:[%s502_s2] ss:$0 sm:$0xff] }
   0x7   :  { %304 = vmatpush3.bf16.msra.mxu0 %v350_v1  ;;  %342 = vmatpush3.bf16.msra.mxu1 %v350_v1 }
   0x8   :  { %305 = vmatprep.subr.bf16.mxu0 %v351_v2  ;;  %335 = vmatprep.subr.bf16.mxu1 %v351_v2 }
   0xb   :  { %306 = vmatpush3.bf16.msra.mxu0 %v351_v2  ;;  %343 = vmatpush3.bf16.msra.mxu1 %v351_v2 }
   0xc   :  { %307 = vmatprep.subr.bf16.mxu0 %v352_v3  ;;  %336 = vmatprep.subr.bf16.mxu1 %v352_v3 }
   0xf   :  { %308 = vmatpush3.bf16.msra.mxu0 %v352_v3  ;;  %344 = vmatpush3.bf16.msra.mxu1 %v352_v3 }
  0x10   :  { %309 = vmatprep.subr.bf16.mxu0 %v353_v6  ;;  %337 = vmatprep.subr.bf16.mxu1 %v353_v6 }
  0x13   :  { %310 = vmatpush3.bf16.msra.mxu0 %v353_v6  ;;  %345 = vmatpush3.bf16.msra.mxu1 %v353_v6 }
  0x14   :  { %311 = vmatprep.subr.bf16.mxu0 %v354_v7  ;;  %338 = vmatprep.subr.bf16.mxu1 %v354_v7 }
  0x17   :  { %312 = vmatpush3.bf16.msra.mxu0 %v354_v7  ;;  %346 = vmatpush3.bf16.msra.mxu1 %v354_v7 }
  0x18   :  { %313 = vmatprep.subr.bf16.mxu0 %v355_v8  ;;  %339 = vmatprep.subr.bf16.mxu1 %v355_v8 }
  0x1b   :  { %314 = vmatpush3.bf16.msra.mxu0 %v355_v8  ;;  %347 = vmatpush3.bf16.msra.mxu1 %v355_v8 }
  0x1c   :  { %315 = vmatprep.subr.bf16.mxu0 %v356_v9  ;;  %340 = vmatprep.subr.bf16.mxu1 %v356_v9 }
  0x1f   :  { %316 = vmatpush3.bf16.msra.mxu0 %v356_v9  ;;  %348 = vmatpush3.bf16.msra.mxu1 %v356_v9 }
  0x22   :  { %318 = vmatmul.mubr.bf16.vlgmr.msra.gmra.mrb[0].mxu0 %v359_v10  ;;  %326 = vmatmul.mubr.bf16.vlgmr.msra.gmra.mrb[0].mxu1 %v360_v11 }
  0x23   :  { %321 = vmatprep.mubr.bf16.mxu0 %v361_v12  ;;  %329 = vmatprep.mubr.bf16.mxu1 %v362_v13 }
  0x2a   :  { %322 = vmatmul.mubr.bf16.gmra.mrb[4].mxu0 %v363_v14  ;;  %330 = vmatmul.mubr.bf16.gmra.mrb[4].mxu1 %v364_v15 }
  0xf5   :  { %v319_v17 = vpop.f32.mrb[0].mxu0  ;;  %v327_v18 = vpop.f32.mrb[0].mxu1 }
  0xf6   :  { %v193_v19 = vadd.f32 %v319_v17, %v268_v16  ;;  %v225_v20 = vadd.f32 %v327_v18, %v268_v16  ;;  %v184_v21 = vpop.f32.mrb[1].mxu0  ;;  %v216_v22 = vpop.f32.mrb[1].mxu1 }
  0xf7   :  { %v185_v23 = vadd.f32 %v268_v16, %v184_v21  ;;  %v217_v24 = vadd.f32 %v268_v16, %v216_v22  ;;  %v320_v25 = vpop.f32.mrb[2].mxu0  ;;  %v328_v26 = vpop.f32.mrb[2].mxu1 }
  0xf8   :  { %250 = vst.msk [vmem:[%s503_s3 + $0x10] sm:$0xff] %vm247_vm0, %v193_v19  ;;  %258 = vst.msk [vmem:[%s503_s3 + $0x50] sm:$0xff] %vm247_vm0, %v225_v20  ;;  %v196_v27 = vadd.f32 %v320_v25, %v268_v16  ;;  %v228_v28 = vadd.f32 %v328_v26, %v268_v16  ;;  %v187_v29 = vpop.f32.mrb[3].mxu0  ;;  %v219_v30 = vpop.f32.mrb[3].mxu1 }
  0xf9   :  { %248 = vst.msk [vmem:[%s503_s3] sm:$0xff] %vm247_vm0, %v185_v23  ;;  %256 = vst.msk [vmem:[%s503_s3 + $0x40] sm:$0xff] %vm247_vm0, %v217_v24  ;;  %v188_v31 = vadd.f32 %v268_v16, %v187_v29  ;;  %v220_v32 = vadd.f32 %v268_v16, %v219_v30 }
  0xfa   :  { %251 = vst.msk [vmem:[%s503_s3 + $0x18] sm:$0xff] %vm247_vm0, %v196_v27  ;;  %259 = vst.msk [vmem:[%s503_s3 + $0x58] sm:$0xff] %vm247_vm0, %v228_v28 }
  0xfb   :  { %249 = vst.msk [vmem:[%s503_s3 + $0x8] sm:$0xff] %vm247_vm0, %v188_v31  ;;  %257 = vst.msk [vmem:[%s503_s3 + $0x48] sm:$0xff] %vm247_vm0, %v220_v32 }
  0xfd   :  { %v323_v33 = vpop.f32.mrb[4].mxu0  ;;  %v331_v34 = vpop.f32.mrb[4].mxu1 }
  0xfe   :  { %v209_v35 = vadd.f32 %v323_v33, %v268_v16  ;;  %v241_v36 = vadd.f32 %v331_v34, %v268_v16  ;;  %v200_v37 = vpop.f32.mrb[5].mxu0  ;;  %v232_v38 = vpop.f32.mrb[5].mxu1 }
  0xff   :  { %v201_v39 = vadd.f32 %v268_v16, %v200_v37  ;;  %v233_v40 = vadd.f32 %v268_v16, %v232_v38  ;;  %v324_v41 = vpop.f32.mrb[6].mxu0  ;;  %v332_v42 = vpop.f32.mrb[6].mxu1 }
 0x100   :  { %254 = vst.msk [vmem:[%s503_s3 + $0x30] sm:$0xff] %vm247_vm0, %v209_v35  ;;  %262 = vst.msk [vmem:[%s503_s3 + $0x70] sm:$0xff] %vm247_vm0, %v241_v36  ;;  %v212_v43 = vadd.f32 %v324_v41, %v268_v16  ;;  %v244_v44 = vadd.f32 %v332_v42, %v268_v16  ;;  %v203_v45 = vpop.f32.mrb[7].mxu0  ;;  %v235_v46 = vpop.f32.mrb[7].mxu1 }
 0x101   :  { %252 = vst.msk [vmem:[%s503_s3 + $0x20] sm:$0xff] %vm247_vm0, %v201_v39  ;;  %260 = vst.msk [vmem:[%s503_s3 + $0x60] sm:$0xff] %vm247_vm0, %v233_v40  ;;  %v204_v47 = vadd.f32 %v268_v16, %v203_v45  ;;  %v236_v48 = vadd.f32 %v268_v16, %v235_v46 }
 0x102   :  { %255 = vst.msk [vmem:[%s503_s3 + $0x38] sm:$0xff] %vm247_vm0, %v212_v43  ;;  %263 = vst.msk [vmem:[%s503_s3 + $0x78] sm:$0xff] %vm247_vm0, %v244_v44 }
 0x103   :  { %253 = vst.msk [vmem:[%s503_s3 + $0x28] sm:$0xff] %vm247_vm0, %v204_v47  ;;  %261 = vst.msk [vmem:[%s503_s3 + $0x68] sm:$0xff] %vm247_vm0, %v236_v48 }

// kernel: gffm_forward.10
= control target key start
LH: loop header
LB: loop body
LE: loop exit
PB: predicated region body
PF: predicated region fallthrough
CT: control target
= control target key end

     0   :  { %vm278_vm0 = vcmask 523264   ;;  %vm664_vm1 = vcmask 261120   ;;  %s1439_s1 = inlined_call_operand.vmem [shape: bf16[64,32], index: 1, kind: input, shape index: {}]   ;;  %s1440_s0 = inlined_call_operand.vmem [shape: bf16[512,64], index: 0, kind: input, shape index: {}]   ;;  %s1441_s2 = inlined_call_operand.vmem [shape: f32[1,32], index: 2, kind: input, shape index: {}]   ;;  %s1442_s3 = inlined_call_operand.vmem [shape: f32[512,32], index: 3, kind: output, shape index: {}]  }
   0x1   :  { %v918_v0 = vld [vmem:[%s1439_s1] sm:$0xff]   ;;  %v919_v1 = vld [vmem:[%s1439_s1 + $0x8] sm:$0xff]   ;;  %v920_v2 = vld [vmem:[%s1439_s1 + $0x10] sm:$0xff]  }
   0x2   :  { %838 = vmatprep.subr.bf16.mxu0 %v918_v0  ;;  %910 = vmatprep.subr.bf16.mxu1 %v918_v0  ;;  %v922_v3 = vld [vmem:[%s1440_s0] sm:$0xff]   ;;  %v921_v5 = vld [vmem:[%s1439_s1 + $0x18] sm:$0xff]   ;;  %v924_v6 = vld [vmem:[%s1440_s0 + $0x8] sm:$0xff]  }
   0x3   :  { %839 = vmatpush3.bf16.msra.mxu0 %v918_v0  ;;  %914 = vmatpush3.bf16.msra.mxu1 %v918_v0  ;;  %v923_v4 = vld [vmem:[%s1440_s0 + $0x80] sm:$0xff]   ;;  %v925_v7 = vld [vmem:[%s1440_s0 + $0x88] sm:$0xff]   ;;  %v926_v8 = vld [vmem:[%s1440_s0 + $0x10] sm:$0xff]  }
   0x4   :  { %840 = vmatprep.subr.bf16.mxu0 %v919_v1  ;;  %911 = vmatprep.subr.bf16.mxu1 %v919_v1  ;;  %v927_v9 = vld [vmem:[%s1440_s0 + $0x90] sm:$0xff]   ;;  %v928_v10 = vld [vmem:[%s1440_s0 + $0x18] sm:$0xff]   ;;  %v930_v12 = vld [vmem:[%s1440_s0 + $0x20] sm:$0xff]  }
   0x5   :  { %846 = vmatprep.mubr.msk.bf16.mxu0 %vm278_vm0, %v922_v3  ;;  %878 = vmatprep.mubr.msk.bf16.mxu1 %vm278_vm0, %v923_v4  ;;  %v929_v11 = vld [vmem:[%s1440_s0 + $0x98] sm:$0xff]   ;;  %v931_v13 = vld [vmem:[%s1440_s0 + $0xa0] sm:$0xff]   ;;  %v932_v14 = vld [vmem:[%s1440_s0 + $0x28] sm:$0xff]  }
   0x6   :  { %v933_v15 = vld [vmem:[%s1440_s0 + $0xa8] sm:$0xff]   ;;  %v934_v16 = vld [vmem:[%s1440_s0 + $0x30] sm:$0xff]   ;;  %v936_v18 = vld [vmem:[%s1440_s0 + $0x38] sm:$0xff]  }
   0x7   :  { %841 = vmatpush3.bf16.msra.mxu0 %v919_v1  ;;  %915 = vmatpush3.bf16.msra.mxu1 %v919_v1  ;;  %v935_v17 = vld [vmem:[%s1440_s0 + $0xb0] sm:$0xff]   ;;  %v937_v19 = vld [vmem:[%s1440_s0 + $0xb8] sm:$0xff]   ;;  %v938_v20 = vld [vmem:[%s1440_s0 + $0x40] sm:$0xff]  }
   0x8   :  { %842 = vmatprep.subr.bf16.mxu0 %v920_v2  ;;  %912 = vmatprep.subr.bf16.mxu1 %v920_v2  ;;  %v939_v21 = vld [vmem:[%s1440_s0 + $0xc0] sm:$0xff]   ;;  %v940_v22 = vld [vmem:[%s1440_s0 + $0x48] sm:$0xff]   ;;  %v942_v24 = vld [vmem:[%s1440_s0 + $0x50] sm:$0xff]  }
   0x9   :  { %v941_v23 = vld [vmem:[%s1440_s0 + $0xc8] sm:$0xff]   ;;  %v943_v25 = vld [vmem:[%s1440_s0 + $0xd0] sm:$0xff]   ;;  %v944_v26 = vld [vmem:[%s1440_s0 + $0x58] sm:$0xff]  }
   0xa   :  { %v945_v27 = vld [vmem:[%s1440_s0 + $0xd8] sm:$0xff]   ;;  %v946_v28 = vld [vmem:[%s1440_s0 + $0x60] sm:$0xff]   ;;  %v948_v30 = vld [vmem:[%s1440_s0 + $0x68] sm:$0xff]  }
   0xb   :  { %843 = vmatpush3.bf16.msra.mxu0 %v920_v2  ;;  %916 = vmatpush3.bf16.msra.mxu1 %v920_v2  ;;  %v947_v29 = vld [vmem:[%s1440_s0 + $0xe0] sm:$0xff]   ;;  %v949_v31 = vld [vmem:[%s1440_s0 + $0xe8] sm:$0xff]   ;;  %v950_v32 = vld [vmem:[%s1440_s0 + $0x70] sm:$0xff]  }
   0xc   :  { %844 = vmatprep.subr.bf16.mxu0 %v921_v5  ;;  %913 = vmatprep.subr.bf16.mxu1 %v921_v5  ;;  %v951_v33 = vld [vmem:[%s1440_s0 + $0xf0] sm:$0xff]   ;;  %v952_v34 = vld [vmem:[%s1440_s0 + $0x78] sm:$0xff]   ;;  %v1117_v36 = vld [vmem:[%s1441_s2] ss:$0 sm:$0xff] }
   0xd   :  { %v953_v35 = vld [vmem:[%s1440_s0 + $0xf8] sm:$0xff]  }
   0xf   :  { %845 = vmatpush3.bf16.msra.mxu0 %v921_v5  ;;  %917 = vmatpush3.bf16.msra.mxu1 %v921_v5 }
  0x12   :  { %847 = vmatmul.mubr.msk.bf16.vlgmr.msra.gmra.mrb[0].mxu0 %vm278_vm0, %v924_v6  ;;  %879 = vmatmul.mubr.msk.bf16.vlgmr.msra.gmra.mrb[0].mxu1 %vm278_vm0, %v925_v7 }
  0x13   :  { %850 = vmatprep.mubr.msk.bf16.mxu0 %vm278_vm0, %v926_v8  ;;  %882 = vmatprep.mubr.msk.bf16.mxu1 %vm278_vm0, %v927_v9 }
  0x1a   :  { %851 = vmatmul.mubr.msk.bf16.gmra.mrb[4].mxu0 %vm278_vm0, %v928_v10  ;;  %883 = vmatmul.mubr.msk.bf16.gmra.mrb[4].mxu1 %vm278_vm0, %v929_v11 }
  0x1b   :  { %854 = vmatprep.mubr.msk.bf16.mxu0 %vm278_vm0, %v930_v12  ;;  %886 = vmatprep.mubr.msk.bf16.mxu1 %vm278_vm0, %v931_v13 }
  0x22   :  { %855 = vmatmul.mubr.msk.bf16.gmra.mrb[8].mxu0 %vm278_vm0, %v932_v14  ;;  %887 = vmatmul.mubr.msk.bf16.gmra.mrb[8].mxu1 %vm278_vm0, %v933_v15 }
  0x23   :  { %858 = vmatprep.mubr.msk.bf16.mxu0 %vm278_vm0, %v934_v16  ;;  %890 = vmatprep.mubr.msk.bf16.mxu1 %vm278_vm0, %v935_v17 }
  0x2a   :  { %859 = vmatmul.mubr.msk.bf16.gmra.mrb[12].mxu0 %vm278_vm0, %v936_v18  ;;  %891 = vmatmul.mubr.msk.bf16.gmra.mrb[12].mxu1 %vm278_vm0, %v937_v19 }
  0x2b   :  { %862 = vmatprep.mubr.msk.bf16.mxu0 %vm278_vm0, %v938_v20  ;;  %894 = vmatprep.mubr.msk.bf16.mxu1 %vm278_vm0, %v939_v21 }
  0x32   :  { %863 = vmatmul.mubr.msk.bf16.gmra.mrb[16].mxu0 %vm278_vm0, %v940_v22  ;;  %895 = vmatmul.mubr.msk.bf16.gmra.mrb[16].mxu1 %vm278_vm0, %v941_v23 }
  0x33   :  { %866 = vmatprep.mubr.msk.bf16.mxu0 %vm278_vm0, %v942_v24  ;;  %898 = vmatprep.mubr.msk.bf16.mxu1 %vm278_vm0, %v943_v25 }
  0x3a   :  { %867 = vmatmul.mubr.msk.bf16.gmra.mrb[20].mxu0 %vm278_vm0, %v944_v26  ;;  %899 = vmatmul.mubr.msk.bf16.gmra.mrb[20].mxu1 %vm278_vm0, %v945_v27 }
  0x3b   :  { %870 = vmatprep.mubr.msk.bf16.mxu0 %vm278_vm0, %v946_v28  ;;  %902 = vmatprep.mubr.msk.bf16.mxu1 %vm278_vm0, %v947_v29 }
  0x42   :  { %871 = vmatmul.mubr.msk.bf16.gmra.mrb[24].mxu0 %vm278_vm0, %v948_v30  ;;  %903 = vmatmul.mubr.msk.bf16.gmra.mrb[24].mxu1 %vm278_vm0, %v949_v31 }
  0x43   :  { %874 = vmatprep.mubr.msk.bf16.mxu0 %vm278_vm0, %v950_v32  ;;  %906 = vmatprep.mubr.msk.bf16.mxu1 %vm278_vm0, %v951_v33 }
  0x4a   :  { %875 = vmatmul.mubr.msk.bf16.gmra.mrb[28].mxu0 %vm278_vm0, %v952_v34  ;;  %907 = vmatmul.mubr.msk.bf16.gmra.mrb[28].mxu1 %vm278_vm0, %v953_v35 }
  0xe5   :  { %v848_v37 = vpop.f32.mrb[0].mxu0  ;;  %v880_v38 = vpop.f32.mrb[0].mxu1 }
  0xe6   :  { %v418_v39 = vadd.f32 %v848_v37, %v1117_v36  ;;  %v546_v40 = vadd.f32 %v880_v38, %v1117_v36  ;;  %v409_v41 = vpop.f32.mrb[1].mxu0  ;;  %v537_v42 = vpop.f32.mrb[1].mxu1 }
  0xe7   :  { %v410_v43 = vadd.f32 %v1117_v36, %v409_v41  ;;  %v538_v44 = vadd.f32 %v1117_v36, %v537_v42  ;;  %v849_v45 = vpop.f32.mrb[2].mxu0  ;;  %v881_v46 = vpop.f32.mrb[2].mxu1 }
  0xe8   :  { %667 = vst.msk [vmem:[%s1442_s3 + $0x10] sm:$0xff] %vm664_vm1, %v418_v39  ;;  %699 = vst.msk [vmem:[%s1442_s3 + $0x110] sm:$0xff] %vm664_vm1, %v546_v40  ;;  %v421_v47 = vadd.f32 %v849_v45, %v1117_v36  ;;  %v549_v48 = vadd.f32 %v881_v46, %v1117_v36  ;;  %v412_v49 = vpop.f32.mrb[3].mxu0  ;;  %v540_v50 = vpop.f32.mrb[3].mxu1 }
  0xe9   :  { %665 = vst.msk [vmem:[%s1442_s3] sm:$0xff] %vm664_vm1, %v410_v43  ;;  %697 = vst.msk [vmem:[%s1442_s3 + $0x100] sm:$0xff] %vm664_vm1, %v538_v44  ;;  %v413_v51 = vadd.f32 %v1117_v36, %v412_v49  ;;  %v541_v52 = vadd.f32 %v1117_v36, %v540_v50 }
  0xea   :  { %668 = vst.msk [vmem:[%s1442_s3 + $0x18] sm:$0xff] %vm664_vm1, %v421_v47  ;;  %700 = vst.msk [vmem:[%s1442_s3 + $0x118] sm:$0xff] %vm664_vm1, %v549_v48 }
  0xeb   :  { %666 = vst.msk [vmem:[%s1442_s3 + $0x8] sm:$0xff] %vm664_vm1, %v413_v51  ;;  %698 = vst.msk [vmem:[%s1442_s3 + $0x108] sm:$0xff] %vm664_vm1, %v541_v52 }
  0xed   :  { %v852_v53 = vpop.f32.mrb[4].mxu0  ;;  %v884_v54 = vpop.f32.mrb[4].mxu1 }
  0xee   :  { %v434_v55 = vadd.f32 %v852_v53, %v1117_v36  ;;  %v562_v56 = vadd.f32 %v884_v54, %v1117_v36  ;;  %v425_v57 = vpop.f32.mrb[5].mxu0  ;;  %v553_v58 = vpop.f32.mrb[5].mxu1 }
  0xef   :  { %v426_v59 = vadd.f32 %v1117_v36, %v425_v57  ;;  %v554_v60 = vadd.f32 %v1117_v36, %v553_v58  ;;  %v853_v61 = vpop.f32.mrb[6].mxu0  ;;  %v885_v62 = vpop.f32.mrb[6].mxu1 }
  0xf0   :  { %671 = vst.msk [vmem:[%s1442_s3 + $0x30] sm:$0xff] %vm664_vm1, %v434_v55  ;;  %703 = vst.msk [vmem:[%s1442_s3 + $0x130] sm:$0xff] %vm664_vm1, %v562_v56  ;;  %v437_v63 = vadd.f32 %v853_v61, %v1117_v36  ;;  %v565_v0 = vadd.f32 %v885_v62, %v1117_v36  ;;  %v428_v1 = vpop.f32.mrb[7].mxu0  ;;  %v556_v2 = vpop.f32.mrb[7].mxu1 }
  0xf1   :  { %669 = vst.msk [vmem:[%s1442_s3 + $0x20] sm:$0xff] %vm664_vm1, %v426_v59  ;;  %701 = vst.msk [vmem:[%s1442_s3 + $0x120] sm:$0xff] %vm664_vm1, %v554_v60  ;;  %v429_v3 = vadd.f32 %v1117_v36, %v428_v1  ;;  %v557_v4 = vadd.f32 %v1117_v36, %v556_v2 }
  0xf2   :  { %672 = vst.msk [vmem:[%s1442_s3 + $0x38] sm:$0xff] %vm664_vm1, %v437_v63  ;;  %704 = vst.msk [vmem:[%s1442_s3 + $0x138] sm:$0xff] %vm664_vm1, %v565_v0 }
  0xf3   :  { %670 = vst.msk [vmem:[%s1442_s3 + $0x28] sm:$0xff] %vm664_vm1, %v429_v3  ;;  %702 = vst.msk [vmem:[%s1442_s3 + $0x128] sm:$0xff] %vm664_vm1, %v557_v4 }
  0xf5   :  { %v856_v5 = vpop.f32.mrb[8].mxu0  ;;  %v888_v6 = vpop.f32.mrb[8].mxu1 }
  0xf6   :  { %v450_v7 = vadd.f32 %v856_v5, %v1117_v36  ;;  %v578_v8 = vadd.f32 %v888_v6, %v1117_v36  ;;  %v441_v9 = vpop.f32.mrb[9].mxu0  ;;  %v569_v10 = vpop.f32.mrb[9].mxu1 }
  0xf7   :  { %v442_v11 = vadd.f32 %v1117_v36, %v441_v9  ;;  %v570_v12 = vadd.f32 %v1117_v36, %v569_v10  ;;  %v857_v13 = vpop.f32.mrb[10].mxu0  ;;  %v889_v14 = vpop.f32.mrb[10].mxu1 }
  0xf8   :  { %675 = vst.msk [vmem:[%s1442_s3 + $0x50] sm:$0xff] %vm664_vm1, %v450_v7  ;;  %707 = vst.msk [vmem:[%s1442_s3 + $0x150] sm:$0xff] %vm664_vm1, %v578_v8  ;;  %v453_v15 = vadd.f32 %v857_v13, %v1117_v36  ;;  %v581_v16 = vadd.f32 %v889_v14, %v1117_v36  ;;  %v444_v17 = vpop.f32.mrb[11].mxu0  ;;  %v572_v18 = vpop.f32.mrb[11].mxu1 }
  0xf9   :  { %673 = vst.msk [vmem:[%s1442_s3 + $0x40] sm:$0xff] %vm664_vm1, %v442_v11  ;;  %705 = vst.msk [vmem:[%s1442_s3 + $0x140] sm:$0xff] %vm664_vm1, %v570_v12  ;;  %v445_v19 = vadd.f32 %v1117_v36, %v444_v17  ;;  %v573_v20 = vadd.f32 %v1117_v36, %v572_v18 }
  0xfa   :  { %676 = vst.msk [vmem:[%s1442_s3 + $0x58] sm:$0xff] %vm664_vm1, %v453_v15  ;;  %708 = vst.msk [vmem:[%s1442_s3 + $0x158] sm:$0xff] %vm664_vm1, %v581_v16 }
  0xfb   :  { %674 = vst.msk [vmem:[%s1442_s3 + $0x48] sm:$0xff] %vm664_vm1, %v445_v19  ;;  %706 = vst.msk [vmem:[%s1442_s3 + $0x148] sm:$0xff] %vm664_vm1, %v573_v20 }
  0xfd   :  { %v860_v21 = vpop.f32.mrb[12].mxu0  ;;  %v892_v22 = vpop.f32.mrb[12].mxu1 }
  0xfe   :  { %v466_v23 = vadd.f32 %v860_v21, %v1117_v36  ;;  %v594_v24 = vadd.f32 %v892_v22, %v1117_v36  ;;  %v457_v25 = vpop.f32.mrb[13].mxu0  ;;  %v585_v26 = vpop.f32.mrb[13].mxu1 }
  0xff   :  { %v458_v27 = vadd.f32 %v1117_v36, %v457_v25  ;;  %v586_v28 = vadd.f32 %v1117_v36, %v585_v26  ;;  %v861_v29 = vpop.f32.mrb[14].mxu0  ;;  %v893_v30 = vpop.f32.mrb[14].mxu1 }
 0x100   :  { %679 = vst.msk [vmem:[%s1442_s3 + $0x70] sm:$0xff] %vm664_vm1, %v466_v23  ;;  %711 = vst.msk [vmem:[%s1442_s3 + $0x170] sm:$0xff] %vm664_vm1, %v594_v24  ;;  %v469_v31 = vadd.f32 %v861_v29, %v1117_v36  ;;  %v597_v32 = vadd.f32 %v893_v30, %v1117_v36  ;;  %v460_v33 = vpop.f32.mrb[15].mxu0  ;;  %v588_v34 = vpop.f32.mrb[15].mxu1 }
 0x101   :  { %677 = vst.msk [vmem:[%s1442_s3 + $0x60] sm:$0xff] %vm664_vm1, %v458_v27  ;;  %709 = vst.msk [vmem:[%s1442_s3 + $0x160] sm:$0xff] %vm664_vm1, %v586_v28  ;;  %v461_v35 = vadd.f32 %v1117_v36, %v460_v33  ;;  %v589_v37 = vadd.f32 %v1117_v36, %v588_v34 }
 0x102   :  { %680 = vst.msk [vmem:[%s1442_s3 + $0x78] sm:$0xff] %vm664_vm1, %v469_v31  ;;  %712 = vst.msk [vmem:[%s1442_s3 + $0x178] sm:$0xff] %vm664_vm1, %v597_v32 }
 0x103   :  { %678 = vst.msk [vmem:[%s1442_s3 + $0x68] sm:$0xff] %vm664_vm1, %v461_v35  ;;  %710 = vst.msk [vmem:[%s1442_s3 + $0x168] sm:$0xff] %vm664_vm1, %v589_v37 }
 0x105   :  { %v864_v38 = vpop.f32.mrb[16].mxu0  ;;  %v896_v39 = vpop.f32.mrb[16].mxu1 }
 0x106   :  { %v482_v40 = vadd.f32 %v864_v38, %v1117_v36  ;;  %v610_v41 = vadd.f32 %v896_v39, %v1117_v36  ;;  %v473_v42 = vpop.f32.mrb[17].mxu0  ;;  %v601_v43 = vpop.f32.mrb[17].mxu1 }
 0x107   :  { %v474_v44 = vadd.f32 %v1117_v36, %v473_v42  ;;  %v602_v45 = vadd.f32 %v1117_v36, %v601_v43  ;;  %v865_v46 = vpop.f32.mrb[18].mxu0  ;;  %v897_v47 = vpop.f32.mrb[18].mxu1 }
 0x108   :  { %683 = vst.msk [vmem:[%s1442_s3 + $0x90] sm:$0xff] %vm664_vm1, %v482_v40  ;;  %715 = vst.msk [vmem:[%s1442_s3 + $0x190] sm:$0xff] %vm664_vm1, %v610_v41  ;;  %v485_v48 = vadd.f32 %v865_v46, %v1117_v36  ;;  %v613_v49 = vadd.f32 %v897_v47, %v1117_v36  ;;  %v476_v50 = vpop.f32.mrb[19].mxu0  ;;  %v604_v51 = vpop.f32.mrb[19].mxu1 }
 0x109   :  { %681 = vst.msk [vmem:[%s1442_s3 + $0x80] sm:$0xff] %vm664_vm1, %v474_v44  ;;  %713 = vst.msk [vmem:[%s1442_s3 + $0x180] sm:$0xff] %vm664_vm1, %v602_v45  ;;  %v477_v52 = vadd.f32 %v1117_v36, %v476_v50  ;;  %v605_v53 = vadd.f32 %v1117_v36, %v604_v51 }
 0x10a   :  { %684 = vst.msk [vmem:[%s1442_s3 + $0x98] sm:$0xff] %vm664_vm1, %v485_v48  ;;  %716 = vst.msk [vmem:[%s1442_s3 + $0x198] sm:$0xff] %vm664_vm1, %v613_v49 }
 0x10b   :  { %682 = vst.msk [vmem:[%s1442_s3 + $0x88] sm:$0xff] %vm664_vm1, %v477_v52  ;;  %714 = vst.msk [vmem:[%s1442_s3 + $0x188] sm:$0xff] %vm664_vm1, %v605_v53 }
 0x10d   :  { %v868_v54 = vpop.f32.mrb[20].mxu0  ;;  %v900_v55 = vpop.f32.mrb[20].mxu1 }
 0x10e   :  { %v498_v56 = vadd.f32 %v868_v54, %v1117_v36  ;;  %v626_v57 = vadd.f32 %v900_v55, %v1117_v36  ;;  %v489_v58 = vpop.f32.mrb[21].mxu0  ;;  %v617_v59 = vpop.f32.mrb[21].mxu1 }
 0x10f   :  { %v490_v60 = vadd.f32 %v1117_v36, %v489_v58  ;;  %v618_v61 = vadd.f32 %v1117_v36, %v617_v59  ;;  %v869_v62 = vpop.f32.mrb[22].mxu0  ;;  %v901_v63 = vpop.f32.mrb[22].mxu1 }
 0x110   :  { %687 = vst.msk [vmem:[%s1442_s3 + $0xb0] sm:$0xff] %vm664_vm1, %v498_v56  ;;  %719 = vst.msk [vmem:[%s1442_s3 + $0x1b0] sm:$0xff] %vm664_vm1, %v626_v57  ;;  %v501_v0 = vadd.f32 %v869_v62, %v1117_v36  ;;  %v629_v1 = vadd.f32 %v901_v63, %v1117_v36  ;;  %v492_v2 = vpop.f32.mrb[23].mxu0  ;;  %v620_v3 = vpop.f32.mrb[23].mxu1 }
 0x111   :  { %685 = vst.msk [vmem:[%s1442_s3 + $0xa0] sm:$0xff] %vm664_vm1, %v490_v60  ;;  %717 = vst.msk [vmem:[%s1442_s3 + $0x1a0] sm:$0xff] %vm664_vm1, %v618_v61  ;;  %v493_v4 = vadd.f32 %v1117_v36, %v492_v2  ;;  %v621_v5 = vadd.f32 %v1117_v36, %v620_v3 }
 0x112   :  { %688 = vst.msk [vmem:[%s1442_s3 + $0xb8] sm:$0xff] %vm664_vm1, %v501_v0  ;;  %720 = vst.msk [vmem:[%s1442_s3 + $0x1b8] sm:$0xff] %vm664_vm1, %v629_v1 }
 0x113   :  { %686 = vst.msk [vmem:[%s1442_s3 + $0xa8] sm:$0xff] %vm664_vm1, %v493_v4  ;;  %718 = vst.msk [vmem:[%s1442_s3 + $0x1a8] sm:$0xff] %vm664_vm1, %v621_v5 }
 0x115   :  { %v872_v6 = vpop.f32.mrb[24].mxu0  ;;  %v904_v7 = vpop.f32.mrb[24].mxu1 }
 0x116   :  { %v514_v8 = vadd.f32 %v872_v6, %v1117_v36  ;;  %v642_v9 = vadd.f32 %v904_v7, %v1117_v36  ;;  %v505_v10 = vpop.f32.mrb[25].mxu0  ;;  %v633_v11 = vpop.f32.mrb[25].mxu1 }
 0x117   :  { %v506_v12 = vadd.f32 %v1117_v36, %v505_v10  ;;  %v634_v13 = vadd.f32 %v1117_v36, %v633_v11  ;;  %v873_v14 = vpop.f32.mrb[26].mxu0  ;;  %v905_v15 = vpop.f32.mrb[26].mxu1 }
 0x118   :  { %691 = vst.msk [vmem:[%s1442_s3 + $0xd0] sm:$0xff] %vm664_vm1, %v514_v8  ;;  %723 = vst.msk [vmem:[%s1442_s3 + $0x1d0] sm:$0xff] %vm664_vm1, %v642_v9  ;;  %v517_v16 = vadd.f32 %v873_v14, %v1117_v36  ;;  %v645_v17 = vadd.f32 %v905_v15, %v1117_v36  ;;  %v508_v18 = vpop.f32.mrb[27].mxu0  ;;  %v636_v19 = vpop.f32.mrb[27].mxu1 }
 0x119   :  { %689 = vst.msk [vmem:[%s1442_s3 + $0xc0] sm:$0xff] %vm664_vm1, %v506_v12  ;;  %721 = vst.msk [vmem:[%s1442_s3 + $0x1c0] sm:$0xff] %vm664_vm1, %v634_v13  ;;  %v509_v20 = vadd.f32 %v1117_v36, %v508_v18  ;;  %v637_v21 = vadd.f32 %v1117_v36, %v636_v19 }
 0x11a   :  { %692 = vst.msk [vmem:[%s1442_s3 + $0xd8] sm:$0xff] %vm664_vm1, %v517_v16  ;;  %724 = vst.msk [vmem:[%s1442_s3 + $0x1d8] sm:$0xff] %vm664_vm1, %v645_v17 }
 0x11b   :  { %690 = vst.msk [vmem:[%s1442_s3 + $0xc8] sm:$0xff] %vm664_vm1, %v509_v20  ;;  %722 = vst.msk [vmem:[%s1442_s3 + $0x1c8] sm:$0xff] %vm664_vm1, %v637_v21 }
 0x11d   :  { %v876_v22 = vpop.f32.mrb[28].mxu0  ;;  %v908_v23 = vpop.f32.mrb[28].mxu1 }
 0x11e   :  { %v530_v24 = vadd.f32 %v876_v22, %v1117_v36  ;;  %v658_v25 = vadd.f32 %v908_v23, %v1117_v36  ;;  %v521_v26 = vpop.f32.mrb[29].mxu0  ;;  %v649_v27 = vpop.f32.mrb[29].mxu1 }
 0x11f   :  { %v522_v28 = vadd.f32 %v1117_v36, %v521_v26  ;;  %v650_v29 = vadd.f32 %v1117_v36, %v649_v27  ;;  %v877_v30 = vpop.f32.mrb[30].mxu0  ;;  %v909_v31 = vpop.f32.mrb[30].mxu1 }
 0x120   :  { %695 = vst.msk [vmem:[%s1442_s3 + $0xf0] sm:$0xff] %vm664_vm1, %v530_v24  ;;  %727 = vst.msk [vmem:[%s1442_s3 + $0x1f0] sm:$0xff] %vm664_vm1, %v658_v25  ;;  %v533_v32 = vadd.f32 %v877_v30, %v1117_v36  ;;  %v661_v33 = vadd.f32 %v909_v31, %v1117_v36  ;;  %v524_v34 = vpop.f32.mrb[31].mxu0  ;;  %v652_v35 = vpop.f32.mrb[31].mxu1 }
 0x121   :  { %693 = vst.msk [vmem:[%s1442_s3 + $0xe0] sm:$0xff] %vm664_vm1, %v522_v28  ;;  %725 = vst.msk [vmem:[%s1442_s3 + $0x1e0] sm:$0xff] %vm664_vm1, %v650_v29  ;;  %v525_v37 = vadd.f32 %v1117_v36, %v524_v34  ;;  %v653_v38 = vadd.f32 %v1117_v36, %v652_v35 }
 0x122   :  { %696 = vst.msk [vmem:[%s1442_s3 + $0xf8] sm:$0xff] %vm664_vm1, %v533_v32  ;;  %728 = vst.msk [vmem:[%s1442_s3 + $0x1f8] sm:$0xff] %vm664_vm1, %v661_v33 }
 0x123   :  { %694 = vst.msk [vmem:[%s1442_s3 + $0xe8] sm:$0xff] %vm664_vm1, %v525_v37  ;;  %726 = vst.msk [vmem:[%s1442_s3 + $0x1e8] sm:$0xff] %vm664_vm1, %v653_v38 }

// kernel: gffm_forward.7
= control target key start
LH: loop header
LB: loop body
LE: loop exit
PB: predicated region body
PF: predicated region fallthrough
CT: control target
= control target key end

     0   :  { %vm374_vm0 = vcmask 261120   ;;  %s625_s1 = inlined_call_operand.vmem [shape: bf16[512,32], index: 1, kind: input, shape index: {}]   ;;  %s626_s0 = inlined_call_operand.vmem [shape: bf16[8,512], index: 0, kind: input, shape index: {}]   ;;  %s627_s2 = inlined_call_operand.vmem [shape: f32[1,32], index: 2, kind: input, shape index: {}]   ;;  %s628_s3 = inlined_call_operand.vmem [shape: f32[8,32], index: 3, kind: output, shape index: {}]  }
   0x1   :  { %v461_v0 = vld [vmem:[%s625_s1 + $0x40] sm:$0xff]   ;;  %v465_v4 = vld [vmem:[%s625_s1 + $0x48] sm:$0xff]   ;;  %v469_v8 = vld [vmem:[%s625_s1 + $0x50] sm:$0xff]  }
   0x2   :  { %v462_v1 = vld [vmem:[%s625_s1 + $0xc0] sm:$0xff]   ;;  %417 = vmatprep.subr.bf16.mxu0 %v461_v0  ;;  %v466_v5 = vld [vmem:[%s625_s1 + $0xc8] sm:$0xff]   ;;  %v470_v9 = vld [vmem:[%s625_s1 + $0xd0] sm:$0xff]  }
   0x3   :  { %v463_v2 = vld [vmem:[%s625_s1] sm:$0xff]   ;;  %439 = vmatprep.subr.bf16.mxu1 %v462_v1  ;;  %v467_v6 = vld [vmem:[%s625_s1 + $0x8] sm:$0xff]   ;;  %v471_v10 = vld [vmem:[%s625_s1 + $0x10] sm:$0xff]  }
   0x4   :  { %v464_v3 = vld [vmem:[%s625_s1 + $0x80] sm:$0xff]   ;;  %418 = vmatpush3.bf16.msra.mxu0 %v463_v2  ;;  %v468_v7 = vld [vmem:[%s625_s1 + $0x88] sm:$0xff]   ;;  %v472_v11 = vld [vmem:[%s625_s1 + $0x90] sm:$0xff]  }
   0x5   :  { %440 = vmatpush3.bf16.msra.mxu1 %v464_v3  ;;  %419 = vmatprep.subr.bf16.mxu0 %v465_v4  ;;  %v473_v12 = vld [vmem:[%s625_s1 + $0x58] sm:$0xff]   ;;  %v477_v16 = vld [vmem:[%s625_s1 + $0x60] sm:$0xff]   ;;  %v481_v20 = vld [vmem:[%s625_s1 + $0x68] sm:$0xff]  }
   0x6   :  { %441 = vmatprep.subr.bf16.mxu1 %v466_v5  ;;  %v474_v13 = vld [vmem:[%s625_s1 + $0xd8] sm:$0xff]   ;;  %v478_v17 = vld [vmem:[%s625_s1 + $0xe0] sm:$0xff]   ;;  %v482_v21 = vld [vmem:[%s625_s1 + $0xe8] sm:$0xff]  }
   0x7   :  { %v475_v14 = vld [vmem:[%s625_s1 + $0x18] sm:$0xff]   ;;  %v479_v18 = vld [vmem:[%s625_s1 + $0x20] sm:$0xff]   ;;  %v483_v22 = vld [vmem:[%s625_s1 + $0x28] sm:$0xff]  }
   0x8   :  { %420 = vmatpush3.bf16.msra.mxu0 %v467_v6  ;;  %v476_v15 = vld [vmem:[%s625_s1 + $0x98] sm:$0xff]   ;;  %v480_v19 = vld [vmem:[%s625_s1 + $0xa0] sm:$0xff]   ;;  %v484_v23 = vld [vmem:[%s625_s1 + $0xa8] sm:$0xff]  }
   0x9   :  { %442 = vmatpush3.bf16.msra.mxu1 %v468_v7  ;;  %421 = vmatprep.subr.bf16.mxu0 %v469_v8  ;;  %v485_v24 = vld [vmem:[%s625_s1 + $0x70] sm:$0xff]   ;;  %v489_v28 = vld [vmem:[%s625_s1 + $0x78] sm:$0xff]   ;;  %v15_v32 = vld [vmem:[%s626_s0] sm:$0xff] }
   0xa   :  { %443 = vmatprep.subr.bf16.mxu1 %v470_v9  ;;  %v486_v25 = vld [vmem:[%s625_s1 + $0xf0] sm:$0xff]   ;;  %v490_v29 = vld [vmem:[%s625_s1 + $0xf8] sm:$0xff]   ;;  %v16_v33 = vld [vmem:[%s626_s0 + $0x8] sm:$0xff]  ;;  %v381_v34 = vcombine.low %v15_v32, %v15_v32  ;;  %v382_v35 = vcombine.high %v15_v32, %v15_v32 }
   0xb   :  { %v487_v26 = vld [vmem:[%s625_s1 + $0x30] sm:$0xff]   ;;  %v491_v30 = vld [vmem:[%s625_s1 + $0x38] sm:$0xff]   ;;  %v383_v36 = vcombine.low %v16_v33, %v16_v33  ;;  %v384_v37 = vcombine.high %v16_v33, %v16_v33  ;;  %v380_v40 = vld [vmem:[%s627_s2] ss:$0 sm:$0xff] }
   0xc   :  { %422 = vmatpush3.bf16.msra.mxu0 %v471_v10  ;;  %v488_v27 = vld [vmem:[%s625_s1 + $0xb0] sm:$0xff]   ;;  %v492_v31 = vld [vmem:[%s625_s1 + $0xb8] sm:$0xff]   ;;  %326 = vmatprep.mubr.bf16.mxu0 %v382_v35 }
   0xd   :  { %444 = vmatpush3.bf16.msra.mxu1 %v472_v11  ;;  %423 = vmatprep.subr.bf16.mxu0 %v473_v12 }
   0xe   :  { %445 = vmatprep.subr.bf16.mxu1 %v474_v13  ;;  %366 = vmatprep.mubr.bf16.mxu1 %v384_v37 }
  0x10   :  { %424 = vmatpush3.bf16.msra.mxu0 %v475_v14 }
  0x11   :  { %446 = vmatpush3.bf16.msra.mxu1 %v476_v15  ;;  %425 = vmatprep.subr.bf16.mxu0 %v477_v16 }
  0x12   :  { %447 = vmatprep.subr.bf16.mxu1 %v478_v17 }
  0x14   :  { %426 = vmatpush3.bf16.msra.mxu0 %v479_v18 }
  0x15   :  { %448 = vmatpush3.bf16.msra.mxu1 %v480_v19  ;;  %427 = vmatprep.subr.bf16.mxu0 %v481_v20 }
  0x16   :  { %449 = vmatprep.subr.bf16.mxu1 %v482_v21 }
  0x18   :  { %428 = vmatpush3.bf16.msra.mxu0 %v483_v22 }
  0x19   :  { %450 = vmatpush3.bf16.msra.mxu1 %v484_v23  ;;  %429 = vmatprep.subr.bf16.mxu0 %v485_v24 }
  0x1a   :  { %451 = vmatprep.subr.bf16.mxu1 %v486_v25 }
  0x1c   :  { %430 = vmatpush3.bf16.msra.mxu0 %v487_v26 }
  0x1d   :  { %452 = vmatpush3.bf16.msra.mxu1 %v488_v27  ;;  %431 = vmatprep.subr.bf16.mxu0 %v489_v28 }
  0x1e   :  { %453 = vmatprep.subr.bf16.mxu1 %v490_v29 }
  0x20   :  { %432 = vmatpush3.bf16.msra.mxu0 %v491_v30 }
  0x21   :  { %454 = vmatpush3.bf16.msra.mxu1 %v492_v31 }
  0x23   :  { %327 = vmatmul.mubr.bf16.vlgmr.msra.gmra.mrb[0].mxu0 %v381_v34 }
  0x24   :  { %367 = vmatmul.mubr.bf16.vlgmr.msra.gmra.mrb[0].mxu1 %v383_v36 }
  0xf6   :  { %v433_v38 = vpop.f32.mrb[0].mxu0 }
  0xf7   :  { %v455_v39 = vpop.f32.mrb[0].mxu1  ;;  %v434_v41 = vpop.f32.mrb[1].mxu0 }
  0xf8   :  { %v456_v42 = vpop.f32.mrb[1].mxu1  ;;  %v435_v43 = vadd.f32 %v434_v41, %v433_v38  ;;  %v436_v45 = vpop.f32.mrb[2].mxu0 }
  0xf9   :  { %v457_v44 = vadd.f32 %v456_v42, %v455_v39  ;;  %v458_v46 = vpop.f32.mrb[2].mxu1  ;;  %v437_v47 = vpop.f32.mrb[3].mxu0 }
  0xfa   :  { %v459_v48 = vpop.f32.mrb[3].mxu1  ;;  %v329_v49 = vadd.f32 %v435_v43, %v380_v40 }
  0xfc   :  { %v369_v50 = vadd.f32 %v457_v44, %v329_v49 }
  0xfe   :  { %375 = vst.msk [vmem:[%s628_s3] sm:$0xff] %vm374_vm0, %v369_v50 }

// kernel: gffm_forward.8
= control target key start
LH: loop header
LB: loop body
LE: loop exit
PB: predicated region body
PF: predicated region fallthrough
CT: control target
= control target key end

     0   :  { %vm223_vm0 = vcmask 261120   ;;  %s414_s1 = inlined_call_operand.vmem [shape: bf16[256,32], index: 1, kind: input, shape index: {}]   ;;  %s415_s0 = inlined_call_operand.vmem [shape: bf16[32,256], index: 0, kind: input, shape index: {}]   ;;  %s416_s2 = inlined_call_operand.vmem [shape: f32[1,32], index: 2, kind: input, shape index: {}]   ;;  %s417_s3 = inlined_call_operand.vmem [shape: f32[32,32], index: 3, kind: output, shape index: {}]  }
   0x1   :  { %v297_v0 = vld [vmem:[%s414_s1 + $0x40] sm:$0xff]   ;;  %v299_v2 = vld [vmem:[%s414_s1 + $0x48] sm:$0xff]   ;;  %v301_v4 = vld [vmem:[%s414_s1 + $0x50] sm:$0xff]  }
   0x2   :  { %v298_v1 = vld [vmem:[%s414_s1] sm:$0xff]   ;;  %253 = vmatprep.subr.bf16.mxu0 %v297_v0  ;;  %281 = vmatprep.subr.bf16.mxu1 %v297_v0  ;;  %v300_v3 = vld [vmem:[%s414_s1 + $0x8] sm:$0xff]   ;;  %v302_v5 = vld [vmem:[%s414_s1 + $0x10] sm:$0xff]  }
   0x3   :  { %254 = vmatpush3.bf16.msra.mxu0 %v298_v1  ;;  %289 = vmatpush3.bf16.msra.mxu1 %v298_v1  ;;  %v303_v6 = vld [vmem:[%s414_s1 + $0x58] sm:$0xff]   ;;  %v305_v8 = vld [vmem:[%s414_s1 + $0x60] sm:$0xff]   ;;  %v307_v10 = vld [vmem:[%s414_s1 + $0x68] sm:$0xff]  }
   0x4   :  { %255 = vmatprep.subr.bf16.mxu0 %v299_v2  ;;  %282 = vmatprep.subr.bf16.mxu1 %v299_v2  ;;  %v304_v7 = vld [vmem:[%s414_s1 + $0x18] sm:$0xff]   ;;  %v306_v9 = vld [vmem:[%s414_s1 + $0x20] sm:$0xff]   ;;  %v308_v13 = vld [vmem:[%s414_s1 + $0x28] sm:$0xff]  }
   0x5   :  { %v315_v11 = vld [vmem:[%s415_s0 + $0x4] ss:$8 sps:$4 sm:$0xff]   ;;  %v318_v12 = vld [vmem:[%s415_s0 + $0x14] ss:$8 sps:$4 sm:$0xff]   ;;  %v313_v18 = vld [vmem:[%s415_s0] ss:$8 sps:$4 sm:$0xff]  }
   0x6   :  { %v309_v14 = vld [vmem:[%s414_s1 + $0x70] sm:$0xff]   ;;  %206 = vmatprep.mubr.bf16.mxu0 %v315_v11  ;;  %214 = vmatprep.mubr.bf16.mxu1 %v318_v12  ;;  %v311_v16 = vld [vmem:[%s414_s1 + $0x78] sm:$0xff]   ;;  %v232_v22 = vld [vmem:[%s416_s2] ss:$0 sm:$0xff] }
   0x7   :  { %256 = vmatpush3.bf16.msra.mxu0 %v300_v3  ;;  %290 = vmatpush3.bf16.msra.mxu1 %v300_v3  ;;  %v310_v15 = vld [vmem:[%s414_s1 + $0x30] sm:$0xff]   ;;  %v312_v17 = vld [vmem:[%s414_s1 + $0x38] sm:$0xff]  }
   0x8   :  { %257 = vmatprep.subr.bf16.mxu0 %v301_v4  ;;  %283 = vmatprep.subr.bf16.mxu1 %v301_v4  ;;  %v316_v19 = vld [vmem:[%s415_s0 + $0x10] ss:$8 sps:$4 sm:$0xff]  }
   0xb   :  { %258 = vmatpush3.bf16.msra.mxu0 %v302_v5  ;;  %291 = vmatpush3.bf16.msra.mxu1 %v302_v5 }
   0xc   :  { %259 = vmatprep.subr.bf16.mxu0 %v303_v6  ;;  %284 = vmatprep.subr.bf16.mxu1 %v303_v6 }
   0xf   :  { %260 = vmatpush3.bf16.msra.mxu0 %v304_v7  ;;  %292 = vmatpush3.bf16.msra.mxu1 %v304_v7 }
  0x10   :  { %261 = vmatprep.subr.bf16.mxu0 %v305_v8  ;;  %285 = vmatprep.subr.bf16.mxu1 %v305_v8 }
  0x13   :  { %262 = vmatpush3.bf16.msra.mxu0 %v306_v9  ;;  %293 = vmatpush3.bf16.msra.mxu1 %v306_v9 }
  0x14   :  { %263 = vmatprep.subr.bf16.mxu0 %v307_v10  ;;  %286 = vmatprep.subr.bf16.mxu1 %v307_v10 }
  0x17   :  { %264 = vmatpush3.bf16.msra.mxu0 %v308_v13  ;;  %294 = vmatpush3.bf16.msra.mxu1 %v308_v13 }
  0x18   :  { %265 = vmatprep.subr.bf16.mxu0 %v309_v14  ;;  %287 = vmatprep.subr.bf16.mxu1 %v309_v14 }
  0x1b   :  { %266 = vmatpush3.bf16.msra.mxu0 %v310_v15  ;;  %295 = vmatpush3.bf16.msra.mxu1 %v310_v15 }
  0x1c   :  { %267 = vmatprep.subr.bf16.mxu0 %v311_v16  ;;  %288 = vmatprep.subr.bf16.mxu1 %v311_v16 }
  0x1f   :  { %268 = vmatpush3.bf16.msra.mxu0 %v312_v17  ;;  %296 = vmatpush3.bf16.msra.mxu1 %v312_v17 }
  0x22   :  { %207 = vmatmul.mubr.bf16.vlgmr.msra.gmra.mrb[0].mxu0 %v313_v18  ;;  %215 = vmatmul.mubr.bf16.vlgmr.msra.gmra.mrb[0].mxu1 %v316_v19 }
  0xf5   :  { %v269_v20 = vpop.f32.mrb[0].mxu0  ;;  %v275_v21 = vpop.f32.mrb[0].mxu1 }
  0xf6   :  { %v270_v23 = vpop.f32.mrb[1].mxu0  ;;  %v276_v24 = vpop.f32.mrb[1].mxu1 }
  0xf7   :  { %v271_v25 = vadd.f32 %v270_v23, %v269_v20  ;;  %v277_v26 = vadd.f32 %v276_v24, %v275_v21  ;;  %v272_v27 = vpop.f32.mrb[2].mxu0  ;;  %v278_v28 = vpop.f32.mrb[2].mxu1 }
  0xf8   :  { %v273_v29 = vpop.f32.mrb[3].mxu0  ;;  %v279_v30 = vpop.f32.mrb[3].mxu1 }
  0xf9   :  { %v209_v31 = vadd.f32 %v271_v25, %v232_v22  ;;  %v217_v32 = vadd.f32 %v277_v26, %v232_v22  ;;  %v274_v33 = vadd.f32 %v273_v29, %v272_v27  ;;  %v280_v34 = vadd.f32 %v279_v30, %v278_v28 }
  0xfb   :  { %224 = vst.msk [vmem:[%s417_s3] sm:$0xff] %vm223_vm0, %v209_v31  ;;  %226 = vst.msk [vmem:[%s417_s3 + $0x10] sm:$0xff] %vm223_vm0, %v217_v32  ;;  %v212_v35 = vadd.f32 %v274_v33, %v232_v22  ;;  %v220_v36 = vadd.f32 %v280_v34, %v232_v22 }
  0xfd   :  { %225 = vst.msk [vmem:[%s417_s3 + $0x8] sm:$0xff] %vm223_vm0, %v212_v35  ;;  %227 = vst.msk [vmem:[%s417_s3 + $0x18] sm:$0xff] %vm223_vm0, %v220_v36 }

// kernel: gffm_forward.12
= control target key start
LH: loop header
LB: loop body
LE: loop exit
PB: predicated region body
PF: predicated region fallthrough
CT: control target
= control target key end

     0   :  { %s1033_s15 = smov 0   ;;  %s1183_s0 = inlined_call_operand.vmem [shape: bf16[2,1,576], index: 0, kind: input, shape index: {}]   ;;  %s1184_s1 = inlined_call_operand.vmem [shape: bf16[576,64], index: 1, kind: input, shape index: {}]   ;;  %s1185_s2 = inlined_call_operand.vmem [shape: bf16[64,128], index: 2, kind: input, shape index: {}]   ;;  %s1186_s3 = inlined_call_operand.vmem [shape: f32[1,128], index: 3, kind: input, shape index: {}]   ;;  %s1187_s4 = inlined_call_operand.vmem [shape: f32[2,1,128], index: 4, kind: output, shape index: {}]  }
   0x1 LB: > { %s807_s16 = sadd.s32 4294967295, %s1002_s15   ;;  %p811_p0 = scmp.ge.s32.totalorder %s1002_s15, 1  ;;  %s1002_s15 = sphi %s1033_s15, %s14_s15  }
   0x2   : > { %p161_p1 = scmp.lt.s32.totalorder %s1002_s15, 3 }
   0x4   : > { %p162_p2 = pnand %p811_p0, %p161_p1 }
   0x5   : > { %v947_v0 = vld [vmem:[%s1184_s1 + $0x40] sm:$0xff] (!%p162_p2)   ;;  %v951_v4 = vld [vmem:[%s1184_s1 + $0x48] sm:$0xff] (!%p162_p2)   ;;  %v955_v8 = vld [vmem:[%s1184_s1 + $0x50] sm:$0xff] (!%p162_p2)   ;;  %p184_p3 = scmp.lt.s32.totalorder (!%p162_p2), %s807_s16, 1  ;;  %v270_v30 = vlaneseq (!%p162_p2)  ;;  %v1004_v33 = vmov (!%p162_p2), 1966171168  }
   0x6   : > { %165 = sbr.rel (%p162_p2) target bundleno = 561 (0x231), region = 36  ;;  %v948_v1 = vld [vmem:[%s1184_s1 + $0xc0] sm:$0xff] (!%p162_p2)   ;;  %856 = vmatprep.subr.bf16.mxu0 (!%p162_p2), %v947_v0  ;;  %v952_v5 = vld [vmem:[%s1184_s1 + $0xc8] sm:$0xff] (!%p162_p2)   ;;  %v956_v9 = vld [vmem:[%s1184_s1 + $0xd0] sm:$0xff] (!%p162_p2)   ;;  %v268_v34 = vunpack.c.l.s4 (!%p162_p2), %v1004_v33  ;;  %v1005_v36 = vmov (!%p162_p2), 0.0   ;;  %vm1006_vm0 = vmmov (!%p162_p2), 0  }
   0x7   : > { %v949_v2 = vld [vmem:[%s1184_s1] sm:$0xff] (!%p162_p2)   ;;  %878 = vmatprep.subr.bf16.mxu1 (!%p162_p2), %v948_v1  ;;  %v953_v6 = vld [vmem:[%s1184_s1 + $0x8] sm:$0xff] (!%p162_p2)   ;;  %v957_v10 = vld [vmem:[%s1184_s1 + $0x10] sm:$0xff] (!%p162_p2)   ;;  %v271_v35 = vshrl.u32 (!%p162_p2), %v270_v30, 7  ;;  %vm525_vm1 = vcmask (!%p162_p2), 523264  }
   0x8   : > { %v950_v3 = vld [vmem:[%s1184_s1 + $0x80] sm:$0xff] (!%p162_p2)   ;;  %857 = vmatpush3.bf16.msra.mxu0 (!%p162_p2), %v949_v2  ;;  %v954_v7 = vld [vmem:[%s1184_s1 + $0x88] sm:$0xff] (!%p162_p2)   ;;  %v958_v11 = vld [vmem:[%s1184_s1 + $0x90] sm:$0xff] (!%p162_p2)   ;;  %v269_v37 = vunpack.c.0.s8 (!%p162_p2), %v268_v34 }
   0x9   : > { %879 = vmatpush3.bf16.msra.mxu1 (!%p162_p2), %v950_v3  ;;  %858 = vmatprep.subr.bf16.mxu0 (!%p162_p2), %v951_v4  ;;  %v959_v12 = vld [vmem:[%s1184_s1 + $0x58] sm:$0xff] (!%p162_p2)   ;;  %v963_v16 = vld [vmem:[%s1184_s1 + $0x60] sm:$0xff] (!%p162_p2)   ;;  %v967_v20 = vld [vmem:[%s1184_s1 + $0x68] sm:$0xff] (!%p162_p2)  }
   0xa   : > { %880 = vmatprep.subr.bf16.mxu1 (!%p162_p2), %v952_v5  ;;  %v960_v13 = vld [vmem:[%s1184_s1 + $0xd8] sm:$0xff] (!%p162_p2)   ;;  %v964_v17 = vld [vmem:[%s1184_s1 + $0xe0] sm:$0xff] (!%p162_p2)   ;;  %v968_v21 = vld [vmem:[%s1184_s1 + $0xe8] sm:$0xff] (!%p162_p2)   ;;  %v272_v39 = vsub.s32 (!%p162_p2), %v269_v37, %v271_v35 }
   0xb   : > { %v961_v14 = vld [vmem:[%s1184_s1 + $0x18] sm:$0xff] (!%p162_p2)   ;;  %v965_v18 = vld [vmem:[%s1184_s1 + $0x20] sm:$0xff] (!%p162_p2)   ;;  %v969_v22 = vld [vmem:[%s1184_s1 + $0x28] sm:$0xff] (!%p162_p2)  }
   0xc   : > { %859 = vmatpush3.bf16.msra.mxu0 (!%p162_p2), %v953_v6  ;;  %v962_v15 = vld [vmem:[%s1184_s1 + $0x98] sm:$0xff] (!%p162_p2)   ;;  %v966_v19 = vld [vmem:[%s1184_s1 + $0xa0] sm:$0xff] (!%p162_p2)   ;;  %v970_v23 = vld [vmem:[%s1184_s1 + $0xa8] sm:$0xff] (!%p162_p2)  }
   0xd   : > { %881 = vmatpush3.bf16.msra.mxu1 %v954_v7  ;;  %860 = vmatprep.subr.bf16.mxu0 %v955_v8  ;;  %v971_v24 = vld [vmem:[%s1184_s1 + $0x70] sm:$0xff]   ;;  %s1189_s16 = smov (!%p184_p3, %s807_s16), 1  ;;  %v975_v28 = vld [vmem:[%s1184_s1 + $0x78] sm:$0xff]   ;;  %v980_v44 = vld [vmem:[%s1184_s1 + $0x100] sm:$0xff]  }
   0xe   : > { %882 = vmatprep.subr.bf16.mxu1 %v956_v9  ;;  %v972_v25 = vld [vmem:[%s1184_s1 + $0xf0] sm:$0xff]   ;;  %v976_v29 = vld [vmem:[%s1184_s1 + $0xf8] sm:$0xff]   ;;  %s934_s29 = smul.u32 5, %s1189_s16  ;;  %v981_v47 = vld [vmem:[%s1184_s1 + $0x108] sm:$0xff]   ;;  %s190_s7 = scalar_lea.vmem %s1187_s4, %s1189_s16 }
   0xf   : > { %v973_v26 = vld [vmem:[%s1184_s1 + $0x30] sm:$0xff]   ;;  %v977_v31 = vld [vmem:[%s1184_s1 + $0x38] sm:$0xff]   ;;  %v984_v53 = vld [vmem:[%s1185_s2] sm:$0xff]  }
  0x10   : > { %861 = vmatpush3.bf16.msra.mxu0 %v957_v10  ;;  %v974_v27 = vld [vmem:[%s1184_s1 + $0xb0] sm:$0xff]   ;;  %v978_v32 = vld [vmem:[%s1184_s1 + $0xb8] sm:$0xff]   ;;  %s187_s10 = scalar_lea.vmem %s1183_s0, %s934_s29  ;;  %v985_v54 = vld [vmem:[%s1185_s2 + $0x8] sm:$0xff]  }
  0x11   : > { %883 = vmatpush3.bf16.msra.mxu1 %v958_v11  ;;  %862 = vmatprep.subr.bf16.mxu0 %v959_v12  ;;  %v192_v38 = vld [vmem:[%s187_s10] sm:$0x1f]  ;;  %v982_v49 = vld [vmem:[%s1184_s1 + $0x110] sm:$0xff]   ;;  %v983_v51 = vld [vmem:[%s1184_s1 + $0x118] sm:$0xff]  }
  0x12   : > { %884 = vmatprep.subr.bf16.mxu1 %v960_v13  ;;  %v273_v40 = vrot.slane %v192_v38, %v272_v39  ;;  %v266_v48 = vcombine.high %v192_v38, %v192_v38  ;;  %v986_v55 = vld [vmem:[%s1185_s2 + $0x10] sm:$0xff]   ;;  %v987_v56 = vld [vmem:[%s1185_s2 + $0x18] sm:$0xff]  }
  0x14   : > { %863 = vmatpush3.bf16.msra.mxu0 %v961_v14  ;;  %v281_v41 = vcombine.high %v273_v40, %v273_v40  ;;  %v288_v42 = vrot.slane %v273_v40, %v272_v39  ;;  %v280_v50 = vrot.slane %v266_v48, %v272_v39 }
  0x15   : > { %885 = vmatpush3.bf16.msra.mxu1 %v962_v15  ;;  %864 = vmatprep.subr.bf16.mxu0 %v963_v16 }
  0x16   : > { %886 = vmatprep.subr.bf16.mxu1 %v964_v17  ;;  %v302_v43 = vrot.slane %v281_v41, %v272_v39  ;;  %v303_v45 = vcombine.high %v288_v42, %v288_v42  ;;  %v295_v52 = vrot.slane %v280_v50, %v272_v39 }
  0x18   : > { %865 = vmatpush3.bf16.msra.mxu0 %v965_v18  ;;  %561 = vmatprep.mubr.bf16.mxu0 %v302_v43  ;;  %v304_v46 = vcombine.high %v302_v43, %v302_v43 }
  0x19   : > { %887 = vmatpush3.bf16.msra.mxu1 %v966_v19  ;;  %866 = vmatprep.subr.bf16.mxu0 %v967_v20 }
  0x1a   : > { %888 = vmatprep.subr.bf16.mxu1 %v968_v21  ;;  %601 = vmatprep.mubr.bf16.mxu1 %v304_v46 }
  0x1c   : > { %867 = vmatpush3.bf16.msra.mxu0 %v969_v22 }
  0x1d   : > { %889 = vmatpush3.bf16.msra.mxu1 %v970_v23  ;;  %868 = vmatprep.subr.bf16.mxu0 %v971_v24 }
  0x1e   : > { %890 = vmatprep.subr.bf16.mxu1 %v972_v25 }
  0x20   : > { %869 = vmatpush3.bf16.msra.mxu0 %v973_v26 }
  0x21   : > { %891 = vmatpush3.bf16.msra.mxu1 %v974_v27  ;;  %870 = vmatprep.subr.bf16.mxu0 %v975_v28 }
  0x22   : > { %892 = vmatprep.subr.bf16.mxu1 %v976_v29  ;;  %v1007_v29 = vmov 1.0  }
  0x24   : > { %871 = vmatpush3.bf16.msra.mxu0 %v977_v31 }
  0x25   : > { %893 = vmatpush3.bf16.msra.mxu1 %v978_v32  ;;  %910 = vmatprep.subr.bf16.mxu0 %v1005_v36 }
  0x26   : > { %922 = vmatprep.subr.bf16.mxu1 %v1005_v36 }
  0x27   : > { %562 = vmatmul.mubr.bf16.vlgmr.msra.gmra.mrb[0].mxu0 %v288_v42 }
  0x28   : > { %911 = vmatpush3.bf16.msra.mxu0 %v980_v44  ;;  %602 = vmatmul.mubr.bf16.vlgmr.msra.gmra.mrb[0].mxu1 %v303_v45 }
  0x29   : > { %912 = vmatprep.subr.bf16.mxu0 %v1005_v36  ;;  %918 = vmatprep.mubr.msk.bf16.mxu0 %vm1006_vm0, %v1005_v36 }
  0x2a   : > { %930 = vmatprep.mubr.msk.bf16.mxu1 %vm1006_vm0, %v1005_v36  ;;  %923 = vmatpush3.bf16.msra.mxu1 %v984_v53 }
  0x2b   : > { %924 = vmatprep.subr.bf16.mxu1 %v1005_v36 }
  0x2c   : > { %913 = vmatpush3.bf16.msra.mxu0 %v981_v47 }
  0x2d   : > { %914 = vmatprep.subr.bf16.mxu0 %v1005_v36 }
  0x2e   : > { %925 = vmatpush3.bf16.msra.mxu1 %v985_v54 }
  0x2f   : > { %926 = vmatprep.subr.bf16.mxu1 %v1005_v36 }
  0x30   : > { %915 = vmatpush3.bf16.msra.mxu0 %v982_v49 }
  0x31   : > { %916 = vmatprep.subr.bf16.mxu0 %v1005_v36 }
  0x32   : > { %927 = vmatpush3.bf16.msra.mxu1 %v986_v55 }
  0x33   : > { %928 = vmatprep.subr.bf16.mxu1 %v1005_v36  ;;  %v685_v36 = vld [vmem:[%s1186_s3] sm:$0x1] }
  0x34   : > { %917 = vmatpush3.bf16.msra.mxu0 %v983_v51 }
  0x36   : > { %929 = vmatpush3.bf16.msra.mxu1 %v987_v56 }
  0x37   : > { %919 = vmatmul.mubr.msk.bf16.vlgmr.msra.gmra.mrb[4].mxu0 %vm525_vm1, %v295_v52 }
  0xfa   : > { %v872_v57 = vpop.f32.mrb[0].mxu0 }
  0xfb   : > { %v873_v58 = vpop.f32.mrb[1].mxu0  ;;  %v894_v59 = vpop.f32.mrb[0].mxu1 }
  0xfc   : > { %v874_v60 = vadd.f32 %v873_v58, %v872_v57  ;;  %v875_v61 = vpop.f32.mrb[2].mxu0  ;;  %v895_v62 = vpop.f32.mrb[1].mxu1 }
  0xfd   : > { %v876_v63 = vpop.f32.mrb[3].mxu0  ;;  %v896_v0 = vadd.f32 %v895_v62, %v894_v59  ;;  %v897_v1 = vpop.f32.mrb[2].mxu1 }
  0xfe   : > { %v898_v2 = vpop.f32.mrb[3].mxu1 }
  0xff   : > { %v604_v3 = vadd.f32 %v896_v0, %v874_v60 }
 0x10a   : > { %v643_v4 = vpop.f32.mrb[4].mxu0 }
 0x10b   : > { %v644_v5 = vadd.f32 %v643_v4, %v604_v3  ;;  %v920_v6 = vpop.f32.mrb[5].mxu0 }
 0x10c   : > { %v646_v7 = vpop.f32.mrb[6].mxu0 }
 0x10d   : > { %v650_v8 = vmul.f32 0.70710677, %v644_v5  ;;  %v921_v9 = vpop.f32.mrb[7].mxu0  ;;  %v649_v32 = vmul.f32 0.5, %v644_v5 }
 0x10f   : > { %v653_v10 = vand.u32 2147483647, %v650_v8  ;;  %vm651_vm2 = vcmp.lt.f32.partialorder %v650_v8, 0.0 }
 0x110   : > { %v652_v30 = vsel %vm651_vm2, -1.0, %v1007_v29 }
 0x111   : > { %v654_v11 = vmul.f32 0.3275911, %v653_v10  ;;  %v667_v13 = vsub.f32 0.0, %v653_v10 }
 0x113   : > { %v655_v12 = vadd.f32 1.0, %v654_v11  ;;  %v668_v15 = vmul.f32 %v667_v13, %v653_v10 }
 0x115   : > { %988 = vrcp.f32 %v655_v12  ;;  %v669_v18 = vmul.f32 1.442695, %v668_v15 }
 0x117   : > { %990 = vpow2.f32 %v669_v18 }
 0x11f   : > { %v989_v14 = vpop.eup %988 }
 0x120   : > { %v658_v16 = vmul.f32 1.0614054, %v989_v14 }
 0x121   : > { %v991_v26 = vpop.eup %990 }
 0x122   : > { %v659_v17 = vadd.f32 -1.4531521, %v658_v16 }
 0x124   : > { %v660_v19 = vmul.f32 %v989_v14, %v659_v17 }
 0x126   : > { %v661_v20 = vadd.f32 1.4214138, %v660_v19 }
 0x128   : > { %v662_v21 = vmul.f32 %v989_v14, %v661_v20 }
 0x12a   : > { %v663_v22 = vadd.f32 -0.28449672, %v662_v21 }
 0x12c   : > { %v664_v23 = vmul.f32 %v989_v14, %v663_v22 }
 0x12e   : > { %v665_v24 = vadd.f32 0.2548296, %v664_v23 }
 0x130   : > { %v666_v25 = vmul.f32 %v989_v14, %v665_v24 }
 0x132   : > { %v671_v27 = vmul.f32 %v991_v26, %v666_v25 }
 0x134   : > { %v672_v28 = vsub.f32 1.0, %v671_v27 }
 0x136   : > { %v673_v31 = vmul.f32 %v672_v28, %v652_v30 }
 0x138   : > { %v674_v33 = vadd.f32 1.0, %v673_v31 }
 0x13a   : > { %v675_v34 = vmul.f32 %v674_v33, %v649_v32 }
 0x13c   : > { %v676_v35 = vpack.c.bf16 %v675_v34, %v675_v34 }
 0x13e   : > { %931 = vmatmul.mubr.msk.bf16.vlgmr.msra.gmra.mrb[4].mxu1 %vm525_vm1, %v676_v35 }
 0x211   : > { %v747_v37 = vpop.f32.mrb[4].mxu1 }
 0x212   : > { %v748_v38 = vadd.f32 %v747_v37, %v685_v36  ;;  %v932_v39 = vpop.f32.mrb[5].mxu1 }
 0x213   : > { %v750_v40 = vpop.f32.mrb[6].mxu1 }
 0x214   : > { %v753_v41 = vsub.f32 0.0, %v748_v38  ;;  %v933_v42 = vpop.f32.mrb[7].mxu1 }
 0x216   : > { %v754_v43 = vmul.f32 1.442695, %v753_v41 }
 0x218   : > { %992 = vpow2.f32 %v754_v43 }
 0x222   : > { %v993_v44 = vpop.eup %992 }
 0x223   : > { %v756_v45 = vadd.f32 1.0, %v993_v44 }
 0x225   : > { %994 = vrcp.f32 %v756_v45 }
 0x22f   : > { %v995_v46 = vpop.eup %994 }
 0x230   : > { %759 = vst [vmem:[%s190_s7] sm:$0x1] %v995_v46 }
 0x231 PF: > { %s14_s15 = sadd.s32 1, %s1002_s15  }
 0x232   : > { %p11_p4 = scmp.ge.s32.totalorder %s14_s15, 4  }
 0x234   :  { %13 = sbr.rel (!%p11_p4) target bundleno = 1 (0x1), region = 66 }

// kernel: gffm_forward.11
= control target key start
LH: loop header
LB: loop body
LE: loop exit
PB: predicated region body
PF: predicated region fallthrough
CT: control target
= control target key end

     0   :  { %s1637_s15 = smov 0   ;;  %s1639_s16 = smov 0   ;;  %s1916_s0 = inlined_call_operand.vmem [shape: bf16[2,8,1152], index: 0, kind: input, shape index: {}]   ;;  %s1917_s1 = inlined_call_operand.vmem [shape: bf16[1152,64], index: 1, kind: input, shape index: {}]   ;;  %s1918_s2 = inlined_call_operand.vmem [shape: bf16[64,64], index: 2, kind: input, shape index: {}]   ;;  %s1919_s3 = inlined_call_operand.vmem [shape: f32[1,64], index: 3, kind: input, shape index: {}]   ;;  %s1920_s4 = inlined_call_operand.vmem [shape: bf16[2,8,64], index: 4, kind: output, shape index: {}]  }
   0x1   :  { %s1641_s17 = smov 0  }
   0x2 LB: > { %s26_s18 = sadd.s32 1, %s1603_s16  ;;  %p1242_p0 = scmp.ge.s32.totalorder %s1607_s17, 1  ;;  %s1607_s17 = sphi %s1641_s17, %s14_s17   ;;  %s1603_s16 = sphi %s1639_s16, %s1922_s16   ;;  %s1599_s15 = sphi %s1637_s15, %s1921_s15  }
   0x3   : > { %p28_p1 = scmp.ge.s32.totalorder %s26_s18, 2  ;;  %p182_p2 = scmp.lt.s32.totalorder %s1607_s17, 3 }
   0x5   : > { %s1924_s18 = smov (%p28_p1, %s26_s18), 0  ;;  %p183_p3 = pnand %p1242_p0, %p182_p2 }
   0x6   : > { %v1496_v0 = vld [vmem:[%s1917_s1 + $0x40] sm:$0xff] (!%p183_p3)   ;;  %v1500_v4 = vld [vmem:[%s1917_s1 + $0x48] sm:$0xff] (!%p183_p3)   ;;  %v1504_v8 = vld [vmem:[%s1917_s1 + $0x50] sm:$0xff] (!%p183_p3)   ;;  %p214_p4 = scmp.lt.s32.totalorder (!%p183_p3), %s1599_s15, 1  ;;  %vm1610_vm0 = vmmov (!%p183_p3), 0   ;;  %vm1111_vm2 = vcmask (!%p183_p3), 523264  }
   0x7   : > { %186 = sbr.rel (%p183_p3) target bundleno = 584 (0x248), region = 36  ;;  %v1497_v1 = vld [vmem:[%s1917_s1 + $0xc0] sm:$0xff] (!%p183_p3)   ;;  %1334 = vmatprep.subr.bf16.mxu0 (!%p183_p3), %v1496_v0  ;;  %v1501_v5 = vld [vmem:[%s1917_s1 + $0xc8] sm:$0xff] (!%p183_p3)   ;;  %v1505_v9 = vld [vmem:[%s1917_s1 + $0xd0] sm:$0xff] (!%p183_p3)   ;;  %vm1156_vm3 = vcmask (!%p183_p3), 519168  }
   0x8   : > { %v1498_v2 = vld [vmem:[%s1917_s1] sm:$0xff] (!%p183_p3)   ;;  %1356 = vmatprep.subr.bf16.mxu1 (!%p183_p3), %v1497_v1  ;;  %v1502_v6 = vld [vmem:[%s1917_s1 + $0x8] sm:$0xff] (!%p183_p3)   ;;  %v1506_v10 = vld [vmem:[%s1917_s1 + $0x10] sm:$0xff] (!%p183_p3)  }
   0x9   : > { %v1499_v3 = vld [vmem:[%s1917_s1 + $0x80] sm:$0xff] (!%p183_p3)   ;;  %1335 = vmatpush3.bf16.msra.mxu0 (!%p183_p3), %v1498_v2  ;;  %v1503_v7 = vld [vmem:[%s1917_s1 + $0x88] sm:$0xff] (!%p183_p3)   ;;  %v1507_v11 = vld [vmem:[%s1917_s1 + $0x90] sm:$0xff] (!%p183_p3)  }
   0xa   : > { %1357 = vmatpush3.bf16.msra.mxu1 (!%p183_p3), %v1499_v3  ;;  %1336 = vmatprep.subr.bf16.mxu0 (!%p183_p3), %v1500_v4  ;;  %v1508_v12 = vld [vmem:[%s1917_s1 + $0x58] sm:$0xff] (!%p183_p3)   ;;  %v1512_v16 = vld [vmem:[%s1917_s1 + $0x60] sm:$0xff] (!%p183_p3)   ;;  %v1516_v20 = vld [vmem:[%s1917_s1 + $0x68] sm:$0xff] (!%p183_p3)  }
   0xb   : > { %1358 = vmatprep.subr.bf16.mxu1 (!%p183_p3), %v1501_v5  ;;  %v1509_v13 = vld [vmem:[%s1917_s1 + $0xd8] sm:$0xff] (!%p183_p3)   ;;  %v1513_v17 = vld [vmem:[%s1917_s1 + $0xe0] sm:$0xff] (!%p183_p3)   ;;  %v1517_v21 = vld [vmem:[%s1917_s1 + $0xe8] sm:$0xff] (!%p183_p3)  }
   0xc   : > { %v1510_v14 = vld [vmem:[%s1917_s1 + $0x18] sm:$0xff] (!%p183_p3)   ;;  %v1514_v18 = vld [vmem:[%s1917_s1 + $0x20] sm:$0xff] (!%p183_p3)   ;;  %v1518_v22 = vld [vmem:[%s1917_s1 + $0x28] sm:$0xff] (!%p183_p3)  }
   0xd   : > { %1337 = vmatpush3.bf16.msra.mxu0 (!%p183_p3), %v1502_v6  ;;  %v1511_v15 = vld [vmem:[%s1917_s1 + $0x98] sm:$0xff] (!%p183_p3)   ;;  %v1515_v19 = vld [vmem:[%s1917_s1 + $0xa0] sm:$0xff] (!%p183_p3)   ;;  %v1519_v23 = vld [vmem:[%s1917_s1 + $0xa8] sm:$0xff] (!%p183_p3)  }
   0xe   : > { %1359 = vmatpush3.bf16.msra.mxu1 %v1503_v7  ;;  %1338 = vmatprep.subr.bf16.mxu0 %v1504_v8  ;;  %s1926_s15 = smov (!%p214_p4, %s1599_s15), 1  ;;  %v1520_v24 = vld [vmem:[%s1917_s1 + $0x70] sm:$0xff]   ;;  %v1524_v28 = vld [vmem:[%s1917_s1 + $0x78] sm:$0xff]   ;;  %v1532_v38 = vld [vmem:[%s1917_s1 + $0x140] sm:$0xff]  }
   0xf   : > { %1360 = vmatprep.subr.bf16.mxu1 %v1505_v9  ;;  %v1521_v25 = vld [vmem:[%s1917_s1 + $0xf0] sm:$0xff]   ;;  %s1468_s27 = smul.u32 36, %s1926_s15  ;;  %v1525_v29 = vld [vmem:[%s1917_s1 + $0xf8] sm:$0xff]   ;;  %v1533_v39 = vld [vmem:[%s1917_s1 + $0x100] sm:$0xff]   ;;  %s1244_s26 = sshll.u32 %s1926_s15, 2 }
  0x10   : > { %v1522_v26 = vld [vmem:[%s1917_s1 + $0x30] sm:$0xff]   ;;  %v1526_v30 = vld [vmem:[%s1917_s1 + $0x38] sm:$0xff]   ;;  %v1534_v40 = vld [vmem:[%s1917_s1 + $0x1c0] sm:$0xff]   ;;  %s229_s29 = scalar_lea.vmem %s1920_s4, %s1244_s26 }
  0x11   : > { %1339 = vmatpush3.bf16.msra.mxu0 %v1506_v10  ;;  %v1523_v27 = vld [vmem:[%s1917_s1 + $0xb0] sm:$0xff]   ;;  %s1755_s12 = scalar_lea.vmem %s1916_s0, %s1468_s27  ;;  %v1527_v31 = vld [vmem:[%s1917_s1 + $0xb8] sm:$0xff]   ;;  %v1535_v41 = vld [vmem:[%s1917_s1 + $0x180] sm:$0xff]  }
  0x12   : > { %1361 = vmatpush3.bf16.msra.mxu1 %v1507_v11  ;;  %1340 = vmatprep.subr.bf16.mxu0 %v1508_v12  ;;  %v231_v32 = vld [vmem:[%s1755_s12] sm:$0xff]  ;;  %v232_v33 = vld [vmem:[%s1755_s12 + $0x8] sm:$0xff]  ;;  %v1540_v46 = vld [vmem:[%s1917_s1 + $0x150] sm:$0xff]  }
  0x13   : > { %1362 = vmatprep.subr.bf16.mxu1 %v1509_v13  ;;  %v1245_v34 = vcombine.low %v231_v32, %v231_v32  ;;  %v1246_v35 = vcombine.high %v231_v32, %v231_v32  ;;  %v1247_v36 = vcombine.low %v232_v33, %v232_v33  ;;  %v1248_v37 = vcombine.high %v232_v33, %v232_v33  ;;  %v1536_v42 = vld [vmem:[%s1917_s1 + $0x148] sm:$0xff]   ;;  %v1541_v47 = vld [vmem:[%s1917_s1 + $0x110] sm:$0xff]   ;;  %v1544_v50 = vld [vmem:[%s1917_s1 + $0x158] sm:$0xff]  }
  0x14   : > { %v1537_v43 = vld [vmem:[%s1917_s1 + $0x108] sm:$0xff]   ;;  %v1542_v48 = vld [vmem:[%s1917_s1 + $0x1d0] sm:$0xff]   ;;  %v1545_v51 = vld [vmem:[%s1917_s1 + $0x118] sm:$0xff]   ;;  %v1609_v13 = vmov 0.0  }
  0x15   : > { %1341 = vmatpush3.bf16.msra.mxu0 %v1510_v14  ;;  %876 = vmatprep.mubr.bf16.mxu0 %v1246_v35  ;;  %v1538_v44 = vld [vmem:[%s1917_s1 + $0x1c8] sm:$0xff]   ;;  %v1543_v49 = vld [vmem:[%s1917_s1 + $0x190] sm:$0xff]   ;;  %v1546_v52 = vld [vmem:[%s1917_s1 + $0x1d8] sm:$0xff]  }
  0x16   : > { %1363 = vmatpush3.bf16.msra.mxu1 %v1511_v15  ;;  %1342 = vmatprep.subr.bf16.mxu0 %v1512_v16  ;;  %v1539_v45 = vld [vmem:[%s1917_s1 + $0x188] sm:$0xff]   ;;  %v1547_v53 = vld [vmem:[%s1917_s1 + $0x198] sm:$0xff]   ;;  %v1548_v54 = vld [vmem:[%s1917_s1 + $0x160] sm:$0xff]  }
  0x17   : > { %1364 = vmatprep.subr.bf16.mxu1 %v1513_v17  ;;  %916 = vmatprep.mubr.bf16.mxu1 %v1248_v37  ;;  %v1549_v55 = vld [vmem:[%s1917_s1 + $0x120] sm:$0xff]   ;;  %v1552_v58 = vld [vmem:[%s1917_s1 + $0x168] sm:$0xff]   ;;  %v1556_v62 = vld [vmem:[%s1917_s1 + $0x170] sm:$0xff]  }
  0x18   : > { %v1550_v56 = vld [vmem:[%s1917_s1 + $0x1e0] sm:$0xff]   ;;  %v1553_v59 = vld [vmem:[%s1917_s1 + $0x128] sm:$0xff]   ;;  %v1557_v63 = vld [vmem:[%s1917_s1 + $0x130] sm:$0xff]  }
  0x19   : > { %1343 = vmatpush3.bf16.msra.mxu0 %v1514_v18  ;;  %v1551_v57 = vld [vmem:[%s1917_s1 + $0x1a0] sm:$0xff]   ;;  %v1554_v60 = vld [vmem:[%s1917_s1 + $0x1e8] sm:$0xff]   ;;  %v1558_v0 = vld [vmem:[%s1917_s1 + $0x1f0] sm:$0xff]  }
  0x1a   : > { %1365 = vmatpush3.bf16.msra.mxu1 %v1515_v19  ;;  %1344 = vmatprep.subr.bf16.mxu0 %v1516_v20  ;;  %v1555_v61 = vld [vmem:[%s1917_s1 + $0x1a8] sm:$0xff]   ;;  %v1559_v1 = vld [vmem:[%s1917_s1 + $0x1b0] sm:$0xff]   ;;  %v1560_v2 = vld [vmem:[%s1917_s1 + $0x178] sm:$0xff]  }
  0x1b   : > { %1366 = vmatprep.subr.bf16.mxu1 %v1517_v21  ;;  %v1561_v3 = vld [vmem:[%s1917_s1 + $0x138] sm:$0xff]   ;;  %v233_v5 = vld [vmem:[%s1755_s12 + $0x10] sm:$0xff]  ;;  %v1568_v12 = vld [vmem:[%s1917_s1 + $0x200] sm:$0xff]  }
  0x1c   : > { %v1562_v4 = vld [vmem:[%s1917_s1 + $0x1f8] sm:$0xff]   ;;  %v1250_v6 = vcombine.high %v233_v5, %v233_v5  ;;  %v1249_v8 = vcombine.low %v233_v5, %v233_v5  ;;  %v1569_v14 = vld [vmem:[%s1917_s1 + $0x208] sm:$0xff]   ;;  %v1570_v15 = vld [vmem:[%s1917_s1 + $0x210] sm:$0xff]  }
  0x1d   : > { %1345 = vmatpush3.bf16.msra.mxu0 %v1518_v22  ;;  %v1565_v7 = vld [vmem:[%s1917_s1 + $0x1b8] sm:$0xff]   ;;  %v1572_v17 = vld [vmem:[%s1917_s1 + $0x220] sm:$0xff]   ;;  %v1573_v18 = vld [vmem:[%s1917_s1 + $0x228] sm:$0xff]  }
  0x1e   : > { %1367 = vmatpush3.bf16.msra.mxu1 %v1519_v23  ;;  %1346 = vmatprep.subr.bf16.mxu0 %v1520_v24  ;;  %v234_v9 = vld [vmem:[%s1755_s12 + $0x18] sm:$0xff]  ;;  %v1574_v19 = vld [vmem:[%s1917_s1 + $0x230] sm:$0xff]   ;;  %v1576_v21 = vld [vmem:[%s1755_s12 + $0x20] ss:$0 sps:$4 sm:$0xff]  }
  0x1f   : > { %1368 = vmatprep.subr.bf16.mxu1 %v1521_v25  ;;  %v1251_v10 = vcombine.low %v234_v9, %v234_v9  ;;  %v1252_v11 = vcombine.high %v234_v9, %v234_v9  ;;  %v1571_v16 = vld [vmem:[%s1917_s1 + $0x218] sm:$0xff]   ;;  %v1577_v22 = vld [vmem:[%s1918_s2] sm:$0xff]   ;;  %v1578_v23 = vld [vmem:[%s1918_s2 + $0x8] sm:$0xff]  }
  0x20   : > { %v1575_v20 = vld [vmem:[%s1917_s1 + $0x238] sm:$0xff]   ;;  %v1579_v24 = vld [vmem:[%s1918_s2 + $0x10] sm:$0xff]  }
  0x21   : > { %1347 = vmatpush3.bf16.msra.mxu0 %v1522_v26  ;;  %v1580_v25 = vld [vmem:[%s1918_s2 + $0x18] sm:$0xff]  }
  0x22   : > { %1369 = vmatpush3.bf16.msra.mxu1 %v1523_v27  ;;  %1348 = vmatprep.subr.bf16.mxu0 %v1524_v28 }
  0x23   : > { %1370 = vmatprep.subr.bf16.mxu1 %v1525_v29 }
  0x25   : > { %1349 = vmatpush3.bf16.msra.mxu0 %v1526_v30 }
  0x26   : > { %1371 = vmatpush3.bf16.msra.mxu1 %v1527_v31  ;;  %1378 = vmatprep.subr.bf16.mxu0 %v1532_v38 }
  0x27   : > { %1400 = vmatprep.subr.bf16.mxu1 %v1534_v40 }
  0x28   : > { %877 = vmatmul.mubr.bf16.vlgmr.msra.gmra.mrb[0].mxu0 %v1245_v34 }
  0x29   : > { %917 = vmatmul.mubr.bf16.vlgmr.msra.gmra.mrb[0].mxu1 %v1247_v36  ;;  %1379 = vmatpush3.bf16.msra.mxu0 %v1533_v39 }
  0x2a   : > { %1401 = vmatpush3.bf16.msra.mxu1 %v1535_v41  ;;  %1380 = vmatprep.subr.bf16.mxu0 %v1536_v42 }
  0x2b   : > { %1402 = vmatprep.subr.bf16.mxu1 %v1538_v44  ;;  %956 = vmatprep.mubr.bf16.mxu0 %v1250_v6 }
  0x2c   : > { %996 = vmatprep.mubr.bf16.mxu1 %v1252_v11 }
  0x2d   : > { %1381 = vmatpush3.bf16.msra.mxu0 %v1537_v43 }
  0x2e   : > { %1403 = vmatpush3.bf16.msra.mxu1 %v1539_v45  ;;  %1382 = vmatprep.subr.bf16.mxu0 %v1540_v46 }
  0x2f   : > { %1404 = vmatprep.subr.bf16.mxu1 %v1542_v48 }
  0x31   : > { %1383 = vmatpush3.bf16.msra.mxu0 %v1541_v47 }
  0x32   : > { %1405 = vmatpush3.bf16.msra.mxu1 %v1543_v49  ;;  %1384 = vmatprep.subr.bf16.mxu0 %v1544_v50 }
  0x33   : > { %1406 = vmatprep.subr.bf16.mxu1 %v1546_v52 }
  0x35   : > { %1385 = vmatpush3.bf16.msra.mxu0 %v1545_v51 }
  0x36   : > { %1407 = vmatpush3.bf16.msra.mxu1 %v1547_v53  ;;  %1386 = vmatprep.subr.bf16.mxu0 %v1548_v54 }
  0x37   : > { %1408 = vmatprep.subr.bf16.mxu1 %v1550_v56 }
  0x39   : > { %1387 = vmatpush3.bf16.msra.mxu0 %v1549_v55 }
  0x3a   : > { %1409 = vmatpush3.bf16.msra.mxu1 %v1551_v57  ;;  %1388 = vmatprep.subr.bf16.mxu0 %v1552_v58 }
  0x3b   : > { %1410 = vmatprep.subr.bf16.mxu1 %v1554_v60 }
  0x3d   : > { %1389 = vmatpush3.bf16.msra.mxu0 %v1553_v59 }
  0x3e   : > { %1411 = vmatpush3.bf16.msra.mxu1 %v1555_v61  ;;  %1390 = vmatprep.subr.bf16.mxu0 %v1556_v62 }
  0x3f   : > { %1412 = vmatprep.subr.bf16.mxu1 %v1558_v0 }
  0x41   : > { %1391 = vmatpush3.bf16.msra.mxu0 %v1557_v63 }
  0x42   : > { %1413 = vmatpush3.bf16.msra.mxu1 %v1559_v1  ;;  %1392 = vmatprep.subr.bf16.mxu0 %v1560_v2 }
  0x43   : > { %1414 = vmatprep.subr.bf16.mxu1 %v1562_v4 }
  0x45   : > { %1393 = vmatpush3.bf16.msra.mxu0 %v1561_v3 }
  0x46   : > { %1415 = vmatpush3.bf16.msra.mxu1 %v1565_v7  ;;  %1436 = vmatprep.subr.bf16.mxu0 %v1609_v13 }
  0x47   : > { %1456 = vmatprep.subr.bf16.mxu1 %v1609_v13 }
  0x48   : > { %957 = vmatmul.mubr.bf16.vlgmr.msra.gmra.mrb[4].mxu0 %v1249_v8 }
  0x49   : > { %1437 = vmatpush3.bf16.msra.mxu0 %v1568_v12  ;;  %997 = vmatmul.mubr.bf16.vlgmr.msra.gmra.mrb[4].mxu1 %v1251_v10  ;;  %v1611_v10 = vmov 1.0  }
  0x4a   : > { %1438 = vmatprep.subr.bf16.mxu0 %v1609_v13  ;;  %1452 = vmatprep.mubr.msk.bf16.mxu0 %vm1610_vm0, %v1609_v13 }
  0x4b   : > { %1464 = vmatprep.mubr.msk.bf16.mxu1 %vm1610_vm0, %v1609_v13  ;;  %1457 = vmatpush3.bf16.msra.mxu1 %v1577_v22 }
  0x4c   : > { %1458 = vmatprep.subr.bf16.mxu1 %v1609_v13 }
  0x4d   : > { %1439 = vmatpush3.bf16.msra.mxu0 %v1569_v14 }
  0x4e   : > { %1440 = vmatprep.subr.bf16.mxu0 %v1609_v13 }
  0x4f   : > { %1459 = vmatpush3.bf16.msra.mxu1 %v1578_v23 }
  0x50   : > { %1460 = vmatprep.subr.bf16.mxu1 %v1609_v13 }
  0x51   : > { %1441 = vmatpush3.bf16.msra.mxu0 %v1570_v15 }
  0x52   : > { %1442 = vmatprep.subr.bf16.mxu0 %v1609_v13 }
  0x53   : > { %1461 = vmatpush3.bf16.msra.mxu1 %v1579_v24 }
  0x54   : > { %1462 = vmatprep.subr.bf16.mxu1 %v1609_v13 }
  0x55   : > { %1443 = vmatpush3.bf16.msra.mxu0 %v1571_v16 }
  0x56   : > { %1444 = vmatprep.subr.bf16.mxu0 %v1609_v13 }
  0x57   : > { %1463 = vmatpush3.bf16.msra.mxu1 %v1580_v25 }
  0x59   : > { %1445 = vmatpush3.bf16.msra.mxu0 %v1572_v17  ;;  %v1326_v17 = vld [vmem:[%s1919_s3] ss:$0 sm:$0xff] }
  0x5a   : > { %1446 = vmatprep.subr.bf16.mxu0 %v1609_v13 }
  0x5d   : > { %1447 = vmatpush3.bf16.msra.mxu0 %v1573_v18 }
  0x5e   : > { %1448 = vmatprep.subr.bf16.mxu0 %v1609_v13 }
  0x61   : > { %1449 = vmatpush3.bf16.msra.mxu0 %v1574_v19 }
  0x62   : > { %1450 = vmatprep.subr.bf16.mxu0 %v1609_v13 }
  0x65   : > { %1451 = vmatpush3.bf16.msra.mxu0 %v1575_v20 }
  0x68   : > { %1453 = vmatmul.mubr.bf16.vlgmr.msra.gmra.mrb[8].mxu0 %v1576_v21 }
  0xfb   : > { %v1350_v26 = vpop.f32.mrb[0].mxu0 }
  0xfc   : > { %v1372_v27 = vpop.f32.mrb[0].mxu1  ;;  %v1351_v28 = vpop.f32.mrb[1].mxu0 }
  0xfd   : > { %v1373_v29 = vpop.f32.mrb[1].mxu1  ;;  %v1352_v30 = vadd.f32 %v1351_v28, %v1350_v26  ;;  %v1353_v32 = vpop.f32.mrb[2].mxu0 }
  0xfe   : > { %v1374_v31 = vadd.f32 %v1373_v29, %v1372_v27  ;;  %v1375_v33 = vpop.f32.mrb[2].mxu1  ;;  %v1354_v34 = vpop.f32.mrb[3].mxu0 }
  0xff   : > { %v1376_v35 = vpop.f32.mrb[3].mxu1 }
 0x100   : > { %v919_v36 = vadd.f32 %v1374_v31, %v1352_v30 }
 0x11b   : > { %v1394_v37 = vpop.f32.mrb[4].mxu0 }
 0x11c   : > { %v1395_v38 = vpop.f32.mrb[5].mxu0  ;;  %v1416_v39 = vpop.f32.mrb[4].mxu1 }
 0x11d   : > { %v1396_v40 = vadd.f32 %v1395_v38, %v1394_v37  ;;  %v1397_v41 = vpop.f32.mrb[6].mxu0  ;;  %v1417_v42 = vpop.f32.mrb[5].mxu1 }
 0x11e   : > { %v1398_v43 = vpop.f32.mrb[7].mxu0  ;;  %v1418_v44 = vadd.f32 %v1417_v42, %v1416_v39  ;;  %v1419_v45 = vpop.f32.mrb[6].mxu1 }
 0x11f   : > { %v959_v46 = vadd.f32 %v1396_v40, %v919_v36  ;;  %v1420_v47 = vpop.f32.mrb[7].mxu1 }
 0x121   : > { %v999_v48 = vadd.f32 %v1418_v44, %v959_v46 }
 0x13b   : > { %v1038_v49 = vpop.f32.mrb[8].mxu0 }
 0x13c   : > { %v1039_v50 = vadd.f32 %v1038_v49, %v999_v48  ;;  %v1454_v51 = vpop.f32.mrb[9].mxu0 }
 0x13d   : > { %v1041_v52 = vpop.f32.mrb[10].mxu0 }
 0x13e   : > { %v1045_v53 = vmul.f32 0.70710677, %v1039_v50  ;;  %v1455_v54 = vpop.f32.mrb[11].mxu0  ;;  %v1044_v13 = vmul.f32 0.5, %v1039_v50 }
 0x140   : > { %v1048_v55 = vand.u32 2147483647, %v1045_v53  ;;  %vm1046_vm1 = vcmp.lt.f32.partialorder %v1045_v53, 0.0 }
 0x141   : > { %v1047_v11 = vsel %vm1046_vm1, -1.0, %v1611_v10 }
 0x142   : > { %v1049_v56 = vmul.f32 0.3275911, %v1048_v55  ;;  %v1062_v58 = vsub.f32 0.0, %v1048_v55 }
 0x144   : > { %v1050_v57 = vadd.f32 1.0, %v1049_v56  ;;  %v1063_v60 = vmul.f32 %v1062_v58, %v1048_v55 }
 0x146   : > { %1581 = vrcp.f32 %v1050_v57  ;;  %v1064_v63 = vmul.f32 1.442695, %v1063_v60 }
 0x148   : > { %1583 = vpow2.f32 %v1064_v63 }
 0x150   : > { %v1582_v59 = vpop.eup %1581 }
 0x151   : > { %v1053_v61 = vmul.f32 1.0614054, %v1582_v59 }
 0x152   : > { %v1584_v7 = vpop.eup %1583 }
 0x153   : > { %v1054_v62 = vadd.f32 -1.4531521, %v1053_v61 }
 0x155   : > { %v1055_v0 = vmul.f32 %v1582_v59, %v1054_v62 }
 0x157   : > { %v1056_v1 = vadd.f32 1.4214138, %v1055_v0 }
 0x159   : > { %v1057_v2 = vmul.f32 %v1582_v59, %v1056_v1 }
 0x15b   : > { %v1058_v3 = vadd.f32 -0.28449672, %v1057_v2 }
 0x15d   : > { %v1059_v4 = vmul.f32 %v1582_v59, %v1058_v3 }
 0x15f   : > { %v1060_v5 = vadd.f32 0.2548296, %v1059_v4 }
 0x161   : > { %v1061_v6 = vmul.f32 %v1582_v59, %v1060_v5 }
 0x163   : > { %v1066_v8 = vmul.f32 %v1584_v7, %v1061_v6 }
 0x165   : > { %v1067_v9 = vsub.f32 1.0, %v1066_v8 }
 0x167   : > { %v1068_v12 = vmul.f32 %v1067_v9, %v1047_v11 }
 0x169   : > { %v1069_v14 = vadd.f32 1.0, %v1068_v12 }
 0x16b   : > { %v1070_v15 = vmul.f32 %v1069_v14, %v1044_v13 }
 0x16d   : > { %v1071_v16 = vpack.c.bf16 %v1070_v15, %v1070_v15 }
 0x16f   : > { %1465 = vmatmul.mubr.msk.bf16.vlgmr.msra.gmra.mrb[8].mxu1 %vm1111_vm2, %v1071_v16 }
 0x242   : > { %v1149_v18 = vpop.f32.mrb[8].mxu1 }
 0x243   : > { %v1150_v19 = vadd.f32 %v1326_v17, %v1149_v18  ;;  %v1466_v20 = vpop.f32.mrb[9].mxu1 }
 0x244   : > { %v1152_v21 = vpop.f32.mrb[10].mxu1 }
 0x245   : > { %v1155_v22 = vpack.c.bf16 %v1150_v19, %v1150_v19  ;;  %v1467_v23 = vpop.f32.mrb[11].mxu1 }
 0x247   : > { %1157 = vst.msk [vmem:[%s229_s29] sm:$0xf] %vm1156_vm3, %v1155_v22 }
 0x248 PF: > { %s14_s17 = sadd.s32 1, %s1607_s17   ;;  %s1921_s15 = smov %s1603_s16 }
 0x249   : > { %p11_p5 = scmp.ge.s32.totalorder %s14_s17, 4   ;;  %s1922_s16 = smov %s1924_s18 }
 0x24b   :  { %13 = sbr.rel (!%p11_p5) target bundleno = 2 (0x2), region = 66 }

// kernel: gffm_forward.13
= control target key start
LH: loop header
LB: loop body
LE: loop exit
PB: predicated region body
PF: predicated region fallthrough
CT: control target
= control target key end

     0   :  { %10 = vsyncpa [#allocation3], 0  ;;  %s1713_s0 = inlined_call_operand.vmem [shape: bf16[2,4,64,128], index: 0, kind: input, shape index: {}]   ;;  %s1714_s1 = inlined_call_operand.vmem [shape: bf16[2,128,64], index: 1, kind: input, shape index: {}]   ;;  %s1715_s2 = inlined_call_operand.vmem [shape: f32[1,64], index: 2, kind: input, shape index: {}]   ;;  %s1716_s3 = inlined_call_operand.vmem [shape: bf16[256,128], index: 3, kind: input, shape index: {}]   ;;  %s1717_s4 = inlined_call_operand.vmem [shape: f32[1,128], index: 4, kind: input, shape index: {}]   ;;  %s1718_s5 = inlined_call_operand.hbm [shape: f32[2,64,128], index: 5, kind: output, shape index: {}]  }
   0x1   :  { %12 = vsyncpa [#allocation3 + $0x1], 0  ;;  %s1439_s18 = smov 0   ;;  %s1441_s19 = smov 0  }
   0x2   :  { %s1443_s20 = smov 0   ;;  %s1445_s21 = smov 0  }
   0x3   :  { %s1447_s22 = smov 0   ;;  %s1449_s23 = smov 0  }
   0x4 LB: > { %s1055_s24 = sadd.s32 4294967295, %s1403_s23   ;;  %s1056_s25 = sadd.s32 4294967294, %s1403_s23   ;;  %s1403_s23 = sphi %s1449_s23, %s18_s23   ;;  %s1399_s22 = sphi %s1447_s22, %s1725_s22   ;;  %s1395_s21 = sphi %s1445_s21, %s1724_s21   ;;  %s1391_s20 = sphi %s1443_s20, %s1723_s20   ;;  %s1387_s19 = sphi %s1441_s19, %s1722_s19   ;;  %s1383_s18 = sphi %s1439_s18, %s1721_s18  }
   0x5   : > { %s30_s26 = sadd.s32 1, %s1399_s22  ;;  %s156_s27 = sadd.s32 1, %s1391_s20 }
   0x6   : > { %p32_p0 = scmp.ge.s32.totalorder %s30_s26, 2  ;;  %p166_p1 = scmp.ne.s32.totalorder %s1391_s20, %s1387_s19 }
   0x7   : > { %p167_p2 = scmp.eq.s32.totalorder %s1055_s24, 1  ;;  %p172_p3 = scmp.ne.s32.totalorder %s1387_s19, %s1383_s18 }
   0x8   : > { %s1727_s26 = smov (%p32_p0, %s30_s26), 0  ;;  %p173_p5 = scmp.eq.s32.totalorder %s1056_s25, 1 }
   0x9   : > { %p1479_p4 = por %p167_p2, %p166_p1  ;;  %s151_s29 = ssub.s32 %s1399_s22, %s1727_s26 }
   0xa   : > { %p1059_p6 = scmp.ge.s32.totalorder %s1403_s23, 1  ;;  %p154_p7 = scmp.eq.s32.totalorder %s151_s29, 0 }
   0xb   : > { %p1486_p8 = por %p173_p5, %p172_p3  ;;  %p221_p9 = scmp.lt.s32.totalorder %s1403_s23, 3 }
   0xc   : > { %s1492_s6 = scalar_select %p154_p7, %s1391_s20, %s156_s27  }
   0xd   : > { %p222_p10 = pnand %p1059_p6, %p221_p9 }
   0xe   : > { %p259_p11 = scmp.lt.s32.totalorder (!%p222_p10), %s1395_s21, 1  ;;  %v1309_v24 = vld [vmem:[%s1716_s3 + $0x40] sm:$0xff] (!%p222_p10)   ;;  %v1311_v26 = vld [vmem:[%s1716_s3 + $0x48] sm:$0xff] (!%p222_p10)   ;;  %v1313_v28 = vld [vmem:[%s1716_s3 + $0x50] sm:$0xff] (!%p222_p10)   ;;  %s1405_s27 = smov (!%p222_p10), 64   ;;  %vm707_vm0 = vcmask (!%p222_p10), 523264  }
   0xf   : > { %225 = sbr.rel (%p222_p10) target bundleno = 706 (0x2c2), region = 40  ;;  %v1310_v25 = vld [vmem:[%s1716_s3] sm:$0xff] (!%p222_p10)   ;;  %1139 = vmatprep.subr.bf16.mxu1 (!%p222_p10), %v1309_v24  ;;  %v1312_v27 = vld [vmem:[%s1716_s3 + $0x8] sm:$0xff] (!%p222_p10)   ;;  %v1314_v29 = vld [vmem:[%s1716_s3 + $0x10] sm:$0xff] (!%p222_p10)   ;;  %s255_s29 = sand.u32 (!%p222_p10), 1, %s1387_s19  }
  0x10   : > { %1140 = vmatpush3.bf16.msra.mxu1 (!%p222_p10), %v1310_v25  ;;  %v1315_v30 = vld [vmem:[%s1716_s3 + $0x58] sm:$0xff] (!%p222_p10)   ;;  %v1317_v32 = vld [vmem:[%s1716_s3 + $0x60] sm:$0xff] (!%p222_p10)   ;;  %v1319_v34 = vld [vmem:[%s1716_s3 + $0x68] sm:$0xff] (!%p222_p10)   ;;  %s1667_s16 = scalar_lea.sflag (!%p222_p10), [#allocation3], %s255_s29  ;;  %s1406_s17 = smov (!%p222_p10), [#allocation2]  }
  0x11   : > { %1141 = vmatprep.subr.bf16.mxu1 (!%p222_p10), %v1311_v26  ;;  %v1316_v31 = vld [vmem:[%s1716_s3 + $0x18] sm:$0xff] (!%p222_p10)   ;;  %v1318_v33 = vld [vmem:[%s1716_s3 + $0x20] sm:$0xff] (!%p222_p10)   ;;  %v1320_v35 = vld [vmem:[%s1716_s3 + $0x28] sm:$0xff] (!%p222_p10)   ;;  %s1329_s24 = sshll.u32 (!%p222_p10), %s1406_s17, 4  ;;  %s1330_s24 = int_to_ptr.vmem [resolvable:$false] %s1329_s24 }
  0x12   : > { %v1321_v36 = vld [vmem:[%s1716_s3 + $0x70] sm:$0xff] (!%p222_p10)   ;;  %v1565_v38 = vld [vmem:[%s1715_s2] ss:$0 sm:$0xff] (!%p222_p10)  ;;  %s1331_s25 = scalar_lea.vmem (!%p222_p10), %s1330_s24, 2048 }
  0x13   : > { %v1322_v37 = vld [vmem:[%s1716_s3 + $0x30] sm:$0xff] (!%p222_p10)  }
  0x14   : > { %1142 = vmatpush3.bf16.msra.mxu1 (!%p222_p10), %v1312_v27 }
  0x15   : > { %1143 = vmatprep.subr.bf16.mxu1 (!%p222_p10), %v1313_v28 }
  0x16   : > { %s260_s7 = scalar_select %p259_p11, %s1395_s21, 1 }
  0x18   : > { %s1113_s8 = sshll.u32 %s260_s7, 6  ;;  %s1112_s12 = sshll.u32 %s260_s7, 7  ;;  %1144 = vmatpush3.bf16.msra.mxu1 %v1314_v29 }
  0x19   : > { %s272_s11 = scalar_lea.vmem %s1714_s1, %s1113_s8  ;;  %s1502_s15 = scalar_lea.vmem %s1713_s0, %s1112_s12  ;;  %1145 = vmatprep.subr.bf16.mxu1 %v1315_v30 }
  0x1a   : > { %v1285_v0 = vld [vmem:[%s272_s11] sm:$0xff]   ;;  %v1286_v1 = vld [vmem:[%s272_s11 + $0x8] sm:$0xff]   ;;  %v1287_v2 = vld [vmem:[%s272_s11 + $0x10] sm:$0xff]   ;;  %s1060_s7 = sshll.u32 %s255_s29, 6 }
  0x1b   : > { %1179 = vmatprep.subr.bf16.mxu0 %v1285_v0  ;;  %v1288_v3 = vld [vmem:[%s272_s11 + $0x18] sm:$0xff]   ;;  %v1293_v4 = vld [vmem:[%s1502_s15] sm:$0xff]   ;;  %v1290_v6 = vld [vmem:[%s272_s11 + $0x28] sm:$0xff]   ;;  %s1646_s10 = scalar_lea.vmem [#allocation2], %s1060_s7 }
  0x1c   : > { %1180 = vmatpush3.bf16.msra.mxu0 %v1285_v0  ;;  %1195 = vmatprep.mubr.bf16.mxu0 %v1293_v4  ;;  %v1289_v5 = vld [vmem:[%s272_s11 + $0x20] sm:$0xff]   ;;  %v1291_v7 = vld [vmem:[%s272_s11 + $0x30] sm:$0xff]   ;;  %v1292_v8 = vld [vmem:[%s272_s11 + $0x38] sm:$0xff]   ;;  %s1114_s11 = sshll.u32 %s1395_s21, 10  ;;  %s964_s12 = sshll.u32 %s1646_s10, 4  ;;  %s1661_s12 = int_to_ptr.vmem [resolvable:$true] %s964_s12 }
  0x1d   : > { %1181 = vmatprep.subr.bf16.mxu0 %v1286_v1  ;;  %v1294_v9 = vld [vmem:[%s1502_s15 + $0x8] sm:$0xff]   ;;  %v1295_v10 = vld [vmem:[%s1502_s15 + $0x10] sm:$0xff]   ;;  %v1296_v11 = vld [vmem:[%s1502_s15 + $0x18] sm:$0xff]   ;;  %1146 = vmatpush3.bf16.msra.mxu1 %v1316_v31  ;;  %s1325_s21 = scalar_lea.vmem %s1661_s12, 1024  ;;  %p1332_p1 = scmp.lt.s32.totalorder %s1661_s12, %s1330_s24 }
  0x1e   : > { %v1297_v12 = vld [vmem:[%s1502_s15 + $0x20] sm:$0xff]   ;;  %v1298_v13 = vld [vmem:[%s1502_s15 + $0x28] sm:$0xff]   ;;  %v1299_v14 = vld [vmem:[%s1502_s15 + $0x30] sm:$0xff]   ;;  %1147 = vmatprep.subr.bf16.mxu1 %v1317_v32  ;;  %p1326_p12 = scmp.ne.s32.totalorder %s1661_s12, %s1325_s21  ;;  %p1333_p2 = scmp.lt.s32.totalorder %s1331_s25, %s1325_s21 }
  0x1f   : > { %v1300_v15 = vld [vmem:[%s1502_s15 + $0x38] sm:$0xff]   ;;  %v1301_v16 = vld [vmem:[%s1502_s15 + $0x40] sm:$0xff]   ;;  %v1302_v17 = vld [vmem:[%s1502_s15 + $0x48] sm:$0xff]  }
  0x20   : > { %1182 = vmatpush3.bf16.msra.mxu0 %v1286_v1  ;;  %v1303_v18 = vld [vmem:[%s1502_s15 + $0x50] sm:$0xff]   ;;  %v1304_v19 = vld [vmem:[%s1502_s15 + $0x58] sm:$0xff]   ;;  %v1305_v20 = vld [vmem:[%s1502_s15 + $0x60] sm:$0xff]   ;;  %p1327_p13 = pnand %p1326_p12, %p1479_p4  ;;  %p1334_p3 = por %p1333_p2, %p1332_p1 }
  0x21   : > { %1183 = vmatprep.subr.bf16.mxu0 %v1287_v2  ;;  %v1306_v21 = vld [vmem:[%s1502_s15 + $0x68] sm:$0xff]   ;;  %v1307_v22 = vld [vmem:[%s1502_s15 + $0x70] sm:$0xff]   ;;  %v1308_v23 = vld [vmem:[%s1502_s15 + $0x78] sm:$0xff]   ;;  %1148 = vmatpush3.bf16.msra.mxu1 %v1318_v33  ;;  %s1659_s15 = scalar_lea.hbm %s1718_s5, %s1114_s11 }
  0x22   : > { %1149 = vmatprep.subr.bf16.mxu1 %v1319_v34  ;;  %p1328_p0 = pneg %p1327_p13 }
  0x24   : > { %1184 = vmatpush3.bf16.msra.mxu0 %v1287_v2  ;;  %p1335_p5 = pnand %p1334_p3, %p1328_p0 }
  0x25   : > { %1185 = vmatprep.subr.bf16.mxu0 %v1288_v3  ;;  %1150 = vmatpush3.bf16.msra.mxu1 %v1320_v35 }
  0x26   : > { %1151 = vmatprep.subr.bf16.mxu1 %v1321_v36 }
  0x28   : > { %1186 = vmatpush3.bf16.msra.mxu0 %v1288_v3 }
  0x29   : > { %1187 = vmatprep.subr.bf16.mxu0 %v1289_v5  ;;  %1152 = vmatpush3.bf16.msra.mxu1 %v1322_v37 }
  0x2c   : > { %1188 = vmatpush3.bf16.msra.mxu0 %v1289_v5 }
  0x2d   : > { %1189 = vmatprep.subr.bf16.mxu0 %v1290_v6 }
  0x30   : > { %1190 = vmatpush3.bf16.msra.mxu0 %v1290_v6 }
  0x31   : > { %1191 = vmatprep.subr.bf16.mxu0 %v1291_v7 }
  0x34   : > { %1192 = vmatpush3.bf16.msra.mxu0 %v1291_v7 }
  0x35   : > { %1193 = vmatprep.subr.bf16.mxu0 %v1292_v8 }
  0x38   : > { %1194 = vmatpush3.bf16.msra.mxu0 %v1292_v8 }
  0x3b   : > { %1196 = vmatmul.mubr.bf16.vlgmr.msra.gmra.mrb[0].mxu0 %v1294_v9 }
  0x3c   : > { %1199 = vmatprep.mubr.bf16.mxu0 %v1295_v10 }
  0x43   : > { %1200 = vmatmul.mubr.bf16.gmra.mrb[4].mxu0 %v1296_v11 }
  0x44   : > { %1203 = vmatprep.mubr.bf16.mxu0 %v1297_v12 }
  0x4b   : > { %1204 = vmatmul.mubr.bf16.gmra.mrb[8].mxu0 %v1298_v13 }
  0x4c   : > { %1207 = vmatprep.mubr.bf16.mxu0 %v1299_v14 }
  0x53   : > { %1208 = vmatmul.mubr.bf16.gmra.mrb[12].mxu0 %v1300_v15 }
  0x54   : > { %1211 = vmatprep.mubr.bf16.mxu0 %v1301_v16 }
  0x5b   : > { %1212 = vmatmul.mubr.bf16.gmra.mrb[16].mxu0 %v1302_v17 }
  0x5c   : > { %1215 = vmatprep.mubr.bf16.mxu0 %v1303_v18 }
  0x63   : > { %1216 = vmatmul.mubr.bf16.gmra.mrb[20].mxu0 %v1304_v19 }
  0x64   : > { %1219 = vmatprep.mubr.bf16.mxu0 %v1305_v20 }
  0x6b   : > { %1220 = vmatmul.mubr.bf16.gmra.mrb[24].mxu0 %v1306_v21 }
  0x6c   : > { %1223 = vmatprep.mubr.bf16.mxu0 %v1307_v22 }
  0x73   : > { %1224 = vmatmul.mubr.bf16.gmra.mrb[28].mxu0 %v1308_v23 }
 0x10e   : > { %v1197_v39 = vpop.f32.mrb[0].mxu0 }
 0x10f   : > { %v517_v40 = vadd.f32 %v1197_v39, %v1565_v38  ;;  %v508_v41 = vpop.f32.mrb[1].mxu0 }
 0x110   : > { %v509_v42 = vadd.f32 %v1565_v38, %v508_v41  ;;  %v1198_v43 = vpop.f32.mrb[2].mxu0 }
 0x111   : > { %v520_v44 = vadd.f32 %v1198_v43, %v1565_v38  ;;  %v511_v45 = vpop.f32.mrb[3].mxu0  ;;  %v637_v47 = vmax.f32 %v517_v40, 0.0 }
 0x112   : > { %v512_v46 = vadd.f32 %v1565_v38, %v511_v45  ;;  %v635_v49 = vmax.f32 %v509_v42, 0.0 }
 0x113   : > { %v638_v48 = vmax.f32 %v520_v44, 0.0 }
 0x114   : > { %v636_v50 = vmax.f32 %v512_v46, 0.0 }
 0x115   : > { %v1571_v51 = vpack.c.bf16 %v638_v48, %v637_v47 }
 0x116   : > { %v1573_v52 = vpack.c.bf16 %v636_v50, %v635_v49  ;;  %v1201_v53 = vpop.f32.mrb[4].mxu0 }
 0x117   : > { %v533_v54 = vadd.f32 %v1201_v53, %v1565_v38  ;;  %v524_v55 = vpop.f32.mrb[5].mxu0 }
 0x118   : > { %v525_v56 = vadd.f32 %v1565_v38, %v524_v55  ;;  %v1202_v57 = vpop.f32.mrb[6].mxu0 }
 0x119   : > { %v536_v58 = vadd.f32 %v1202_v57, %v1565_v38  ;;  %v527_v59 = vpop.f32.mrb[7].mxu0  ;;  %v641_v61 = vmax.f32 %v533_v54, 0.0 }
 0x11a   : > { %v528_v60 = vadd.f32 %v1565_v38, %v527_v59  ;;  %v639_v63 = vmax.f32 %v525_v56, 0.0  ;;  %v1323_v56 = vld [vmem:[%s1716_s3 + $0x78] sm:$0xff]  }
 0x11b   : > { %v642_v62 = vmax.f32 %v536_v58, 0.0  ;;  %v1324_v59 = vld [vmem:[%s1716_s3 + $0x38] sm:$0xff]   ;;  %1153 = vmatprep.subr.bf16.mxu1 %v1323_v56 }
 0x11c   : > { %v640_v0 = vmax.f32 %v528_v60, 0.0  ;;  %1154 = vmatpush3.bf16.msra.mxu1 %v1324_v59 }
 0x11d   : > { %v1579_v1 = vpack.c.bf16 %v642_v62, %v641_v61 }
 0x11e   : > { %v1581_v2 = vpack.c.bf16 %v640_v0, %v639_v63  ;;  %v1205_v3 = vpop.f32.mrb[8].mxu0 }
 0x11f   : > { %v549_v4 = vadd.f32 %v1205_v3, %v1565_v38  ;;  %v540_v5 = vpop.f32.mrb[9].mxu0 }
 0x120   : > { %v541_v6 = vadd.f32 %v1565_v38, %v540_v5  ;;  %v1206_v7 = vpop.f32.mrb[10].mxu0 }
 0x121   : > { %v552_v8 = vadd.f32 %v1206_v7, %v1565_v38  ;;  %v543_v9 = vpop.f32.mrb[11].mxu0  ;;  %v645_v11 = vmax.f32 %v549_v4, 0.0 }
 0x122   : > { %v544_v10 = vadd.f32 %v1565_v38, %v543_v9  ;;  %v643_v13 = vmax.f32 %v541_v6, 0.0 }
 0x123   : > { %v646_v12 = vmax.f32 %v552_v8, 0.0 }
 0x124   : > { %v644_v14 = vmax.f32 %v544_v10, 0.0 }
 0x125   : > { %v1587_v15 = vpack.c.bf16 %v646_v12, %v645_v11 }
 0x126   : > { %v1589_v16 = vpack.c.bf16 %v644_v14, %v643_v13  ;;  %v1209_v17 = vpop.f32.mrb[12].mxu0 }
 0x127   : > { %v565_v18 = vadd.f32 %v1209_v17, %v1565_v38  ;;  %v556_v19 = vpop.f32.mrb[13].mxu0 }
 0x128   : > { %v557_v20 = vadd.f32 %v1565_v38, %v556_v19  ;;  %v1210_v21 = vpop.f32.mrb[14].mxu0 }
 0x129   : > { %v568_v22 = vadd.f32 %v1210_v21, %v1565_v38  ;;  %v559_v23 = vpop.f32.mrb[15].mxu0  ;;  %v649_v25 = vmax.f32 %v565_v18, 0.0 }
 0x12a   : > { %v560_v24 = vadd.f32 %v1565_v38, %v559_v23  ;;  %v647_v27 = vmax.f32 %v557_v20, 0.0 }
 0x12b   : > { %v650_v26 = vmax.f32 %v568_v22, 0.0 }
 0x12c   : > { %v648_v28 = vmax.f32 %v560_v24, 0.0 }
 0x12d   : > { %v1595_v29 = vpack.c.bf16 %v650_v26, %v649_v25 }
 0x12e   : > { %v1597_v30 = vpack.c.bf16 %v648_v28, %v647_v27  ;;  %v1213_v31 = vpop.f32.mrb[16].mxu0 }
 0x12f   : > { %v581_v32 = vadd.f32 %v1213_v31, %v1565_v38  ;;  %v572_v33 = vpop.f32.mrb[17].mxu0 }
 0x130   : > { %v573_v34 = vadd.f32 %v1565_v38, %v572_v33  ;;  %v1214_v35 = vpop.f32.mrb[18].mxu0 }
 0x131   : > { %v584_v36 = vadd.f32 %v1214_v35, %v1565_v38  ;;  %v575_v37 = vpop.f32.mrb[19].mxu0  ;;  %v653_v40 = vmax.f32 %v581_v32, 0.0 }
 0x132   : > { %v576_v39 = vadd.f32 %v1565_v38, %v575_v37  ;;  %v651_v42 = vmax.f32 %v573_v34, 0.0 }
 0x133   : > { %v654_v41 = vmax.f32 %v584_v36, 0.0 }
 0x134   : > { %v652_v43 = vmax.f32 %v576_v39, 0.0 }
 0x135   : > { %v1603_v44 = vpack.c.bf16 %v654_v41, %v653_v40 }
 0x136   : > { %v675_v45 = vpack.c.bf16 %v652_v43, %v651_v42  ;;  %v1217_v46 = vpop.f32.mrb[20].mxu0 }
 0x137   : > { %v597_v47 = vadd.f32 %v1217_v46, %v1565_v38  ;;  %v588_v48 = vpop.f32.mrb[21].mxu0 }
 0x138   : > { %v589_v49 = vadd.f32 %v1565_v38, %v588_v48  ;;  %v1218_v50 = vpop.f32.mrb[22].mxu0 }
 0x139   : > { %v600_v53 = vadd.f32 %v1218_v50, %v1565_v38  ;;  %v591_v54 = vpop.f32.mrb[23].mxu0  ;;  %v657_v57 = vmax.f32 %v597_v47, 0.0 }
 0x13a   : > { %v592_v55 = vadd.f32 %v1565_v38, %v591_v54  ;;  %v655_v60 = vmax.f32 %v589_v49, 0.0 }
 0x13b   : > { %v658_v58 = vmax.f32 %v600_v53, 0.0 }
 0x13c   : > { %v656_v61 = vmax.f32 %v592_v55, 0.0 }
 0x13d   : > { %v678_v62 = vpack.c.bf16 %v658_v58, %v657_v57 }
 0x13e   : > { %v677_v63 = vpack.c.bf16 %v656_v61, %v655_v60  ;;  %v1221_v0 = vpop.f32.mrb[24].mxu0 }
 0x13f   : > { %v613_v3 = vadd.f32 %v1221_v0, %v1565_v38  ;;  %v604_v4 = vpop.f32.mrb[25].mxu0 }
 0x140   : > { %v605_v5 = vadd.f32 %v1565_v38, %v604_v4  ;;  %v1222_v6 = vpop.f32.mrb[26].mxu0 }
 0x141   : > { %v616_v7 = vadd.f32 %v1222_v6, %v1565_v38  ;;  %v607_v8 = vpop.f32.mrb[27].mxu0  ;;  %v661_v10 = vmax.f32 %v613_v3, 0.0 }
 0x142   : > { %v608_v9 = vadd.f32 %v1565_v38, %v607_v8  ;;  %v659_v12 = vmax.f32 %v605_v5, 0.0 }
 0x143   : > { %v662_v11 = vmax.f32 %v616_v7, 0.0 }
 0x144   : > { %v660_v13 = vmax.f32 %v608_v9, 0.0 }
 0x145   : > { %v680_v14 = vpack.c.bf16 %v662_v11, %v661_v10 }
 0x146   : > { %v1225_v17 = vpop.f32.mrb[28].mxu0  ;;  %v679_v18 = vpack.c.bf16 %v660_v13, %v659_v12 }
 0x147   : > { %v629_v19 = vadd.f32 %v1225_v17, %v1565_v38  ;;  %701 = vrot.lane.b32.xlu1 %v680_v14, %s1405_s27  ;;  %v620_v20 = vpop.f32.mrb[29].mxu0 }
 0x148   : > { %v621_v21 = vadd.f32 %v1565_v38, %v620_v20  ;;  %v1226_v22 = vpop.f32.mrb[30].mxu0  ;;  %699 = vrot.lane.b32.xlu0 %v679_v18, %s1405_s27 }
 0x149   : > { %v665_v23 = vmax.f32 %v629_v19, 0.0  ;;  %v632_v24 = vadd.f32 %v1226_v22, %v1565_v38  ;;  %v623_v25 = vpop.f32.mrb[31].mxu0 }
 0x14a   : > { %v663_v26 = vmax.f32 %v621_v21, 0.0  ;;  %v624_v27 = vadd.f32 %v1565_v38, %v623_v25 }
 0x14b   : > { %v666_v28 = vmax.f32 %v632_v24, 0.0  ;;  %689 = vrot.lane.b32.xlu1 %v1587_v15, %s1405_s27 }
 0x14c   : > { %v664_v31 = vmax.f32 %v624_v27, 0.0  ;;  %687 = vrot.lane.b32.xlu0 %v1589_v16, %s1405_s27 }
 0x14d   : > { %v682_v32 = vpack.c.bf16 %v666_v28, %v665_v23 }
 0x14e   : > { %v681_v33 = vpack.c.bf16 %v664_v31, %v663_v26 }
 0x14f   : > { %691 = vrot.lane.b32.xlu1 %v1597_v30, %s1405_s27 }
 0x150   : > { %703 = vrot.lane.b32.xlu0 %v681_v33, %s1405_s27 }
 0x153   : > { %693 = vrot.lane.b32.xlu1 %v1595_v29, %s1405_s27 }
 0x154   : > { %705 = vrot.lane.b32.xlu0 %v682_v32, %s1405_s27 }
 0x1b9   : > { %v702_v38 = vpop.permute.xlu1 %701 }
 0x1ba   : > { %v700_v34 = vpop.permute.xlu0 %699  ;;  %v730_v16 = vsel %vm707_vm0, %v1603_v44, %v702_v38 }
 0x1bb   : > { %v726_v35 = vsel %vm707_vm0, %v675_v45, %v700_v34  ;;  %v1090_v45 = vld [vmem:[%s1717_s4] ss:$0 sm:$0xff] }
 0x1bc   : > { %907 = vmatprep.mubr.bf16.mxu1 %v726_v35 }
 0x1bd   : > { %v690_v30 = vpop.permute.xlu1 %689 }
 0x1be   : > { %v688_v36 = vpop.permute.xlu0 %687  ;;  %v714_v29 = vsel %vm707_vm0, %v1571_v51, %v690_v30 }
 0x1bf   : > { %v710_v15 = vsel %vm707_vm0, %v1573_v52, %v688_v36 }
 0x1c0   : > { %908 = vmatmul.mubr.bf16.vlgmr.msra.gmra.mrb[0].mxu1 %v710_v15 }
 0x1c1   : > { %915 = vmatprep.mubr.bf16.mxu1 %v730_v16  ;;  %v692_v40 = vpop.permute.xlu1 %691 }
 0x1c2   : > { %v704_v37 = vpop.permute.xlu0 %703  ;;  %v718_v52 = vsel %vm707_vm0, %v1581_v2, %v692_v40 }
 0x1c3   : > { %v734_v39 = vsel %vm707_vm0, %v677_v63, %v704_v37 }
 0x1c5   : > { %v694_v43 = vpop.permute.xlu1 %693 }
 0x1c6   : > { %v706_v41 = vpop.permute.xlu0 %705  ;;  %v722_v44 = vsel %vm707_vm0, %v1579_v1, %v694_v43 }
 0x1c7   : > { %v738_v42 = vsel %vm707_vm0, %v678_v62, %v706_v41 }
 0x1c8   : > { %916 = vmatmul.mubr.bf16.gmra.mrb[4].mxu1 %v714_v29 }
 0x1c9   : > { %923 = vmatprep.mubr.bf16.mxu1 %v734_v39 }
 0x1d0   : > { %924 = vmatmul.mubr.bf16.gmra.mrb[8].mxu1 %v718_v52 }
 0x1d1   : > { %931 = vmatprep.mubr.bf16.mxu1 %v738_v42 }
 0x1d8   : > { %932 = vmatmul.mubr.bf16.gmra.mrb[12].mxu1 %v722_v44 }
 0x293   : > { %v1155_v51 = vpop.f32.mrb[0].mxu1 }
 0x294   : > { %v1156_v46 = vpop.f32.mrb[1].mxu1 }
 0x295   : > { %v1157_v47 = vadd.f32 %v1156_v46, %v1155_v51  ;;  %v1158_v2 = vpop.f32.mrb[2].mxu1 }
 0x296   : > { %v1159_v48 = vpop.f32.mrb[3].mxu1 }
 0x297   : > { %v910_v49 = vadd.f32 %v1157_v47, %v1090_v45  ;;  %v1160_v50 = vadd.f32 %v1159_v48, %v1158_v2 }
 0x299   : > { %940 = vst [vmem:[%s1646_s10] sm:$0xff] %v910_v49  ;;  %v913_v1 = vadd.f32 %v1160_v50, %v1090_v45 }
 0x29b   : > { %941 = vst [vmem:[%s1646_s10 + $0x8] sm:$0xff] %v913_v1  ;;  %v1161_v53 = vpop.f32.mrb[4].mxu1 }
 0x29c   : > { %v1162_v54 = vpop.f32.mrb[5].mxu1 }
 0x29d   : > { %v1163_v55 = vadd.f32 %v1162_v54, %v1161_v53  ;;  %v1164_v56 = vpop.f32.mrb[6].mxu1 }
 0x29e   : > { %v1165_v57 = vpop.f32.mrb[7].mxu1 }
 0x29f   : > { %v918_v58 = vadd.f32 %v1163_v55, %v1090_v45  ;;  %v1166_v59 = vadd.f32 %v1165_v57, %v1164_v56 }
 0x2a1   : > { %942 = vst [vmem:[%s1646_s10 + $0x10] sm:$0xff] %v918_v58  ;;  %v921_v60 = vadd.f32 %v1166_v59, %v1090_v45 }
 0x2a3   : > { %943 = vst [vmem:[%s1646_s10 + $0x18] sm:$0xff] %v921_v60  ;;  %v1167_v61 = vpop.f32.mrb[8].mxu1 }
 0x2a4   : > { %v1168_v62 = vpop.f32.mrb[9].mxu1 }
 0x2a5   : > { %v1169_v63 = vadd.f32 %v1168_v62, %v1167_v61  ;;  %v1170_v0 = vpop.f32.mrb[10].mxu1 }
 0x2a6   : > { %v1171_v3 = vpop.f32.mrb[11].mxu1 }
 0x2a7   : > { %v926_v4 = vadd.f32 %v1169_v63, %v1090_v45  ;;  %v1172_v5 = vadd.f32 %v1171_v3, %v1170_v0 }
 0x2a9   : > { %944 = vst [vmem:[%s1646_s10 + $0x20] sm:$0xff] %v926_v4  ;;  %v929_v6 = vadd.f32 %v1172_v5, %v1090_v45 }
 0x2ab   : > { %945 = vst [vmem:[%s1646_s10 + $0x28] sm:$0xff] %v929_v6  ;;  %v1173_v7 = vpop.f32.mrb[12].mxu1 }
 0x2ac   : > { %v1174_v8 = vpop.f32.mrb[13].mxu1 }
 0x2ad   : > { %v1175_v9 = vadd.f32 %v1174_v8, %v1173_v7  ;;  %v1176_v10 = vpop.f32.mrb[14].mxu1 }
 0x2ae   : > { %v1177_v11 = vpop.f32.mrb[15].mxu1 }
 0x2af   : > { %v934_v12 = vadd.f32 %v1175_v9, %v1090_v45  ;;  %v1178_v13 = vadd.f32 %v1177_v11, %v1176_v10 }
 0x2b1   : > { %946 = vst [vmem:[%s1646_s10 + $0x30] sm:$0xff] %v934_v12  ;;  %v937_v14 = vadd.f32 %v1178_v13, %v1090_v45 }
 0x2b3   : > { %947 = vst [vmem:[%s1646_s10 + $0x38] sm:$0xff] %v937_v14 }
 0x2b4   : > { %1338 = shalt.err (!%p1335_p5)
}
 0x2b5   : > { %s1339_s27 = scalar_lea.hbm %s1659_s15, 1024  ;;  %s1343_s8 = scalar_lea.hbm %s1718_s5, 2048 }
 0x2b6   : > { %p1340_p6 = scmp.ne.s32.totalorder %s1659_s15, %s1339_s27  ;;  %p1344_p10 = scmp.lt.u32.totalorder %s1659_s15, %s1718_s5 }
 0x2b7   : > { %p1345_p11 = scmp.lt.u32.totalorder %s1343_s8, %s1339_s27  ;;  %p1347_p13 = scmp.lt.u32.totalorder %s1339_s27, %s1659_s15 }
 0x2b8   : > { %p1341_p7 = pnand %p1340_p6, %p1479_p4 }
 0x2b9   : > { %p1346_p12 = por %p1345_p11, %p1344_p10 }
 0x2ba   : > { %p1342_p9 = pneg %p1341_p7 }
 0x2bb   : > { %p1348_p0 = por %p1347_p13, %p1346_p12 }
 0x2bd   : > { %p1349_p1 = pnand %p1348_p0, %p1342_p9 }
 0x2bf   : > { %1352 = shalt.err (!%p1349_p1)
}
 0x2c0   : > { %s1407_s11 = smov 128   ;;  %s1408_s13 = smov 8  }
 0x2c1   : > { %1227 = dma.vmem_to_hbm [thread:$0]  (%p1479_p4), %s1661_s12, 1024, %s1659_s15, %s1667_s16, %s1407_s11, %s1407_s11, %s1408_s13  }
 0x2c2 PF: > { %p1233_p2 = scmp.ge.s32.totalorder %s1403_s23, 2  ;;  %s979_s14 = sand.u32 1, %s1383_s18  }
 0x2c3   : > { %s980_s21 = scalar_lea.sflag [#allocation3], %s979_s14 }
 0x2c4   : > { %p1230_p3 = pnand %p1233_p2, %p1486_p8 }
 0x2c6   : > { %1378 = dma.done.wait (!%p1230_p3), %s980_s21, 1024  }
 0x2c7   : > { %1380 = vsyncadd (!%p1230_p3), %s980_s21, 4294966272  ;;  %s18_s23 = sadd.s32 1, %s1403_s23   ;;  %s1721_s18 = smov %s1387_s19 }
 0x2c8   : > { %p15_p5 = scmp.ge.s32.totalorder %s18_s23, 4   ;;  %s1722_s19 = smov %s1391_s20 }
 0x2c9   : > { %s1723_s20 = smov %s1492_s6  ;;  %s1724_s21 = smov %s1399_s22 }
 0x2ca   : > { %s1725_s22 = smov %s1727_s26  ;;  %17 = sbr.rel (!%p15_p5) target bundleno = 4 (0x4), region = 78 }
 0x2d1   :  { %985 = vsyncpa [#allocation3], 1 }
 0x2d2   :  { %987 = vsyncpa [#allocation3 + $0x1], 1 }

</bundles_post_ra>
